<compile_context>
chip_gen: v6e
topology: v6e:2x2x1
jax: 0.10.0
libtpu: 0.0.40
codegen_flags: <defaults>
</compile_context>

<pallas_src>
import functools

import jax
import jax.numpy as jnp
from jax.experimental import pallas as pl
from jax.experimental.pallas import tpu as pltpu


# ----------------------------------------------------------------------------
# generation-aware tiling / VMEM knobs
# ----------------------------------------------------------------------------

def _device_kind():
    try:
        return jax.devices()[0].device_kind.lower()
    except Exception:
        return ""


_KIND = _device_kind()
_IS_V7 = "v7" in _KIND                              # 64 MiB VMEM/TC, 2 TCs/chip
_BIG_VMEM = ("v5" in _KIND) or ("v6" in _KIND)      # 128 MiB VMEM parts

_VMEM_LIMIT_BYTES = (40 if _IS_V7 else (64 if _BIG_VMEM else 32)) * 1024 * 1024
_TM_TARGET = 256 if _IS_V7 else 512
_TK_TARGET = 512 if _IS_V7 else 1024
_TN_TARGET = 256

_COMPILER_PARAMS_3D = pltpu.CompilerParams(
    dimension_semantics=("parallel", "parallel", "arbitrary"),
    vmem_limit_bytes=_VMEM_LIMIT_BYTES)
_COMPILER_PARAMS_2D = pltpu.CompilerParams(
    dimension_semantics=("parallel", "arbitrary"),
    vmem_limit_bytes=_VMEM_LIMIT_BYTES)
_COMPILER_PARAMS_1D = pltpu.CompilerParams(
    dimension_semantics=("parallel",),
    vmem_limit_bytes=_VMEM_LIMIT_BYTES)


# ----------------------------------------------------------------------------
# small helpers
# ----------------------------------------------------------------------------

def _round_up(x, m):
    return ((x + m - 1) // m) * m


def _pad2d(a, rows, cols):
    r, c = a.shape
    if r == rows and c == cols:
        return a
    return jnp.pad(a, ((0, rows - r), (0, cols - c)))


def _tile_k(k):
    return min(_TK_TARGET, _round_up(k, 128))


def _tile_n(n):
    return min(_TN_TARGET, _round_up(n, 128))


def _tile_m(m):
    tm = min(_TM_TARGET, _round_up(m, 16))   # 16: bf16 packs 2 rows per sublane
    if _IS_V7 and m > 16:
        # expose >= 2 blocks along the parallel M axis -> both TensorCores busy
        tm = min(tm, _round_up(-(-m // 2), 16))
    return tm


# ----------------------------------------------------------------------------
# Tiled matmul kernel with fused bias + optional ReLU epilogue
# ----------------------------------------------------------------------------

def _mm_bias_kernel(x_ref, w_ref, b_ref, o_ref, acc_ref, *, apply_relu):
    kk = pl.program_id(2)

    @pl.when(kk == 0)
    def _init():
        acc_ref[...] = jnp.zeros_like(acc_ref)

    acc_ref[...] += jnp.dot(x_ref[...], w_ref[...],
                            preferred_element_type=jnp.float32)

    @pl.when(kk == pl.num_programs(2) - 1)
    def _finalize():
        out = acc_ref[...] + b_ref[...]            # f32 epilogue
        if apply_relu:
            out = jnp.maximum(out, 0.0)
        o_ref[...] = out.astype(o_ref.dtype)


def pallas_matmul_packed(x, wp, bp, n_out, *, relu, out_dtype):
    """out = relu?(x @ wp + bp) with pre-packed/padded bf16 weight wp."""
    m, k = x.shape
    tm, tk, tn = _tile_m(m), _tile_k(k), _tile_n(n_out)
    kp, np_ = _round_up(k, tk), _round_up(n_out, tn)
    assert wp.shape == (kp, np_), (wp.shape, (kp, np_))
    assert bp.shape == (1, np_), (bp.shape, np_)
    mp = _round_up(m, tm)

    xp = _pad2d(x.astype(jnp.bfloat16), mp, kp)

    out = pl.pallas_call(
        functools.partial(_mm_bias_kernel, apply_relu=relu),
        out_shape=jax.ShapeDtypeStruct((mp, np_), out_dtype),
        grid=(mp // tm, np_ // tn, kp // tk),
        in_specs=[
            pl.BlockSpec((tm, tk), lambda i, j, kk: (i, kk)),
            pl.BlockSpec((tk, tn), lambda i, j, kk: (kk, j)),
            pl.BlockSpec((1, tn), lambda i, j, kk: (0, j)),
        ],
        out_specs=pl.BlockSpec((tm, tn), lambda i, j, kk: (i, j)),
        scratch_shapes=[pltpu.VMEM((tm, tn), jnp.float32)],
        compiler_params=_COMPILER_PARAMS_3D,
    )(xp, wp, bp)
    return out[:m, :n_out]


# ----------------------------------------------------------------------------
# Fused residual block kernel:
#   out = x + Conv1x1( ReLU( Conv3x3( ReLU(x) ) ) )   [+ optional final ReLU]
# Optionally the pre-VQ 1x1 conv is fused into the finalize phase (the last
# encoder block), so only the narrow latent z is written back to HBM.
# ----------------------------------------------------------------------------

def _resblock_kernel(*refs, final_relu, fuse_z):
    if fuse_z:
        c_ref, w3_ref, w1_ref, xr_ref, wz_ref, bz_ref, o_ref, acc_ref = refs
    else:
        c_ref, w3_ref, w1_ref, xr_ref, o_ref, acc_ref = refs
    kk = pl.program_id(1)

    @pl.when(kk == 0)
    def _init():
        acc_ref[...] = jnp.zeros_like(acc_ref)

    x = jnp.maximum(c_ref[...], 0).astype(jnp.bfloat16)   # fused pre-ReLU
    acc_ref[...] += jnp.dot(x, w3_ref[...],
                            preferred_element_type=jnp.float32)

    @pl.when(kk == pl.num_programs(1) - 1)
    def _finalize():
        hid = jnp.maximum(acc_ref[...], 0.0).astype(jnp.bfloat16)
        out = jnp.dot(hid, w1_ref[...],
                      preferred_element_type=jnp.float32)
        out = out + xr_ref[...].astype(jnp.float32)        # residual add
        if final_relu:
            out = jnp.maximum(out, 0.0)
        if fuse_z:
            z = jnp.dot(out.astype(jnp.bfloat16), wz_ref[...],
                        preferred_element_type=jnp.float32) + bz_ref[...]
            o_ref[...] = z.astype(o_ref.dtype)
        else:
            o_ref[...] = out.astype(o_ref.dtype)


def residual_block_packed(x_nhwc, rp, *, final_relu, fuse=None):
    bsz, h, w, c = x_nhwc.shape
    x_nhwc = x_nhwc.astype(jnp.bfloat16)
    cols, _ = _im2col(x_nhwc, 3, 3, 1, (1, 1, 1, 1))       # (M, 9*C) bf16
    m, k9 = cols.shape
    kp, rhp = rp["w3"].shape
    cp = rp["w1"].shape[1]
    tm = _tile_m(m)
    tk = _tile_k(k9)
    assert kp == _round_up(k9, tk)
    mp = _round_up(m, tm)

    cols_p = _pad2d(cols, mp, kp)
    xrp = _pad2d(x_nhwc.reshape(m, c), mp, cp)

    if fuse is None:
        n_out_p, n_real, out_dt = cp, c, jnp.bfloat16
        inputs = (cols_p, rp["w3"], rp["w1"], xrp)
        in_specs = [
            pl.BlockSpec((tm, tk), lambda i, kk: (i, kk)),   # im2col(x)
            pl.BlockSpec((tk, rhp), lambda i, kk: (kk, 0)),  # 3x3 weights
            pl.BlockSpec((rhp, cp), lambda i, kk: (0, 0)),   # 1x1 weights
            pl.BlockSpec((tm, cp), lambda i, kk: (i, 0)),    # residual input
        ]
    else:
        dp = fuse["w"].shape[1]
        assert fuse["w"].shape[0] == cp
        n_out_p, n_real, out_dt = dp, fuse["d"], jnp.float32
        inputs = (cols_p, rp["w3"], rp["w1"], xrp, fuse["w"], fuse["b"])
        in_specs = [
            pl.BlockSpec((tm, tk), lambda i, kk: (i, kk)),
            pl.BlockSpec((tk, rhp), lambda i, kk: (kk, 0)),
            pl.BlockSpec((rhp, cp), lambda i, kk: (0, 0)),
            pl.BlockSpec((tm, cp), lambda i, kk: (i, 0)),
            pl.BlockSpec((cp, dp), lambda i, kk: (0, 0)),    # pre-VQ 1x1 weight
            pl.BlockSpec((1, dp), lambda i, kk: (0, 0)),     # pre-VQ bias
        ]

    out = pl.pallas_call(
        functools.partial(_resblock_kernel, final_relu=final_relu,
                          fuse_z=(fuse is not None)),
        out_shape=jax.ShapeDtypeStruct((mp, n_out_p), out_dt),
        grid=(mp // tm, kp // tk),
        in_specs=in_specs,
        out_specs=pl.BlockSpec((tm, n_out_p), lambda i, kk: (i, 0)),
        scratch_shapes=[pltpu.VMEM((tm, rhp), jnp.float32)],
        compiler_params=_COMPILER_PARAMS_2D,
    )(*inputs)
    return out[:m, :n_real].reshape(bsz, h, w, n_real)


# ----------------------------------------------------------------------------
# Vector quantizer kernel: distances, first-index argmin, quantize, counts.
# ----------------------------------------------------------------------------

def _vq_kernel(z_ref, e_ref, e2_ref, q_ref, cnt_ref, *, k_real, n_real, tm):
    i = pl.program_id(0)
    z = z_ref[...]                                   # (tm, Dp) f32
    e = e_ref[...]                                   # (Kp, Dp) f32
    z2 = jnp.sum(z * z, axis=1, keepdims=True)       # (tm, 1)
    # bf16 operands / f32 accumulation for the distance dot (fast MXU path)
    ze = jax.lax.dot_general(z.astype(jnp.bfloat16), e.astype(jnp.bfloat16),
                             (((1,), (1,)), ((), ())),
                             preferred_element_type=jnp.float32)
    d = z2 + e2_ref[...] - 2.0 * ze                  # (tm, Kp)

    tm_b, kp = d.shape
    col = jax.lax.broadcasted_iota(jnp.int32, (tm_b, kp), 1)
    d = jnp.where(col < k_real, d, jnp.inf)          # never pick padded codes
    d_min = jnp.min(d, axis=1, keepdims=True)
    first = jnp.min(jnp.where(d == d_min, col, kp), axis=1, keepdims=True)
    enc = (col == first).astype(jnp.float32)         # one-hot, VMEM-only

    # f32 quantize dot: emitted codes equal the f32 codebook rows exactly
    q_ref[...] = jnp.dot(enc, e, preferred_element_type=jnp.float32)

    row = jax.lax.broadcasted_iota(jnp.int32, (tm_b, 1), 0) + i * tm
    enc = enc * (row < n_real).astype(jnp.float32)   # drop padded latent rows
    partial = jnp.sum(enc, axis=0, keepdims=True)    # (1, Kp) per-tile counts
    cnt_ref[...] = partial[None]                     # (1, 1, Kp)


def pallas_vq(flat_z, vqp):
    n, d = flat_z.shape
    k = vqp["k"]
    ep, e2 = vqp["e"], vqp["e2"]
    kp, dp = ep.shape
    tm = _tile_m(n)
    np_ = _round_up(n, tm)
    n_tiles = np_ // tm

    zp = _pad2d(flat_z.astype(jnp.float32), np_, dp)

    q, cnt = pl.pallas_call(
        functools.partial(_vq_kernel, k_real=k, n_real=n, tm=tm),
        out_shape=(jax.ShapeDtypeStruct((np_, dp), jnp.float32),
                   jax.ShapeDtypeStruct((n_tiles, 1, kp), jnp.float32)),
        grid=(n_tiles,),
        in_specs=[
            pl.BlockSpec((tm, dp), lambda i: (i, 0)),
            pl.BlockSpec((kp, dp), lambda i: (0, 0)),    # codebook resident
            pl.BlockSpec((1, kp), lambda i: (0, 0)),     # |e|^2 resident
        ],
        out_specs=(pl.BlockSpec((tm, dp), lambda i: (i, 0)),
                   pl.BlockSpec((1, 1, kp), lambda i: (i, 0, 0))),
        compiler_params=_COMPILER_PARAMS_1D,
    )(zp, ep, e2)

    counts = jnp.sum(cnt[:, 0, :], axis=0)[:k]       # tiny host-side reduce
    return q[:n, :d], counts


# ----------------------------------------------------------------------------
# Conv glue: im2col feeding the tiled Pallas matmul
# TODO(synk): replace the HBM im2col with in-kernel shifted-window DMA reads.
# ----------------------------------------------------------------------------

def _im2col(x_nhwc, kh, kw, stride, pads):
    pt, pb, pleft, pright = pads
    if max(pads) > 0:
        x_nhwc = jnp.pad(x_nhwc, ((0, 0), (pt, pb), (pleft, pright), (0, 0)))
    b, h, w, c = x_nhwc.shape
    oh = (h - kh) // stride + 1
    ow = (w - kw) // stride + 1
    patches = []
    for i in range(kh):
        for j in range(kw):
            patches.append(
                x_nhwc[:, i:i + (oh - 1) * stride + 1:stride,
                       j:j + (ow - 1) * stride + 1:stride, :])
    cols = jnp.concatenate(patches, axis=-1)          # (B, oh, ow, kh*kw*C)
    return cols.reshape(b * oh * ow, kh * kw * c), (b, oh, ow)


def conv2d_packed(x_nhwc, cp, *, stride, pad, relu, out_dtype=jnp.bfloat16):
    kh, kw, n_out = cp["kh"], cp["kw"], cp["n"]
    x_nhwc = x_nhwc.astype(jnp.bfloat16)
    cols, (bsz, oh, ow) = _im2col(x_nhwc, kh, kw, stride, (pad,) * 4)
    out = pallas_matmul_packed(cols, cp["w"], cp["b"], n_out,
                               relu=relu, out_dtype=out_dtype)
    return out.reshape(bsz, oh, ow, n_out)


def conv_transpose2d_packed(x_nhwc, tp, *, relu, out_dtype):
    """ConvTranspose2d(k=4, s=2, p=1): one 3x3/pad-1 im2col, one GEMM against
    a combined (9*Cin, 4*Cout) phase weight, then depth-to-space interleave."""
    bsz, h, w, _ = x_nhwc.shape
    co = tp["co"]
    x_nhwc = x_nhwc.astype(jnp.bfloat16)
    cols, _ = _im2col(x_nhwc, 3, 3, 1, (1, 1, 1, 1))
    out = pallas_matmul_packed(cols, tp["w"], tp["b"], 4 * co,
                               relu=relu, out_dtype=out_dtype)
    out = out.reshape(bsz, h, w, 2, 2, co)            # (B, y, x, ry, rx, C)
    out = jnp.transpose(out, (0, 1, 3, 2, 4, 5))      # (B, y, ry, x, rx, C)
    return out.reshape(bsz, 2 * h, 2 * w, co)


# ----------------------------------------------------------------------------
# One-time weight packing (transpose -> (K,N), pad to tile grid, cast to bf16)
# ----------------------------------------------------------------------------

def _pack_conv(w_oihw, b):
    o, i, kh, kw = w_oihw.shape
    k = kh * kw * i
    wmat = jnp.transpose(w_oihw, (2, 3, 1, 0)).reshape(k, o)
    kp, np_ = _round_up(k, _tile_k(k)), _round_up(o, _tile_n(o))
    return {"w": _pad2d(wmat, kp, np_).astype(jnp.bfloat16),
            "b": _pad2d(b.reshape(1, o).astype(jnp.float32), 1, np_),
            "n": o, "kh": kh, "kw": kw}


def _pack_resblock(w3, w1):
    rh, c = w3.shape[0], w3.shape[1]
    k9 = 9 * c
    w3mat = jnp.transpose(w3, (2, 3, 1, 0)).reshape(k9, rh)
    w1mat = jnp.transpose(w1, (2, 3, 1, 0)).reshape(rh, c)
    kp = _round_up(k9, _tile_k(k9))
    rhp, cp = _round_up(rh, 128), _round_up(c, 128)
    return {"w3": _pad2d(w3mat, kp, rhp).astype(jnp.bfloat16),
            "w1": _pad2d(w1mat, rhp, cp).astype(jnp.bfloat16)}


def _pack_1x1(w, b):
    d, c = w.shape[0], w.shape[1]
    wmat = jnp.transpose(w, (2, 3, 1, 0)).reshape(c, d)
    cp, dp = _round_up(c, 128), _round_up(d, 128)
    return {"w": _pad2d(wmat, cp, dp).astype(jnp.bfloat16),
            "b": _pad2d(b.reshape(1, d).astype(jnp.float32), 1, dp),
            "d": d}


# sub-pixel phase taps for ConvTranspose2d(k=4, s=2, p=1) over a 3x3 window:
# phase r uses (window offset, kernel tap) pairs below along each axis.
_PHASE_TAPS = {0: ((0, 3), (1, 1)), 1: ((1, 2), (2, 0))}


def _pack_conv_transpose(w_iohw, b):
    ci, co = w_iohw.shape[0], w_iohw.shape[1]
    wc = jnp.zeros((9 * ci, 4 * co), jnp.float32)
    for ry in (0, 1):
        for rx in (0, 1):
            p = ry * 2 + rx
            for (iw, ky) in _PHASE_TAPS[ry]:
                for (jw, kx) in _PHASE_TAPS[rx]:
                    blk = w_iohw[:, :, ky, kx].astype(jnp.float32)   # (ci, co)
                    r0 = (iw * 3 + jw) * ci
                    wc = wc.at[r0:r0 + ci, p * co:(p + 1) * co].set(blk)
    bc = jnp.tile(b.reshape(1, co).astype(jnp.float32), (1, 4))      # (1, 4*co)
    k, n = 9 * ci, 4 * co
    kp, np_ = _round_up(k, _tile_k(k)), _round_up(n, _tile_n(n))
    return {"w": _pad2d(wc, kp, np_).astype(jnp.bfloat16),
            "b": _pad2d(bc, 1, np_),
            "co": co}


def _pack_vq(embedding):
    k, d = embedding.shape
    kp, dp = _round_up(k, 128), _round_up(d, 128)
    e = embedding.astype(jnp.float32)
    e2 = jnp.sum(e * e, axis=1, keepdims=True).T      # (1, K)
    return {"e": _pad2d(e, kp, dp), "e2": _pad2d(e2, 1, kp), "k": k, "d": d}


def pack_params(params):
    return {
        "enc_c1": _pack_conv(params["enc_c1_w"], params["enc_c1_b"]),
        "enc_c2": _pack_conv(params["enc_c2_w"], params["enc_c2_b"]),
        "enc_c3": _pack_conv(params["enc_c3_w"], params["enc_c3_b"]),
        "enc_res": [_pack_resblock(w3, w1) for (w3, w1) in params["enc_res"]],
        "pre_vq": _pack_1x1(params["pre_vq_w"], params["pre_vq_b"]),
        "vq": _pack_vq(params["embedding"]),
        "dec_c1": _pack_conv(params["dec_c1_w"], params["dec_c1_b"]),
        "dec_res": [_pack_resblock(w3, w1) for (w3, w1) in params["dec_res"]],
        "dec_t1": _pack_conv_transpose(params["dec_t1_w"], params["dec_t1_b"]),
        "dec_t2": _pack_conv_transpose(params["dec_t2_w"], params["dec_t2_b"]),
    }


# ----------------------------------------------------------------------------
# VQ-VAE forward (decay=0 -> plain VectorQuantizer branch)
# ----------------------------------------------------------------------------

def vqvae_forward(pk, x_nchw, commitment_cost):
    x = jnp.transpose(x_nchw, (0, 2, 3, 1)).astype(jnp.bfloat16)   # -> NHWC

    # Encoder
    h = conv2d_packed(x, pk["enc_c1"], stride=2, pad=1, relu=True)
    h = conv2d_packed(h, pk["enc_c2"], stride=2, pad=1, relu=True)
    h = conv2d_packed(h, pk["enc_c3"], stride=1, pad=1, relu=False)

    # Residual stack; the pre-VQ 1x1 conv is fused into the last block.
    n_res = len(pk["enc_res"])
    for i in range(n_res - 1):
        h = residual_block_packed(h, pk["enc_res"][i], final_relu=False)
    z = residual_block_packed(h, pk["enc_res"][n_res - 1], final_relu=True,
                              fuse=pk["pre_vq"])                   # f32 latents

    # Vector quantizer
    bsz, zh, zw, d = z.shape
    flat = z.reshape(-1, d)
    q_flat, counts = pallas_vq(flat, pk["vq"])
    quantized = q_flat.reshape(bsz, zh, zw, d)

    e_latent_loss = jnp.mean((jax.lax.stop_gradient(quantized) - z) ** 2)
    q_latent_loss = jnp.mean((quantized - jax.lax.stop_gradient(z)) ** 2)
    loss = q_latent_loss + commitment_cost * e_latent_loss

    # straight-through estimator (forward value equals `quantized`)
    quantized_st = z + jax.lax.stop_gradient(quantized - z)

    avg_probs = counts / flat.shape[0]
    perplexity = jnp.exp(-jnp.sum(avg_probs * jnp.log(avg_probs + 1e-10)))

    # Decoder
    dx = conv2d_packed(quantized_st, pk["dec_c1"], stride=1, pad=1, relu=False)
    n_res_d = len(pk["dec_res"])
    for i in range(n_res_d):
        dx = residual_block_packed(dx, pk["dec_res"][i],
                                   final_relu=(i == n_res_d - 1))
    dx = conv_transpose2d_packed(dx, pk["dec_t1"], relu=True,
                                 out_dtype=jnp.bfloat16)
    xr = conv_transpose2d_packed(dx, pk["dec_t2"], relu=False,
                                 out_dtype=jnp.float32)
    x_recon = jnp.transpose(xr, (0, 3, 1, 2))                      # -> NCHW
    return loss, x_recon, perplexity


# ----------------------------------------------------------------------------
# Deterministic parameter init (shapes follow the PyTorch module)
# ----------------------------------------------------------------------------

def init_params(key, num_hiddens, num_residual_layers, num_residual_hiddens,
                num_embeddings, embedding_dim):
    keys = iter(jax.random.split(key, 64))

    def w(shape, scale=0.1):
        return scale * jax.random.normal(next(keys), shape, jnp.float32)

    nh, nrh = num_hiddens, num_residual_hiddens
    params = {
        # Encoder
        "enc_c1_w": w((nh // 2, 3, 4, 4)), "enc_c1_b": w((nh // 2,), 0.01),
        "enc_c2_w": w((nh, nh // 2, 4, 4)), "enc_c2_b": w((nh,), 0.01),
        "enc_c3_w": w((nh, nh, 3, 3)),     "enc_c3_b": w((nh,), 0.01),
        "enc_res": [(w((nrh, nh, 3, 3)), w((nh, nrh, 1, 1)))
                    for _ in range(num_residual_layers)],
        # pre-VQ 1x1
        "pre_vq_w": w((embedding_dim, nh, 1, 1)),
        "pre_vq_b": w((embedding_dim,), 0.01),
        # codebook: uniform(-1/K, 1/K) like the PyTorch init
        "embedding": jax.random.uniform(
            next(keys), (num_embeddings, embedding_dim), jnp.float32,
            minval=-1.0 / num_embeddings, maxval=1.0 / num_embeddings),
        # Decoder
        "dec_c1_w": w((nh, embedding_dim, 3, 3)), "dec_c1_b": w((nh,), 0.01),
        "dec_res": [(w((nrh, nh, 3, 3)), w((nh, nrh, 1, 1)))
                    for _ in range(num_residual_layers)],
        "dec_t1_w": w((nh, nh // 2, 4, 4)), "dec_t1_b": w((nh // 2,), 0.01),
        "dec_t2_w": w((nh // 2, 3, 4, 4)),  "dec_t2_b": w((3,), 0.01),
    }
    return params


# ----------------------------------------------------------------------------

if __name__ == "__main__":
    num_hiddens = 32
    num_residual_layers = 2
    num_residual_hiddens = 8
    num_embeddings = 16
    embedding_dim = 8
    commitment_cost = 0.25   # decay=0 -> plain VectorQuantizer branch

    key = jax.random.PRNGKey(0)
    pkey, xkey = jax.random.split(key)
    params = init_params(pkey, num_hiddens, num_residual_layers,
                         num_residual_hiddens, num_embeddings, embedding_dim)
    packed = pack_params(params)        # one-time weight packing (not per-call)

    x = jax.random.normal(xkey, (2, 3, 16, 16), jnp.float32)   # NCHW input

    fwd = jax.jit(lambda inp: vqvae_forward(packed, inp, commitment_cost))
    loss, x_recon, perplexity = fwd(x)
    jax.block_until_ready((loss, x_recon, perplexity))

    assert x_recon.shape == (2, 3, 16, 16)
    assert loss.shape == () and perplexity.shape == ()
    assert bool(jnp.isfinite(loss)) and bool(jnp.isfinite(perplexity))
    print("KERNEL_OK")
</pallas_src>

<mosaic_0001>
module attributes {stable_mosaic.version = 11 : i64} {
  func.func @_mm_bias_kernel(%arg0: i32, %arg1: i32, %arg2: i32, %arg3: memref<128x128xbf16, #tpu.memory_space<vmem>>, %arg4: memref<128x128xbf16, #tpu.memory_space<vmem>>, %arg5: memref<1x128xf32, #tpu.memory_space<vmem>>, %arg6: memref<128x128xbf16, #tpu.memory_space<vmem>>, %arg7: memref<128x128xf32, #tpu.memory_space<vmem>>) attributes {dimension_semantics = [#tpu.dimension_semantics<parallel>, #tpu.dimension_semantics<parallel>, #tpu.dimension_semantics<arbitrary>], iteration_bounds = array<i64: 1, 1, 1>, scalar_prefetch = 0 : i64, scratch_operands = 1 : i64, tpu.core_type = #tpu.core_type<tc>, window_params = [{transform_indices = @transform_0, window_bounds = array<i64: 128, 128>}, {transform_indices = @transform_1, window_bounds = array<i64: 128, 128>}, {transform_indices = @transform_2, window_bounds = array<i64: 1, 128>}, {transform_indices = @transform_3, window_bounds = array<i64: 128, 128>}]} {
    %c0_i32 = arith.constant 0 : i32
    %0 = arith.cmpi eq, %arg2, %c0_i32 : i32
    %1 = arith.extui %0 : i1 to i32
    %c0_i32_0 = arith.constant 0 : i32
    %2 = arith.cmpi ne, %1, %c0_i32_0 : i32
    scf.if %2 {
      %cst_10 = arith.constant 0.000000e+00 : f32
      %12 = vector.broadcast %cst_10 : f32 to vector<128x128xf32>
      %c0_11 = arith.constant 0 : index
      %c0_12 = arith.constant 0 : index
      %13 = vector.load %arg7[%c0_11, %c0_12] : memref<128x128xf32, #tpu.memory_space<vmem>>, vector<128x128xf32>
      tpu.vector_store %arg7[%c0_11, %c0_12], %12 {strides = array<i32>} : memref<128x128xf32, #tpu.memory_space<vmem>>, vector<128x128xf32>,
    } else {
    }
    %c0 = arith.constant 0 : index
    %c0_1 = arith.constant 0 : index
    %3 = vector.load %arg7[%c0, %c0_1] : memref<128x128xf32, #tpu.memory_space<vmem>>, vector<128x128xf32>
    %c0_2 = arith.constant 0 : index
    %c0_3 = arith.constant 0 : index
    %4 = vector.load %arg3[%c0_2, %c0_3] : memref<128x128xbf16, #tpu.memory_space<vmem>>, vector<128x128xbf16>
    %c0_4 = arith.constant 0 : index
    %c0_5 = arith.constant 0 : index
    %5 = vector.load %arg4[%c0_4, %c0_5] : memref<128x128xbf16, #tpu.memory_space<vmem>>, vector<128x128xbf16>
    %cst = arith.constant dense<0.000000e+00> : vector<128x128xf32>
    %6 = tpu.matmul %4, %5, %cst {dimension_numbers = #tpu.dot_dimension_numbers<[1], [0], [0], [1], [0, 0, 1, 1], [], []>} : vector<128x128xbf16>, vector<128x128xbf16>, vector<128x128xf32> -> vector<128x128xf32>
    %7 = arith.addf %3, %6 : vector<128x128xf32>
    %c0_6 = arith.constant 0 : index
    %c0_7 = arith.constant 0 : index
    %8 = vector.load %arg7[%c0_6, %c0_7] : memref<128x128xf32, #tpu.memory_space<vmem>>, vector<128x128xf32>
    tpu.vector_store %arg7[%c0_6, %c0_7], %7 {strides = array<i32>} : memref<128x128xf32, #tpu.memory_space<vmem>>, vector<128x128xf32>,
    %c0_i32_8 = arith.constant 0 : i32
    %9 = arith.cmpi eq, %arg2, %c0_i32_8 : i32
    %10 = arith.extui %9 : i1 to i32
    %c0_i32_9 = arith.constant 0 : i32
    %11 = arith.cmpi ne, %10, %c0_i32_9 : i32
    scf.if %11 {
      %c0_10 = arith.constant 0 : index
      %c0_11 = arith.constant 0 : index
      %12 = vector.load %arg7[%c0_10, %c0_11] : memref<128x128xf32, #tpu.memory_space<vmem>>, vector<128x128xf32>
      %c0_12 = arith.constant 0 : index
      %c0_13 = arith.constant 0 : index
      %13 = vector.load %arg5[%c0_12, %c0_13] : memref<1x128xf32, #tpu.memory_space<vmem>>, vector<1x128xf32>
      %14 = vector.broadcast %13 : vector<1x128xf32> to vector<128x128xf32>
      %15 = arith.addf %12, %14 : vector<128x128xf32>
      %cst_14 = arith.constant 0.000000e+00 : f32
      %16 = vector.broadcast %cst_14 : f32 to vector<128x128xf32>
      %17 = arith.maximumf %15, %16 : vector<128x128xf32>
      %18 = arith.truncf %17 : vector<128x128xf32> to vector<128x128xbf16>
      %c0_15 = arith.constant 0 : index
      %c0_16 = arith.constant 0 : index
      %19 = vector.load %arg6[%c0_15, %c0_16] : memref<128x128xbf16, #tpu.memory_space<vmem>>, vector<128x128xbf16>
      tpu.vector_store %arg6[%c0_15, %c0_16], %18 {strides = array<i32>} : memref<128x128xbf16, #tpu.memory_space<vmem>>, vector<128x128xbf16>,
    } else {
    }
    return
  }
  func.func @transform_0(%arg0: i32, %arg1: i32, %arg2: i32) -> (i32, i32) {
    %c0_i32 = arith.constant 0 : i32
    return %arg0, %arg2 : i32, i32
  }
  func.func @transform_1(%arg0: i32, %arg1: i32, %arg2: i32) -> (i32, i32) {
    %c0_i32 = arith.constant 0 : i32
    return %arg2, %arg1 : i32, i32
  }
  func.func @transform_2(%arg0: i32, %arg1: i32, %arg2: i32) -> (i32, i32) {
    %c0_i32 = arith.constant 0 : i32
    %c0_i32_0 = arith.constant 0 : i32
    return %c0_i32, %arg1 : i32, i32
  }
  func.func @transform_3(%arg0: i32, %arg1: i32, %arg2: i32) -> (i32, i32) {
    %c0_i32 = arith.constant 0 : i32
    return %arg0, %arg1 : i32, i32
  }
}

module attributes {stable_mosaic.version = 11 : i64} {
  func.func @_mm_bias_kernel(%arg0: i32, %arg1: i32, %arg2: i32, %arg3: memref<32x256xbf16, #tpu.memory_space<vmem>>, %arg4: memref<256x128xbf16, #tpu.memory_space<vmem>>, %arg5: memref<1x128xf32, #tpu.memory_space<vmem>>, %arg6: memref<32x128xbf16, #tpu.memory_space<vmem>>, %arg7: memref<32x128xf32, #tpu.memory_space<vmem>>) attributes {dimension_semantics = [#tpu.dimension_semantics<parallel>, #tpu.dimension_semantics<parallel>, #tpu.dimension_semantics<arbitrary>], iteration_bounds = array<i64: 1, 1, 1>, scalar_prefetch = 0 : i64, scratch_operands = 1 : i64, tpu.core_type = #tpu.core_type<tc>, window_params = [{transform_indices = @transform_0, window_bounds = array<i64: 32, 256>}, {transform_indices = @transform_1, window_bounds = array<i64: 256, 128>}, {transform_indices = @transform_2, window_bounds = array<i64: 1, 128>}, {transform_indices = @transform_3, window_bounds = array<i64: 32, 128>}]} {
    %c0_i32 = arith.constant 0 : i32
    %0 = arith.cmpi eq, %arg2, %c0_i32 : i32
    %1 = arith.extui %0 : i1 to i32
    %c0_i32_0 = arith.constant 0 : i32
    %2 = arith.cmpi ne, %1, %c0_i32_0 : i32
    scf.if %2 {
      %cst_10 = arith.constant 0.000000e+00 : f32
      %12 = vector.broadcast %cst_10 : f32 to vector<32x128xf32>
      %c0_11 = arith.constant 0 : index
      %c0_12 = arith.constant 0 : index
      %13 = vector.load %arg7[%c0_11, %c0_12] : memref<32x128xf32, #tpu.memory_space<vmem>>, vector<32x128xf32>
      tpu.vector_store %arg7[%c0_11, %c0_12], %12 {strides = array<i32>} : memref<32x128xf32, #tpu.memory_space<vmem>>, vector<32x128xf32>,
    } else {
    }
    %c0 = arith.constant 0 : index
    %c0_1 = arith.constant 0 : index
    %3 = vector.load %arg7[%c0, %c0_1] : memref<32x128xf32, #tpu.memory_space<vmem>>, vector<32x128xf32>
    %c0_2 = arith.constant 0 : index
    %c0_3 = arith.constant 0 : index
    %4 = vector.load %arg3[%c0_2, %c0_3] : memref<32x256xbf16, #tpu.memory_space<vmem>>, vector<32x256xbf16>
    %c0_4 = arith.constant 0 : index
    %c0_5 = arith.constant 0 : index
    %5 = vector.load %arg4[%c0_4, %c0_5] : memref<256x128xbf16, #tpu.memory_space<vmem>>, vector<256x128xbf16>
    %cst = arith.constant dense<0.000000e+00> : vector<32x128xf32>
    %6 = tpu.matmul %4, %5, %cst {dimension_numbers = #tpu.dot_dimension_numbers<[1], [0], [0], [1], [0, 0, 1, 1], [], []>} : vector<32x256xbf16>, vector<256x128xbf16>, vector<32x128xf32> -> vector<32x128xf32>
    %7 = arith.addf %3, %6 : vector<32x128xf32>
    %c0_6 = arith.constant 0 : index
    %c0_7 = arith.constant 0 : index
    %8 = vector.load %arg7[%c0_6, %c0_7] : memref<32x128xf32, #tpu.memory_space<vmem>>, vector<32x128xf32>
    tpu.vector_store %arg7[%c0_6, %c0_7], %7 {strides = array<i32>} : memref<32x128xf32, #tpu.memory_space<vmem>>, vector<32x128xf32>,
    %c0_i32_8 = arith.constant 0 : i32
    %9 = arith.cmpi eq, %arg2, %c0_i32_8 : i32
    %10 = arith.extui %9 : i1 to i32
    %c0_i32_9 = arith.constant 0 : i32
    %11 = arith.cmpi ne, %10, %c0_i32_9 : i32
    scf.if %11 {
      %c0_10 = arith.constant 0 : index
      %c0_11 = arith.constant 0 : index
      %12 = vector.load %arg7[%c0_10, %c0_11] : memref<32x128xf32, #tpu.memory_space<vmem>>, vector<32x128xf32>
      %c0_12 = arith.constant 0 : index
      %c0_13 = arith.constant 0 : index
      %13 = vector.load %arg5[%c0_12, %c0_13] : memref<1x128xf32, #tpu.memory_space<vmem>>, vector<1x128xf32>
      %14 = vector.broadcast %13 : vector<1x128xf32> to vector<32x128xf32>
      %15 = arith.addf %12, %14 : vector<32x128xf32>
      %cst_14 = arith.constant 0.000000e+00 : f32
      %16 = vector.broadcast %cst_14 : f32 to vector<32x128xf32>
      %17 = arith.maximumf %15, %16 : vector<32x128xf32>
      %18 = arith.truncf %17 : vector<32x128xf32> to vector<32x128xbf16>
      %c0_15 = arith.constant 0 : index
      %c0_16 = arith.constant 0 : index
      %19 = vector.load %arg6[%c0_15, %c0_16] : memref<32x128xbf16, #tpu.memory_space<vmem>>, vector<32x128xbf16>
      tpu.vector_store %arg6[%c0_15, %c0_16], %18 {strides = array<i32>} : memref<32x128xbf16, #tpu.memory_space<vmem>>, vector<32x128xbf16>,
    } else {
    }
    return
  }
  func.func @transform_0(%arg0: i32, %arg1: i32, %arg2: i32) -> (i32, i32) {
    %c0_i32 = arith.constant 0 : i32
    return %arg0, %arg2 : i32, i32
  }
  func.func @transform_1(%arg0: i32, %arg1: i32, %arg2: i32) -> (i32, i32) {
    %c0_i32 = arith.constant 0 : i32
    return %arg2, %arg1 : i32, i32
  }
  func.func @transform_2(%arg0: i32, %arg1: i32, %arg2: i32) -> (i32, i32) {
    %c0_i32 = arith.constant 0 : i32
    %c0_i32_0 = arith.constant 0 : i32
    return %c0_i32, %arg1 : i32, i32
  }
  func.func @transform_3(%arg0: i32, %arg1: i32, %arg2: i32) -> (i32, i32) {
    %c0_i32 = arith.constant 0 : i32
    return %arg0, %arg1 : i32, i32
  }
}

module attributes {stable_mosaic.version = 11 : i64} {
  func.func @_mm_bias_kernel(%arg0: i32, %arg1: i32, %arg2: i32, %arg3: memref<32x384xbf16, #tpu.memory_space<vmem>>, %arg4: memref<384x128xbf16, #tpu.memory_space<vmem>>, %arg5: memref<1x128xf32, #tpu.memory_space<vmem>>, %arg6: memref<32x128xbf16, #tpu.memory_space<vmem>>, %arg7: memref<32x128xf32, #tpu.memory_space<vmem>>) attributes {dimension_semantics = [#tpu.dimension_semantics<parallel>, #tpu.dimension_semantics<parallel>, #tpu.dimension_semantics<arbitrary>], iteration_bounds = array<i64: 1, 1, 1>, scalar_prefetch = 0 : i64, scratch_operands = 1 : i64, tpu.core_type = #tpu.core_type<tc>, window_params = [{transform_indices = @transform_0, window_bounds = array<i64: 32, 384>}, {transform_indices = @transform_1, window_bounds = array<i64: 384, 128>}, {transform_indices = @transform_2, window_bounds = array<i64: 1, 128>}, {transform_indices = @transform_3, window_bounds = array<i64: 32, 128>}]} {
    %c0_i32 = arith.constant 0 : i32
    %0 = arith.cmpi eq, %arg2, %c0_i32 : i32
    %1 = arith.extui %0 : i1 to i32
    %c0_i32_0 = arith.constant 0 : i32
    %2 = arith.cmpi ne, %1, %c0_i32_0 : i32
    scf.if %2 {
      %cst_10 = arith.constant 0.000000e+00 : f32
      %12 = vector.broadcast %cst_10 : f32 to vector<32x128xf32>
      %c0_11 = arith.constant 0 : index
      %c0_12 = arith.constant 0 : index
      %13 = vector.load %arg7[%c0_11, %c0_12] : memref<32x128xf32, #tpu.memory_space<vmem>>, vector<32x128xf32>
      tpu.vector_store %arg7[%c0_11, %c0_12], %12 {strides = array<i32>} : memref<32x128xf32, #tpu.memory_space<vmem>>, vector<32x128xf32>,
    } else {
    }
    %c0 = arith.constant 0 : index
    %c0_1 = arith.constant 0 : index
    %3 = vector.load %arg7[%c0, %c0_1] : memref<32x128xf32, #tpu.memory_space<vmem>>, vector<32x128xf32>
    %c0_2 = arith.constant 0 : index
    %c0_3 = arith.constant 0 : index
    %4 = vector.load %arg3[%c0_2, %c0_3] : memref<32x384xbf16, #tpu.memory_space<vmem>>, vector<32x384xbf16>
    %c0_4 = arith.constant 0 : index
    %c0_5 = arith.constant 0 : index
    %5 = vector.load %arg4[%c0_4, %c0_5] : memref<384x128xbf16, #tpu.memory_space<vmem>>, vector<384x128xbf16>
    %cst = arith.constant dense<0.000000e+00> : vector<32x128xf32>
    %6 = tpu.matmul %4, %5, %cst {dimension_numbers = #tpu.dot_dimension_numbers<[1], [0], [0], [1], [0, 0, 1, 1], [], []>} : vector<32x384xbf16>, vector<384x128xbf16>, vector<32x128xf32> -> vector<32x128xf32>
    %7 = arith.addf %3, %6 : vector<32x128xf32>
    %c0_6 = arith.constant 0 : index
    %c0_7 = arith.constant 0 : index
    %8 = vector.load %arg7[%c0_6, %c0_7] : memref<32x128xf32, #tpu.memory_space<vmem>>, vector<32x128xf32>
    tpu.vector_store %arg7[%c0_6, %c0_7], %7 {strides = array<i32>} : memref<32x128xf32, #tpu.memory_space<vmem>>, vector<32x128xf32>,
    %c0_i32_8 = arith.constant 0 : i32
    %9 = arith.cmpi eq, %arg2, %c0_i32_8 : i32
    %10 = arith.extui %9 : i1 to i32
    %c0_i32_9 = arith.constant 0 : i32
    %11 = arith.cmpi ne, %10, %c0_i32_9 : i32
    scf.if %11 {
      %c0_10 = arith.constant 0 : index
      %c0_11 = arith.constant 0 : index
      %12 = vector.load %arg7[%c0_10, %c0_11] : memref<32x128xf32, #tpu.memory_space<vmem>>, vector<32x128xf32>
      %c0_12 = arith.constant 0 : index
      %c0_13 = arith.constant 0 : index
      %13 = vector.load %arg5[%c0_12, %c0_13] : memref<1x128xf32, #tpu.memory_space<vmem>>, vector<1x128xf32>
      %14 = vector.broadcast %13 : vector<1x128xf32> to vector<32x128xf32>
      %15 = arith.addf %12, %14 : vector<32x128xf32>
      %16 = arith.truncf %15 : vector<32x128xf32> to vector<32x128xbf16>
      %c0_14 = arith.constant 0 : index
      %c0_15 = arith.constant 0 : index
      %17 = vector.load %arg6[%c0_14, %c0_15] : memref<32x128xbf16, #tpu.memory_space<vmem>>, vector<32x128xbf16>
      tpu.vector_store %arg6[%c0_14, %c0_15], %16 {strides = array<i32>} : memref<32x128xbf16, #tpu.memory_space<vmem>>, vector<32x128xbf16>,
    } else {
    }
    return
  }
  func.func @transform_0(%arg0: i32, %arg1: i32, %arg2: i32) -> (i32, i32) {
    %c0_i32 = arith.constant 0 : i32
    return %arg0, %arg2 : i32, i32
  }
  func.func @transform_1(%arg0: i32, %arg1: i32, %arg2: i32) -> (i32, i32) {
    %c0_i32 = arith.constant 0 : i32
    return %arg2, %arg1 : i32, i32
  }
  func.func @transform_2(%arg0: i32, %arg1: i32, %arg2: i32) -> (i32, i32) {
    %c0_i32 = arith.constant 0 : i32
    %c0_i32_0 = arith.constant 0 : i32
    return %c0_i32, %arg1 : i32, i32
  }
  func.func @transform_3(%arg0: i32, %arg1: i32, %arg2: i32) -> (i32, i32) {
    %c0_i32 = arith.constant 0 : i32
    return %arg0, %arg1 : i32, i32
  }
}

module attributes {stable_mosaic.version = 11 : i64} {
  func.func @_resblock_kernel(%arg0: i32, %arg1: i32, %arg2: memref<32x384xbf16, #tpu.memory_space<vmem>>, %arg3: memref<384x128xbf16, #tpu.memory_space<vmem>>, %arg4: memref<128x128xbf16, #tpu.memory_space<vmem>>, %arg5: memref<32x128xbf16, #tpu.memory_space<vmem>>, %arg6: memref<32x128xbf16, #tpu.memory_space<vmem>>, %arg7: memref<32x128xf32, #tpu.memory_space<vmem>>) attributes {dimension_semantics = [#tpu.dimension_semantics<parallel>, #tpu.dimension_semantics<arbitrary>], iteration_bounds = array<i64: 1, 1>, scalar_prefetch = 0 : i64, scratch_operands = 1 : i64, tpu.core_type = #tpu.core_type<tc>, window_params = [{transform_indices = @transform_0, window_bounds = array<i64: 32, 384>}, {transform_indices = @transform_1, window_bounds = array<i64: 384, 128>}, {pipeline_mode = #tpu.pipeline_mode<synchronous>, transform_indices = @transform_2, window_bounds = array<i64: 128, 128>}, {transform_indices = @transform_3, window_bounds = array<i64: 32, 128>}, {transform_indices = @transform_4, window_bounds = array<i64: 32, 128>}]} {
    %c0_i32 = arith.constant 0 : i32
    %0 = arith.cmpi eq, %arg1, %c0_i32 : i32
    %1 = arith.extui %0 : i1 to i32
    %c0_i32_0 = arith.constant 0 : i32
    %2 = arith.cmpi ne, %1, %c0_i32_0 : i32
    scf.if %2 {
      %cst_11 = arith.constant 0.000000e+00 : f32
      %14 = vector.broadcast %cst_11 : f32 to vector<32x128xf32>
      %c0_12 = arith.constant 0 : index
      %c0_13 = arith.constant 0 : index
      %15 = vector.load %arg7[%c0_12, %c0_13] : memref<32x128xf32, #tpu.memory_space<vmem>>, vector<32x128xf32>
      tpu.vector_store %arg7[%c0_12, %c0_13], %14 {strides = array<i32>} : memref<32x128xf32, #tpu.memory_space<vmem>>, vector<32x128xf32>,
    } else {
    }
    %c0 = arith.constant 0 : index
    %c0_1 = arith.constant 0 : index
    %3 = vector.load %arg2[%c0, %c0_1] : memref<32x384xbf16, #tpu.memory_space<vmem>>, vector<32x384xbf16>
    %cst = arith.constant 0.000000e+00 : bf16
    %4 = vector.broadcast %cst : bf16 to vector<32x384xbf16>
    %5 = arith.maximumf %3, %4 : vector<32x384xbf16>
    %c0_2 = arith.constant 0 : index
    %c0_3 = arith.constant 0 : index
    %6 = vector.load %arg7[%c0_2, %c0_3] : memref<32x128xf32, #tpu.memory_space<vmem>>, vector<32x128xf32>
    %c0_4 = arith.constant 0 : index
    %c0_5 = arith.constant 0 : index
    %7 = vector.load %arg3[%c0_4, %c0_5] : memref<384x128xbf16, #tpu.memory_space<vmem>>, vector<384x128xbf16>
    %cst_6 = arith.constant dense<0.000000e+00> : vector<32x128xf32>
    %8 = tpu.matmul %5, %7, %cst_6 {dimension_numbers = #tpu.dot_dimension_numbers<[1], [0], [0], [1], [0, 0, 1, 1], [], []>} : vector<32x384xbf16>, vector<384x128xbf16>, vector<32x128xf32> -> vector<32x128xf32>
    %9 = arith.addf %6, %8 : vector<32x128xf32>
    %c0_7 = arith.constant 0 : index
    %c0_8 = arith.constant 0 : index
    %10 = vector.load %arg7[%c0_7, %c0_8] : memref<32x128xf32, #tpu.memory_space<vmem>>, vector<32x128xf32>
    tpu.vector_store %arg7[%c0_7, %c0_8], %9 {strides = array<i32>} : memref<32x128xf32, #tpu.memory_space<vmem>>, vector<32x128xf32>,
    %c0_i32_9 = arith.constant 0 : i32
    %11 = arith.cmpi eq, %arg1, %c0_i32_9 : i32
    %12 = arith.extui %11 : i1 to i32
    %c0_i32_10 = arith.constant 0 : i32
    %13 = arith.cmpi ne, %12, %c0_i32_10 : i32
    scf.if %13 {
      %c0_11 = arith.constant 0 : index
      %c0_12 = arith.constant 0 : index
      %14 = vector.load %arg7[%c0_11, %c0_12] : memref<32x128xf32, #tpu.memory_space<vmem>>, vector<32x128xf32>
      %cst_13 = arith.constant 0.000000e+00 : f32
      %15 = vector.broadcast %cst_13 : f32 to vector<32x128xf32>
      %16 = arith.maximumf %14, %15 : vector<32x128xf32>
      %17 = arith.truncf %16 : vector<32x128xf32> to vector<32x128xbf16>
      %c0_14 = arith.constant 0 : index
      %c0_15 = arith.constant 0 : index
      %18 = vector.load %arg4[%c0_14, %c0_15] : memref<128x128xbf16, #tpu.memory_space<vmem>>, vector<128x128xbf16>
      %cst_16 = arith.constant dense<0.000000e+00> : vector<32x128xf32>
      %19 = tpu.matmul %17, %18, %cst_16 {dimension_numbers = #tpu.dot_dimension_numbers<[1], [0], [0], [1], [0, 0, 1, 1], [], []>} : vector<32x128xbf16>, vector<128x128xbf16>, vector<32x128xf32> -> vector<32x128xf32>
      %c0_17 = arith.constant 0 : index
      %c0_18 = arith.constant 0 : index
      %20 = vector.load %arg5[%c0_17, %c0_18] : memref<32x128xbf16, #tpu.memory_space<vmem>>, vector<32x128xbf16>
      %21 = arith.extf %20 : vector<32x128xbf16> to vector<32x128xf32>
      %22 = arith.addf %19, %21 : vector<32x128xf32>
      %23 = arith.truncf %22 : vector<32x128xf32> to vector<32x128xbf16>
      %c0_19 = arith.constant 0 : index
      %c0_20 = arith.constant 0 : index
      %24 = vector.load %arg6[%c0_19, %c0_20] : memref<32x128xbf16, #tpu.memory_space<vmem>>, vector<32x128xbf16>
      tpu.vector_store %arg6[%c0_19, %c0_20], %23 {strides = array<i32>} : memref<32x128xbf16, #tpu.memory_space<vmem>>, vector<32x128xbf16>,
    } else {
    }
    return
  }
  func.func @transform_0(%arg0: i32, %arg1: i32) -> (i32, i32) {
    %c0_i32 = arith.constant 0 : i32
    return %arg0, %arg1 : i32, i32
  }
  func.func @transform_1(%arg0: i32, %arg1: i32) -> (i32, i32) {
    %c0_i32 = arith.constant 0 : i32
    %c0_i32_0 = arith.constant 0 : i32
    return %arg1, %c0_i32 : i32, i32
  }
  func.func @transform_2(%arg0: i32, %arg1: i32) -> (i32, i32) {
    %c0_i32 = arith.constant 0 : i32
    %c0_i32_0 = arith.constant 0 : i32
    %c0_i32_1 = arith.constant 0 : i32
    return %c0_i32, %c0_i32_0 : i32, i32
  }
  func.func @transform_3(%arg0: i32, %arg1: i32) -> (i32, i32) {
    %c0_i32 = arith.constant 0 : i32
    %c0_i32_0 = arith.constant 0 : i32
    return %arg0, %c0_i32 : i32, i32
  }
  func.func @transform_4(%arg0: i32, %arg1: i32) -> (i32, i32) {
    %c0_i32 = arith.constant 0 : i32
    %c0_i32_0 = arith.constant 0 : i32
    return %arg0, %c0_i32 : i32, i32
  }
}

module attributes {stable_mosaic.version = 11 : i64} {
  func.func @_resblock_kernel(%arg0: i32, %arg1: i32, %arg2: memref<32x384xbf16, #tpu.memory_space<vmem>>, %arg3: memref<384x128xbf16, #tpu.memory_space<vmem>>, %arg4: memref<128x128xbf16, #tpu.memory_space<vmem>>, %arg5: memref<32x128xbf16, #tpu.memory_space<vmem>>, %arg6: memref<128x128xbf16, #tpu.memory_space<vmem>>, %arg7: memref<1x128xf32, #tpu.memory_space<vmem>>, %arg8: memref<32x128xf32, #tpu.memory_space<vmem>>, %arg9: memref<32x128xf32, #tpu.memory_space<vmem>>) attributes {dimension_semantics = [#tpu.dimension_semantics<parallel>, #tpu.dimension_semantics<arbitrary>], iteration_bounds = array<i64: 1, 1>, scalar_prefetch = 0 : i64, scratch_operands = 1 : i64, tpu.core_type = #tpu.core_type<tc>, window_params = [{transform_indices = @transform_0, window_bounds = array<i64: 32, 384>}, {transform_indices = @transform_1, window_bounds = array<i64: 384, 128>}, {pipeline_mode = #tpu.pipeline_mode<synchronous>, transform_indices = @transform_2, window_bounds = array<i64: 128, 128>}, {transform_indices = @transform_3, window_bounds = array<i64: 32, 128>}, {pipeline_mode = #tpu.pipeline_mode<synchronous>, transform_indices = @transform_4, window_bounds = array<i64: 128, 128>}, {pipeline_mode = #tpu.pipeline_mode<synchronous>, transform_indices = @transform_5, window_bounds = array<i64: 1, 128>}, {transform_indices = @transform_6, window_bounds = array<i64: 32, 128>}]} {
    %c0_i32 = arith.constant 0 : i32
    %0 = arith.cmpi eq, %arg1, %c0_i32 : i32
    %1 = arith.extui %0 : i1 to i32
    %c0_i32_0 = arith.constant 0 : i32
    %2 = arith.cmpi ne, %1, %c0_i32_0 : i32
    scf.if %2 {
      %cst_11 = arith.constant 0.000000e+00 : f32
      %14 = vector.broadcast %cst_11 : f32 to vector<32x128xf32>
      %c0_12 = arith.constant 0 : index
      %c0_13 = arith.constant 0 : index
      %15 = vector.load %arg9[%c0_12, %c0_13] : memref<32x128xf32, #tpu.memory_space<vmem>>, vector<32x128xf32>
      tpu.vector_store %arg9[%c0_12, %c0_13], %14 {strides = array<i32>} : memref<32x128xf32, #tpu.memory_space<vmem>>, vector<32x128xf32>,
    } else {
    }
    %c0 = arith.constant 0 : index
    %c0_1 = arith.constant 0 : index
    %3 = vector.load %arg2[%c0, %c0_1] : memref<32x384xbf16, #tpu.memory_space<vmem>>, vector<32x384xbf16>
    %cst = arith.constant 0.000000e+00 : bf16
    %4 = vector.broadcast %cst : bf16 to vector<32x384xbf16>
    %5 = arith.maximumf %3, %4 : vector<32x384xbf16>
    %c0_2 = arith.constant 0 : index
    %c0_3 = arith.constant 0 : index
    %6 = vector.load %arg9[%c0_2, %c0_3] : memref<32x128xf32, #tpu.memory_space<vmem>>, vector<32x128xf32>
    %c0_4 = arith.constant 0 : index
    %c0_5 = arith.constant 0 : index
    %7 = vector.load %arg3[%c0_4, %c0_5] : memref<384x128xbf16, #tpu.memory_space<vmem>>, vector<384x128xbf16>
    %cst_6 = arith.constant dense<0.000000e+00> : vector<32x128xf32>
    %8 = tpu.matmul %5, %7, %cst_6 {dimension_numbers = #tpu.dot_dimension_numbers<[1], [0], [0], [1], [0, 0, 1, 1], [], []>} : vector<32x384xbf16>, vector<384x128xbf16>, vector<32x128xf32> -> vector<32x128xf32>
    %9 = arith.addf %6, %8 : vector<32x128xf32>
    %c0_7 = arith.constant 0 : index
    %c0_8 = arith.constant 0 : index
    %10 = vector.load %arg9[%c0_7, %c0_8] : memref<32x128xf32, #tpu.memory_space<vmem>>, vector<32x128xf32>
    tpu.vector_store %arg9[%c0_7, %c0_8], %9 {strides = array<i32>} : memref<32x128xf32, #tpu.memory_space<vmem>>, vector<32x128xf32>,
    %c0_i32_9 = arith.constant 0 : i32
    %11 = arith.cmpi eq, %arg1, %c0_i32_9 : i32
    %12 = arith.extui %11 : i1 to i32
    %c0_i32_10 = arith.constant 0 : i32
    %13 = arith.cmpi ne, %12, %c0_i32_10 : i32
    scf.if %13 {
      %c0_11 = arith.constant 0 : index
      %c0_12 = arith.constant 0 : index
      %14 = vector.load %arg9[%c0_11, %c0_12] : memref<32x128xf32, #tpu.memory_space<vmem>>, vector<32x128xf32>
      %cst_13 = arith.constant 0.000000e+00 : f32
      %15 = vector.broadcast %cst_13 : f32 to vector<32x128xf32>
      %16 = arith.maximumf %14, %15 : vector<32x128xf32>
      %17 = arith.truncf %16 : vector<32x128xf32> to vector<32x128xbf16>
      %c0_14 = arith.constant 0 : index
      %c0_15 = arith.constant 0 : index
      %18 = vector.load %arg4[%c0_14, %c0_15] : memref<128x128xbf16, #tpu.memory_space<vmem>>, vector<128x128xbf16>
      %cst_16 = arith.constant dense<0.000000e+00> : vector<32x128xf32>
      %19 = tpu.matmul %17, %18, %cst_16 {dimension_numbers = #tpu.dot_dimension_numbers<[1], [0], [0], [1], [0, 0, 1, 1], [], []>} : vector<32x128xbf16>, vector<128x128xbf16>, vector<32x128xf32> -> vector<32x128xf32>
      %c0_17 = arith.constant 0 : index
      %c0_18 = arith.constant 0 : index
      %20 = vector.load %arg5[%c0_17, %c0_18] : memref<32x128xbf16, #tpu.memory_space<vmem>>, vector<32x128xbf16>
      %21 = arith.extf %20 : vector<32x128xbf16> to vector<32x128xf32>
      %22 = arith.addf %19, %21 : vector<32x128xf32>
      %cst_19 = arith.constant 0.000000e+00 : f32
      %23 = vector.broadcast %cst_19 : f32 to vector<32x128xf32>
      %24 = arith.maximumf %22, %23 : vector<32x128xf32>
      %25 = arith.truncf %24 : vector<32x128xf32> to vector<32x128xbf16>
      %c0_20 = arith.constant 0 : index
      %c0_21 = arith.constant 0 : index
      %26 = vector.load %arg6[%c0_20, %c0_21] : memref<128x128xbf16, #tpu.memory_space<vmem>>, vector<128x128xbf16>
      %cst_22 = arith.constant dense<0.000000e+00> : vector<32x128xf32>
      %27 = tpu.matmul %25, %26, %cst_22 {dimension_numbers = #tpu.dot_dimension_numbers<[1], [0], [0], [1], [0, 0, 1, 1], [], []>} : vector<32x128xbf16>, vector<128x128xbf16>, vector<32x128xf32> -> vector<32x128xf32>
      %c0_23 = arith.constant 0 : index
      %c0_24 = arith.constant 0 : index
      %28 = vector.load %arg7[%c0_23, %c0_24] : memref<1x128xf32, #tpu.memory_space<vmem>>, vector<1x128xf32>
      %29 = vector.broadcast %28 : vector<1x128xf32> to vector<32x128xf32>
      %30 = arith.addf %27, %29 : vector<32x128xf32>
      %c0_25 = arith.constant 0 : index
      %c0_26 = arith.constant 0 : index
      %31 = vector.load %arg8[%c0_25, %c0_26] : memref<32x128xf32, #tpu.memory_space<vmem>>, vector<32x128xf32>
      tpu.vector_store %arg8[%c0_25, %c0_26], %30 {strides = array<i32>} : memref<32x128xf32, #tpu.memory_space<vmem>>, vector<32x128xf32>,
    } else {
    }
    return
  }
  func.func @transform_0(%arg0: i32, %arg1: i32) -> (i32, i32) {
    %c0_i32 = arith.constant 0 : i32
    return %arg0, %arg1 : i32, i32
  }
  func.func @transform_1(%arg0: i32, %arg1: i32) -> (i32, i32) {
    %c0_i32 = arith.constant 0 : i32
    %c0_i32_0 = arith.constant 0 : i32
    return %arg1, %c0_i32 : i32, i32
  }
  func.func @transform_2(%arg0: i32, %arg1: i32) -> (i32, i32) {
    %c0_i32 = arith.constant 0 : i32
    %c0_i32_0 = arith.constant 0 : i32
    %c0_i32_1 = arith.constant 0 : i32
    return %c0_i32, %c0_i32_0 : i32, i32
  }
  func.func @transform_3(%arg0: i32, %arg1: i32) -> (i32, i32) {
    %c0_i32 = arith.constant 0 : i32
    %c0_i32_0 = arith.constant 0 : i32
    return %arg0, %c0_i32 : i32, i32
  }
  func.func @transform_4(%arg0: i32, %arg1: i32) -> (i32, i32) {
    %c0_i32 = arith.constant 0 : i32
    %c0_i32_0 = arith.constant 0 : i32
    %c0_i32_1 = arith.constant 0 : i32
    return %c0_i32, %c0_i32_0 : i32, i32
  }
  func.func @transform_5(%arg0: i32, %arg1: i32) -> (i32, i32) {
    %c0_i32 = arith.constant 0 : i32
    %c0_i32_0 = arith.constant 0 : i32
    %c0_i32_1 = arith.constant 0 : i32
    return %c0_i32, %c0_i32_0 : i32, i32
  }
  func.func @transform_6(%arg0: i32, %arg1: i32) -> (i32, i32) {
    %c0_i32 = arith.constant 0 : i32
    %c0_i32_0 = arith.constant 0 : i32
    return %arg0, %c0_i32 : i32, i32
  }
}

module attributes {stable_mosaic.version = 11 : i64} {
  func.func @_vq_kernel(%arg0: i32, %arg1: memref<32x128xf32, #tpu.memory_space<vmem>>, %arg2: memref<128x128xf32, #tpu.memory_space<vmem>>, %arg3: memref<1x128xf32, #tpu.memory_space<vmem>>, %arg4: memref<32x128xf32, #tpu.memory_space<vmem>>, %arg5: memref<1x1x128xf32, #tpu.memory_space<vmem>>) attributes {dimension_semantics = [#tpu.dimension_semantics<parallel>], iteration_bounds = array<i64: 1>, scalar_prefetch = 0 : i64, scratch_operands = 0 : i64, tpu.core_type = #tpu.core_type<tc>, window_params = [{transform_indices = @transform_0, window_bounds = array<i64: 32, 128>}, {pipeline_mode = #tpu.pipeline_mode<synchronous>, transform_indices = @transform_1, window_bounds = array<i64: 128, 128>}, {pipeline_mode = #tpu.pipeline_mode<synchronous>, transform_indices = @transform_2, window_bounds = array<i64: 1, 128>}, {transform_indices = @transform_3, window_bounds = array<i64: 32, 128>}, {transform_indices = @transform_4, window_bounds = array<i64: 1, 1, 128>}]} {
    %c0 = arith.constant 0 : index
    %c0_0 = arith.constant 0 : index
    %0 = vector.load %arg1[%c0, %c0_0] : memref<32x128xf32, #tpu.memory_space<vmem>>, vector<32x128xf32>
    %c0_1 = arith.constant 0 : index
    %c0_2 = arith.constant 0 : index
    %1 = vector.load %arg2[%c0_1, %c0_2] : memref<128x128xf32, #tpu.memory_space<vmem>>, vector<128x128xf32>
    %2 = arith.mulf %0, %0 : vector<32x128xf32>
    %cst = arith.constant dense<0.000000e+00> : vector<32xf32>
    %3 = vector.multi_reduction <add>, %2, %cst [1] : vector<32x128xf32> to vector<32xf32>
    %4 = vector.shape_cast %3 : vector<32xf32> to vector<32x1xf32>
    %5 = arith.truncf %0 : vector<32x128xf32> to vector<32x128xbf16>
    %6 = arith.truncf %1 : vector<128x128xf32> to vector<128x128xbf16>
    %cst_3 = arith.constant dense<0.000000e+00> : vector<32x128xf32>
    %7 = tpu.matmul %5, %6, %cst_3 {dimension_numbers = #tpu.dot_dimension_numbers<[1], [1], [0], [0], [0, 0, 1, 0], [], []>} : vector<32x128xbf16>, vector<128x128xbf16>, vector<32x128xf32> -> vector<32x128xf32>
    %c0_4 = arith.constant 0 : index
    %c0_5 = arith.constant 0 : index
    %8 = vector.load %arg3[%c0_4, %c0_5] : memref<1x128xf32, #tpu.memory_space<vmem>>, vector<1x128xf32>
    %9 = vector.broadcast %4 : vector<32x1xf32> to vector<32x128xf32>
    %10 = vector.broadcast %8 : vector<1x128xf32> to vector<32x128xf32>
    %11 = arith.addf %9, %10 : vector<32x128xf32>
    %cst_6 = arith.constant 2.000000e+00 : f32
    %12 = vector.broadcast %cst_6 : f32 to vector<32x128xf32>
    %13 = arith.mulf %12, %7 : vector<32x128xf32>
    %14 = arith.subf %11, %13 : vector<32x128xf32>
    %15 = tpu.iota {dimensions = array<i32: 1>} : vector<32x128xi32>
    %c16_i32 = arith.constant 16 : i32
    %16 = vector.broadcast %c16_i32 : i32 to vector<32x128xi32>
    %17 = arith.cmpi slt, %15, %16 : vector<32x128xi32>
    %cst_7 = arith.constant 0x7F800000 : f32
    %18 = vector.broadcast %cst_7 : f32 to vector<32x128xf32>
    %19 = arith.select %17, %14, %18 : vector<32x128xi1>, vector<32x128xf32>
    %cst_8 = arith.constant dense<0x7F800000> : vector<32xf32>
    %20 = vector.multi_reduction <minimumf>, %19, %cst_8 [1] : vector<32x128xf32> to vector<32xf32>
    %21 = vector.shape_cast %20 : vector<32xf32> to vector<32x1xf32>
    %22 = vector.broadcast %21 : vector<32x1xf32> to vector<32x128xf32>
    %23 = arith.cmpf oeq, %19, %22 : vector<32x128xf32>
    %c128_i32 = arith.constant 128 : i32
    %24 = vector.broadcast %c128_i32 : i32 to vector<32x128xi32>
    %25 = arith.select %23, %15, %24 : vector<32x128xi1>, vector<32x128xi32>
    %cst_9 = arith.constant dense<2147483647> : vector<32xi32>
    %26 = vector.multi_reduction <minsi>, %25, %cst_9 [1] : vector<32x128xi32> to vector<32xi32>
    %27 = vector.shape_cast %26 : vector<32xi32> to vector<32x1xi32>
    %28 = vector.broadcast %27 : vector<32x1xi32> to vector<32x128xi32>
    %29 = arith.cmpi eq, %15, %28 : vector<32x128xi32>
    %30 = arith.extui %29 : vector<32x128xi1> to vector<32x128xi32>
    %31 = arith.sitofp %30 : vector<32x128xi32> to vector<32x128xf32>
    %cst_10 = arith.constant dense<0.000000e+00> : vector<32x128xf32>
    %32 = tpu.matmul %31, %1, %cst_10 {dimension_numbers = #tpu.dot_dimension_numbers<[1], [0], [0], [1], [0, 0, 1, 1], [], []>} : vector<32x128xf32>, vector<128x128xf32>, vector<32x128xf32> -> vector<32x128xf32>
    %c0_11 = arith.constant 0 : index
    %c0_12 = arith.constant 0 : index
    %33 = vector.load %arg4[%c0_11, %c0_12] : memref<32x128xf32, #tpu.memory_space<vmem>>, vector<32x128xf32>
    tpu.vector_store %arg4[%c0_11, %c0_12], %32 {strides = array<i32>} : memref<32x128xf32, #tpu.memory_space<vmem>>, vector<32x128xf32>,
    %34 = tpu.iota {dimensions = array<i32: 0>} : vector<32x1xi32>
    %c32_i32 = arith.constant 32 : i32
    %35 = arith.muli %arg0, %c32_i32 : i32
    %36 = vector.broadcast %35 : i32 to vector<32x1xi32>
    %37 = arith.addi %34, %36 : vector<32x1xi32>
    %c32_i32_13 = arith.constant 32 : i32
    %38 = vector.broadcast %c32_i32_13 : i32 to vector<32x1xi32>
    %39 = arith.cmpi slt, %37, %38 : vector<32x1xi32>
    %40 = arith.extui %39 : vector<32x1xi1> to vector<32x1xi32>
    %41 = arith.sitofp %40 : vector<32x1xi32> to vector<32x1xf32>
    %42 = vector.broadcast %41 : vector<32x1xf32> to vector<32x128xf32>
    %43 = arith.mulf %31, %42 : vector<32x128xf32>
    %cst_14 = arith.constant dense<0.000000e+00> : vector<128xf32>
    %44 = vector.multi_reduction <add>, %43, %cst_14 [0] : vector<32x128xf32> to vector<128xf32>
    %45 = vector.shape_cast %44 : vector<128xf32> to vector<1x128xf32>
    %46 = vector.shape_cast %45 : vector<1x128xf32> to vector<1x1x128xf32>
    %c0_15 = arith.constant 0 : index
    %c0_16 = arith.constant 0 : index
    %c0_17 = arith.constant 0 : index
    %47 = vector.load %arg5[%c0_15, %c0_16, %c0_17] : memref<1x1x128xf32, #tpu.memory_space<vmem>>, vector<1x1x128xf32>
    tpu.vector_store %arg5[%c0_15, %c0_16, %c0_17], %46 {strides = array<i32>} : memref<1x1x128xf32, #tpu.memory_space<vmem>>, vector<1x1x128xf32>,
    return
  }
  func.func @transform_0(%arg0: i32) -> (i32, i32) {
    %c0_i32 = arith.constant 0 : i32
    %c0_i32_0 = arith.constant 0 : i32
    return %arg0, %c0_i32 : i32, i32
  }
  func.func @transform_1(%arg0: i32) -> (i32, i32) {
    %c0_i32 = arith.constant 0 : i32
    %c0_i32_0 = arith.constant 0 : i32
    %c0_i32_1 = arith.constant 0 : i32
    return %c0_i32, %c0_i32_0 : i32, i32
  }
  func.func @transform_2(%arg0: i32) -> (i32, i32) {
    %c0_i32 = arith.constant 0 : i32
    %c0_i32_0 = arith.constant 0 : i32
    %c0_i32_1 = arith.constant 0 : i32
    return %c0_i32, %c0_i32_0 : i32, i32
  }
  func.func @transform_3(%arg0: i32) -> (i32, i32) {
    %c0_i32 = arith.constant 0 : i32
    %c0_i32_0 = arith.constant 0 : i32
    return %arg0, %c0_i32 : i32, i32
  }
  func.func @transform_4(%arg0: i32) -> (i32, i32, i32) {
    %c0_i32 = arith.constant 0 : i32
    %c0_i32_0 = arith.constant 0 : i32
    %c0_i32_1 = arith.constant 0 : i32
    return %arg0, %c0_i32, %c0_i32_0 : i32, i32, i32
  }
}

module attributes {stable_mosaic.version = 11 : i64} {
  func.func @_mm_bias_kernel(%arg0: i32, %arg1: i32, %arg2: i32, %arg3: memref<32x128xbf16, #tpu.memory_space<vmem>>, %arg4: memref<128x128xbf16, #tpu.memory_space<vmem>>, %arg5: memref<1x128xf32, #tpu.memory_space<vmem>>, %arg6: memref<32x128xbf16, #tpu.memory_space<vmem>>, %arg7: memref<32x128xf32, #tpu.memory_space<vmem>>) attributes {dimension_semantics = [#tpu.dimension_semantics<parallel>, #tpu.dimension_semantics<parallel>, #tpu.dimension_semantics<arbitrary>], iteration_bounds = array<i64: 1, 1, 1>, scalar_prefetch = 0 : i64, scratch_operands = 1 : i64, tpu.core_type = #tpu.core_type<tc>, window_params = [{transform_indices = @transform_0, window_bounds = array<i64: 32, 128>}, {transform_indices = @transform_1, window_bounds = array<i64: 128, 128>}, {transform_indices = @transform_2, window_bounds = array<i64: 1, 128>}, {transform_indices = @transform_3, window_bounds = array<i64: 32, 128>}]} {
    %c0_i32 = arith.constant 0 : i32
    %0 = arith.cmpi eq, %arg2, %c0_i32 : i32
    %1 = arith.extui %0 : i1 to i32
    %c0_i32_0 = arith.constant 0 : i32
    %2 = arith.cmpi ne, %1, %c0_i32_0 : i32
    scf.if %2 {
      %cst_10 = arith.constant 0.000000e+00 : f32
      %12 = vector.broadcast %cst_10 : f32 to vector<32x128xf32>
      %c0_11 = arith.constant 0 : index
      %c0_12 = arith.constant 0 : index
      %13 = vector.load %arg7[%c0_11, %c0_12] : memref<32x128xf32, #tpu.memory_space<vmem>>, vector<32x128xf32>
      tpu.vector_store %arg7[%c0_11, %c0_12], %12 {strides = array<i32>} : memref<32x128xf32, #tpu.memory_space<vmem>>, vector<32x128xf32>,
    } else {
    }
    %c0 = arith.constant 0 : index
    %c0_1 = arith.constant 0 : index
    %3 = vector.load %arg7[%c0, %c0_1] : memref<32x128xf32, #tpu.memory_space<vmem>>, vector<32x128xf32>
    %c0_2 = arith.constant 0 : index
    %c0_3 = arith.constant 0 : index
    %4 = vector.load %arg3[%c0_2, %c0_3] : memref<32x128xbf16, #tpu.memory_space<vmem>>, vector<32x128xbf16>
    %c0_4 = arith.constant 0 : index
    %c0_5 = arith.constant 0 : index
    %5 = vector.load %arg4[%c0_4, %c0_5] : memref<128x128xbf16, #tpu.memory_space<vmem>>, vector<128x128xbf16>
    %cst = arith.constant dense<0.000000e+00> : vector<32x128xf32>
    %6 = tpu.matmul %4, %5, %cst {dimension_numbers = #tpu.dot_dimension_numbers<[1], [0], [0], [1], [0, 0, 1, 1], [], []>} : vector<32x128xbf16>, vector<128x128xbf16>, vector<32x128xf32> -> vector<32x128xf32>
    %7 = arith.addf %3, %6 : vector<32x128xf32>
    %c0_6 = arith.constant 0 : index
    %c0_7 = arith.constant 0 : index
    %8 = vector.load %arg7[%c0_6, %c0_7] : memref<32x128xf32, #tpu.memory_space<vmem>>, vector<32x128xf32>
    tpu.vector_store %arg7[%c0_6, %c0_7], %7 {strides = array<i32>} : memref<32x128xf32, #tpu.memory_space<vmem>>, vector<32x128xf32>,
    %c0_i32_8 = arith.constant 0 : i32
    %9 = arith.cmpi eq, %arg2, %c0_i32_8 : i32
    %10 = arith.extui %9 : i1 to i32
    %c0_i32_9 = arith.constant 0 : i32
    %11 = arith.cmpi ne, %10, %c0_i32_9 : i32
    scf.if %11 {
      %c0_10 = arith.constant 0 : index
      %c0_11 = arith.constant 0 : index
      %12 = vector.load %arg7[%c0_10, %c0_11] : memref<32x128xf32, #tpu.memory_space<vmem>>, vector<32x128xf32>
      %c0_12 = arith.constant 0 : index
      %c0_13 = arith.constant 0 : index
      %13 = vector.load %arg5[%c0_12, %c0_13] : memref<1x128xf32, #tpu.memory_space<vmem>>, vector<1x128xf32>
      %14 = vector.broadcast %13 : vector<1x128xf32> to vector<32x128xf32>
      %15 = arith.addf %12, %14 : vector<32x128xf32>
      %16 = arith.truncf %15 : vector<32x128xf32> to vector<32x128xbf16>
      %c0_14 = arith.constant 0 : index
      %c0_15 = arith.constant 0 : index
      %17 = vector.load %arg6[%c0_14, %c0_15] : memref<32x128xbf16, #tpu.memory_space<vmem>>, vector<32x128xbf16>
      tpu.vector_store %arg6[%c0_14, %c0_15], %16 {strides = array<i32>} : memref<32x128xbf16, #tpu.memory_space<vmem>>, vector<32x128xbf16>,
    } else {
    }
    return
  }
  func.func @transform_0(%arg0: i32, %arg1: i32, %arg2: i32) -> (i32, i32) {
    %c0_i32 = arith.constant 0 : i32
    return %arg0, %arg2 : i32, i32
  }
  func.func @transform_1(%arg0: i32, %arg1: i32, %arg2: i32) -> (i32, i32) {
    %c0_i32 = arith.constant 0 : i32
    return %arg2, %arg1 : i32, i32
  }
  func.func @transform_2(%arg0: i32, %arg1: i32, %arg2: i32) -> (i32, i32) {
    %c0_i32 = arith.constant 0 : i32
    %c0_i32_0 = arith.constant 0 : i32
    return %c0_i32, %arg1 : i32, i32
  }
  func.func @transform_3(%arg0: i32, %arg1: i32, %arg2: i32) -> (i32, i32) {
    %c0_i32 = arith.constant 0 : i32
    return %arg0, %arg1 : i32, i32
  }
}

module attributes {stable_mosaic.version = 11 : i64} {
  func.func @_resblock_kernel(%arg0: i32, %arg1: i32, %arg2: memref<32x384xbf16, #tpu.memory_space<vmem>>, %arg3: memref<384x128xbf16, #tpu.memory_space<vmem>>, %arg4: memref<128x128xbf16, #tpu.memory_space<vmem>>, %arg5: memref<32x128xbf16, #tpu.memory_space<vmem>>, %arg6: memref<32x128xbf16, #tpu.memory_space<vmem>>, %arg7: memref<32x128xf32, #tpu.memory_space<vmem>>) attributes {dimension_semantics = [#tpu.dimension_semantics<parallel>, #tpu.dimension_semantics<arbitrary>], iteration_bounds = array<i64: 1, 1>, scalar_prefetch = 0 : i64, scratch_operands = 1 : i64, tpu.core_type = #tpu.core_type<tc>, window_params = [{transform_indices = @transform_0, window_bounds = array<i64: 32, 384>}, {transform_indices = @transform_1, window_bounds = array<i64: 384, 128>}, {pipeline_mode = #tpu.pipeline_mode<synchronous>, transform_indices = @transform_2, window_bounds = array<i64: 128, 128>}, {transform_indices = @transform_3, window_bounds = array<i64: 32, 128>}, {transform_indices = @transform_4, window_bounds = array<i64: 32, 128>}]} {
    %c0_i32 = arith.constant 0 : i32
    %0 = arith.cmpi eq, %arg1, %c0_i32 : i32
    %1 = arith.extui %0 : i1 to i32
    %c0_i32_0 = arith.constant 0 : i32
    %2 = arith.cmpi ne, %1, %c0_i32_0 : i32
    scf.if %2 {
      %cst_11 = arith.constant 0.000000e+00 : f32
      %14 = vector.broadcast %cst_11 : f32 to vector<32x128xf32>
      %c0_12 = arith.constant 0 : index
      %c0_13 = arith.constant 0 : index
      %15 = vector.load %arg7[%c0_12, %c0_13] : memref<32x128xf32, #tpu.memory_space<vmem>>, vector<32x128xf32>
      tpu.vector_store %arg7[%c0_12, %c0_13], %14 {strides = array<i32>} : memref<32x128xf32, #tpu.memory_space<vmem>>, vector<32x128xf32>,
    } else {
    }
    %c0 = arith.constant 0 : index
    %c0_1 = arith.constant 0 : index
    %3 = vector.load %arg2[%c0, %c0_1] : memref<32x384xbf16, #tpu.memory_space<vmem>>, vector<32x384xbf16>
    %cst = arith.constant 0.000000e+00 : bf16
    %4 = vector.broadcast %cst : bf16 to vector<32x384xbf16>
    %5 = arith.maximumf %3, %4 : vector<32x384xbf16>
    %c0_2 = arith.constant 0 : index
    %c0_3 = arith.constant 0 : index
    %6 = vector.load %arg7[%c0_2, %c0_3] : memref<32x128xf32, #tpu.memory_space<vmem>>, vector<32x128xf32>
    %c0_4 = arith.constant 0 : index
    %c0_5 = arith.constant 0 : index
    %7 = vector.load %arg3[%c0_4, %c0_5] : memref<384x128xbf16, #tpu.memory_space<vmem>>, vector<384x128xbf16>
    %cst_6 = arith.constant dense<0.000000e+00> : vector<32x128xf32>
    %8 = tpu.matmul %5, %7, %cst_6 {dimension_numbers = #tpu.dot_dimension_numbers<[1], [0], [0], [1], [0, 0, 1, 1], [], []>} : vector<32x384xbf16>, vector<384x128xbf16>, vector<32x128xf32> -> vector<32x128xf32>
    %9 = arith.addf %6, %8 : vector<32x128xf32>
    %c0_7 = arith.constant 0 : index
    %c0_8 = arith.constant 0 : index
    %10 = vector.load %arg7[%c0_7, %c0_8] : memref<32x128xf32, #tpu.memory_space<vmem>>, vector<32x128xf32>
    tpu.vector_store %arg7[%c0_7, %c0_8], %9 {strides = array<i32>} : memref<32x128xf32, #tpu.memory_space<vmem>>, vector<32x128xf32>,
    %c0_i32_9 = arith.constant 0 : i32
    %11 = arith.cmpi eq, %arg1, %c0_i32_9 : i32
    %12 = arith.extui %11 : i1 to i32
    %c0_i32_10 = arith.constant 0 : i32
    %13 = arith.cmpi ne, %12, %c0_i32_10 : i32
    scf.if %13 {
      %c0_11 = arith.constant 0 : index
      %c0_12 = arith.constant 0 : index
      %14 = vector.load %arg7[%c0_11, %c0_12] : memref<32x128xf32, #tpu.memory_space<vmem>>, vector<32x128xf32>
      %cst_13 = arith.constant 0.000000e+00 : f32
      %15 = vector.broadcast %cst_13 : f32 to vector<32x128xf32>
      %16 = arith.maximumf %14, %15 : vector<32x128xf32>
      %17 = arith.truncf %16 : vector<32x128xf32> to vector<32x128xbf16>
      %c0_14 = arith.constant 0 : index
      %c0_15 = arith.constant 0 : index
      %18 = vector.load %arg4[%c0_14, %c0_15] : memref<128x128xbf16, #tpu.memory_space<vmem>>, vector<128x128xbf16>
      %cst_16 = arith.constant dense<0.000000e+00> : vector<32x128xf32>
      %19 = tpu.matmul %17, %18, %cst_16 {dimension_numbers = #tpu.dot_dimension_numbers<[1], [0], [0], [1], [0, 0, 1, 1], [], []>} : vector<32x128xbf16>, vector<128x128xbf16>, vector<32x128xf32> -> vector<32x128xf32>
      %c0_17 = arith.constant 0 : index
      %c0_18 = arith.constant 0 : index
      %20 = vector.load %arg5[%c0_17, %c0_18] : memref<32x128xbf16, #tpu.memory_space<vmem>>, vector<32x128xbf16>
      %21 = arith.extf %20 : vector<32x128xbf16> to vector<32x128xf32>
      %22 = arith.addf %19, %21 : vector<32x128xf32>
      %cst_19 = arith.constant 0.000000e+00 : f32
      %23 = vector.broadcast %cst_19 : f32 to vector<32x128xf32>
      %24 = arith.maximumf %22, %23 : vector<32x128xf32>
      %25 = arith.truncf %24 : vector<32x128xf32> to vector<32x128xbf16>
      %c0_20 = arith.constant 0 : index
      %c0_21 = arith.constant 0 : index
      %26 = vector.load %arg6[%c0_20, %c0_21] : memref<32x128xbf16, #tpu.memory_space<vmem>>, vector<32x128xbf16>
      tpu.vector_store %arg6[%c0_20, %c0_21], %25 {strides = array<i32>} : memref<32x128xbf16, #tpu.memory_space<vmem>>, vector<32x128xbf16>,
    } else {
    }
    return
  }
  func.func @transform_0(%arg0: i32, %arg1: i32) -> (i32, i32) {
    %c0_i32 = arith.constant 0 : i32
    return %arg0, %arg1 : i32, i32
  }
  func.func @transform_1(%arg0: i32, %arg1: i32) -> (i32, i32) {
    %c0_i32 = arith.constant 0 : i32
    %c0_i32_0 = arith.constant 0 : i32
    return %arg1, %c0_i32 : i32, i32
  }
  func.func @transform_2(%arg0: i32, %arg1: i32) -> (i32, i32) {
    %c0_i32 = arith.constant 0 : i32
    %c0_i32_0 = arith.constant 0 : i32
    %c0_i32_1 = arith.constant 0 : i32
    return %c0_i32, %c0_i32_0 : i32, i32
  }
  func.func @transform_3(%arg0: i32, %arg1: i32) -> (i32, i32) {
    %c0_i32 = arith.constant 0 : i32
    %c0_i32_0 = arith.constant 0 : i32
    return %arg0, %c0_i32 : i32, i32
  }
  func.func @transform_4(%arg0: i32, %arg1: i32) -> (i32, i32) {
    %c0_i32 = arith.constant 0 : i32
    %c0_i32_0 = arith.constant 0 : i32
    return %arg0, %c0_i32 : i32, i32
  }
}

module attributes {stable_mosaic.version = 11 : i64} {
  func.func @_mm_bias_kernel(%arg0: i32, %arg1: i32, %arg2: i32, %arg3: memref<32x384xbf16, #tpu.memory_space<vmem>>, %arg4: memref<384x128xbf16, #tpu.memory_space<vmem>>, %arg5: memref<1x128xf32, #tpu.memory_space<vmem>>, %arg6: memref<32x128xbf16, #tpu.memory_space<vmem>>, %arg7: memref<32x128xf32, #tpu.memory_space<vmem>>) attributes {dimension_semantics = [#tpu.dimension_semantics<parallel>, #tpu.dimension_semantics<parallel>, #tpu.dimension_semantics<arbitrary>], iteration_bounds = array<i64: 1, 1, 1>, scalar_prefetch = 0 : i64, scratch_operands = 1 : i64, tpu.core_type = #tpu.core_type<tc>, window_params = [{transform_indices = @transform_0, window_bounds = array<i64: 32, 384>}, {transform_indices = @transform_1, window_bounds = array<i64: 384, 128>}, {transform_indices = @transform_2, window_bounds = array<i64: 1, 128>}, {transform_indices = @transform_3, window_bounds = array<i64: 32, 128>}]} {
    %c0_i32 = arith.constant 0 : i32
    %0 = arith.cmpi eq, %arg2, %c0_i32 : i32
    %1 = arith.extui %0 : i1 to i32
    %c0_i32_0 = arith.constant 0 : i32
    %2 = arith.cmpi ne, %1, %c0_i32_0 : i32
    scf.if %2 {
      %cst_10 = arith.constant 0.000000e+00 : f32
      %12 = vector.broadcast %cst_10 : f32 to vector<32x128xf32>
      %c0_11 = arith.constant 0 : index
      %c0_12 = arith.constant 0 : index
      %13 = vector.load %arg7[%c0_11, %c0_12] : memref<32x128xf32, #tpu.memory_space<vmem>>, vector<32x128xf32>
      tpu.vector_store %arg7[%c0_11, %c0_12], %12 {strides = array<i32>} : memref<32x128xf32, #tpu.memory_space<vmem>>, vector<32x128xf32>,
    } else {
    }
    %c0 = arith.constant 0 : index
    %c0_1 = arith.constant 0 : index
    %3 = vector.load %arg7[%c0, %c0_1] : memref<32x128xf32, #tpu.memory_space<vmem>>, vector<32x128xf32>
    %c0_2 = arith.constant 0 : index
    %c0_3 = arith.constant 0 : index
    %4 = vector.load %arg3[%c0_2, %c0_3] : memref<32x384xbf16, #tpu.memory_space<vmem>>, vector<32x384xbf16>
    %c0_4 = arith.constant 0 : index
    %c0_5 = arith.constant 0 : index
    %5 = vector.load %arg4[%c0_4, %c0_5] : memref<384x128xbf16, #tpu.memory_space<vmem>>, vector<384x128xbf16>
    %cst = arith.constant dense<0.000000e+00> : vector<32x128xf32>
    %6 = tpu.matmul %4, %5, %cst {dimension_numbers = #tpu.dot_dimension_numbers<[1], [0], [0], [1], [0, 0, 1, 1], [], []>} : vector<32x384xbf16>, vector<384x128xbf16>, vector<32x128xf32> -> vector<32x128xf32>
    %7 = arith.addf %3, %6 : vector<32x128xf32>
    %c0_6 = arith.constant 0 : index
    %c0_7 = arith.constant 0 : index
    %8 = vector.load %arg7[%c0_6, %c0_7] : memref<32x128xf32, #tpu.memory_space<vmem>>, vector<32x128xf32>
    tpu.vector_store %arg7[%c0_6, %c0_7], %7 {strides = array<i32>} : memref<32x128xf32, #tpu.memory_space<vmem>>, vector<32x128xf32>,
    %c0_i32_8 = arith.constant 0 : i32
    %9 = arith.cmpi eq, %arg2, %c0_i32_8 : i32
    %10 = arith.extui %9 : i1 to i32
    %c0_i32_9 = arith.constant 0 : i32
    %11 = arith.cmpi ne, %10, %c0_i32_9 : i32
    scf.if %11 {
      %c0_10 = arith.constant 0 : index
      %c0_11 = arith.constant 0 : index
      %12 = vector.load %arg7[%c0_10, %c0_11] : memref<32x128xf32, #tpu.memory_space<vmem>>, vector<32x128xf32>
      %c0_12 = arith.constant 0 : index
      %c0_13 = arith.constant 0 : index
      %13 = vector.load %arg5[%c0_12, %c0_13] : memref<1x128xf32, #tpu.memory_space<vmem>>, vector<1x128xf32>
      %14 = vector.broadcast %13 : vector<1x128xf32> to vector<32x128xf32>
      %15 = arith.addf %12, %14 : vector<32x128xf32>
      %cst_14 = arith.constant 0.000000e+00 : f32
      %16 = vector.broadcast %cst_14 : f32 to vector<32x128xf32>
      %17 = arith.maximumf %15, %16 : vector<32x128xf32>
      %18 = arith.truncf %17 : vector<32x128xf32> to vector<32x128xbf16>
      %c0_15 = arith.constant 0 : index
      %c0_16 = arith.constant 0 : index
      %19 = vector.load %arg6[%c0_15, %c0_16] : memref<32x128xbf16, #tpu.memory_space<vmem>>, vector<32x128xbf16>
      tpu.vector_store %arg6[%c0_15, %c0_16], %18 {strides = array<i32>} : memref<32x128xbf16, #tpu.memory_space<vmem>>, vector<32x128xbf16>,
    } else {
    }
    return
  }
  func.func @transform_0(%arg0: i32, %arg1: i32, %arg2: i32) -> (i32, i32) {
    %c0_i32 = arith.constant 0 : i32
    return %arg0, %arg2 : i32, i32
  }
  func.func @transform_1(%arg0: i32, %arg1: i32, %arg2: i32) -> (i32, i32) {
    %c0_i32 = arith.constant 0 : i32
    return %arg2, %arg1 : i32, i32
  }
  func.func @transform_2(%arg0: i32, %arg1: i32, %arg2: i32) -> (i32, i32) {
    %c0_i32 = arith.constant 0 : i32
    %c0_i32_0 = arith.constant 0 : i32
    return %c0_i32, %arg1 : i32, i32
  }
  func.func @transform_3(%arg0: i32, %arg1: i32, %arg2: i32) -> (i32, i32) {
    %c0_i32 = arith.constant 0 : i32
    return %arg0, %arg1 : i32, i32
  }
}

module attributes {stable_mosaic.version = 11 : i64} {
  func.func @_mm_bias_kernel(%arg0: i32, %arg1: i32, %arg2: i32, %arg3: memref<128x256xbf16, #tpu.memory_space<vmem>>, %arg4: memref<256x128xbf16, #tpu.memory_space<vmem>>, %arg5: memref<1x128xf32, #tpu.memory_space<vmem>>, %arg6: memref<128x128xf32, #tpu.memory_space<vmem>>, %arg7: memref<128x128xf32, #tpu.memory_space<vmem>>) attributes {dimension_semantics = [#tpu.dimension_semantics<parallel>, #tpu.dimension_semantics<parallel>, #tpu.dimension_semantics<arbitrary>], iteration_bounds = array<i64: 1, 1, 1>, scalar_prefetch = 0 : i64, scratch_operands = 1 : i64, tpu.core_type = #tpu.core_type<tc>, window_params = [{transform_indices = @transform_0, window_bounds = array<i64: 128, 256>}, {transform_indices = @transform_1, window_bounds = array<i64: 256, 128>}, {transform_indices = @transform_2, window_bounds = array<i64: 1, 128>}, {transform_indices = @transform_3, window_bounds = array<i64: 128, 128>}]} {
    %c0_i32 = arith.constant 0 : i32
    %0 = arith.cmpi eq, %arg2, %c0_i32 : i32
    %1 = arith.extui %0 : i1 to i32
    %c0_i32_0 = arith.constant 0 : i32
    %2 = arith.cmpi ne, %1, %c0_i32_0 : i32
    scf.if %2 {
      %cst_10 = arith.constant 0.000000e+00 : f32
      %12 = vector.broadcast %cst_10 : f32 to vector<128x128xf32>
      %c0_11 = arith.constant 0 : index
      %c0_12 = arith.constant 0 : index
      %13 = vector.load %arg7[%c0_11, %c0_12] : memref<128x128xf32, #tpu.memory_space<vmem>>, vector<128x128xf32>
      tpu.vector_store %arg7[%c0_11, %c0_12], %12 {strides = array<i32>} : memref<128x128xf32, #tpu.memory_space<vmem>>, vector<128x128xf32>,
    } else {
    }
    %c0 = arith.constant 0 : index
    %c0_1 = arith.constant 0 : index
    %3 = vector.load %arg7[%c0, %c0_1] : memref<128x128xf32, #tpu.memory_space<vmem>>, vector<128x128xf32>
    %c0_2 = arith.constant 0 : index
    %c0_3 = arith.constant 0 : index
    %4 = vector.load %arg3[%c0_2, %c0_3] : memref<128x256xbf16, #tpu.memory_space<vmem>>, vector<128x256xbf16>
    %c0_4 = arith.constant 0 : index
    %c0_5 = arith.constant 0 : index
    %5 = vector.load %arg4[%c0_4, %c0_5] : memref<256x128xbf16, #tpu.memory_space<vmem>>, vector<256x128xbf16>
    %cst = arith.constant dense<0.000000e+00> : vector<128x128xf32>
    %6 = tpu.matmul %4, %5, %cst {dimension_numbers = #tpu.dot_dimension_numbers<[1], [0], [0], [1], [0, 0, 1, 1], [], []>} : vector<128x256xbf16>, vector<256x128xbf16>, vector<128x128xf32> -> vector<128x128xf32>
    %7 = arith.addf %3, %6 : vector<128x128xf32>
    %c0_6 = arith.constant 0 : index
    %c0_7 = arith.constant 0 : index
    %8 = vector.load %arg7[%c0_6, %c0_7] : memref<128x128xf32, #tpu.memory_space<vmem>>, vector<128x128xf32>
    tpu.vector_store %arg7[%c0_6, %c0_7], %7 {strides = array<i32>} : memref<128x128xf32, #tpu.memory_space<vmem>>, vector<128x128xf32>,
    %c0_i32_8 = arith.constant 0 : i32
    %9 = arith.cmpi eq, %arg2, %c0_i32_8 : i32
    %10 = arith.extui %9 : i1 to i32
    %c0_i32_9 = arith.constant 0 : i32
    %11 = arith.cmpi ne, %10, %c0_i32_9 : i32
    scf.if %11 {
      %c0_10 = arith.constant 0 : index
      %c0_11 = arith.constant 0 : index
      %12 = vector.load %arg7[%c0_10, %c0_11] : memref<128x128xf32, #tpu.memory_space<vmem>>, vector<128x128xf32>
      %c0_12 = arith.constant 0 : index
      %c0_13 = arith.constant 0 : index
      %13 = vector.load %arg5[%c0_12, %c0_13] : memref<1x128xf32, #tpu.memory_space<vmem>>, vector<1x128xf32>
      %14 = vector.broadcast %13 : vector<1x128xf32> to vector<128x128xf32>
      %15 = arith.addf %12, %14 : vector<128x128xf32>
      %c0_14 = arith.constant 0 : index
      %c0_15 = arith.constant 0 : index
      %16 = vector.load %arg6[%c0_14, %c0_15] : memref<128x128xf32, #tpu.memory_space<vmem>>, vector<128x128xf32>
      tpu.vector_store %arg6[%c0_14, %c0_15], %15 {strides = array<i32>} : memref<128x128xf32, #tpu.memory_space<vmem>>, vector<128x128xf32>,
    } else {
    }
    return
  }
  func.func @transform_0(%arg0: i32, %arg1: i32, %arg2: i32) -> (i32, i32) {
    %c0_i32 = arith.constant 0 : i32
    return %arg0, %arg2 : i32, i32
  }
  func.func @transform_1(%arg0: i32, %arg1: i32, %arg2: i32) -> (i32, i32) {
    %c0_i32 = arith.constant 0 : i32
    return %arg2, %arg1 : i32, i32
  }
  func.func @transform_2(%arg0: i32, %arg1: i32, %arg2: i32) -> (i32, i32) {
    %c0_i32 = arith.constant 0 : i32
    %c0_i32_0 = arith.constant 0 : i32
    return %c0_i32, %arg1 : i32, i32
  }
  func.func @transform_3(%arg0: i32, %arg1: i32, %arg2: i32) -> (i32, i32) {
    %c0_i32 = arith.constant 0 : i32
    return %arg0, %arg1 : i32, i32
  }
}

</mosaic_0001>

<bundles_post_ra>
// kernel: _lambda_.11
= control target key start
LH: loop header
LB: loop body
LE: loop exit
PB: predicated region body
PF: predicated region fallthrough
CT: control target
= control target key end

     0   :  { %s721_s1 = inlined_call_operand.vmem [shape: bf16[128,128], index: 1, kind: input, shape index: {}]   ;;  %s722_s0 = inlined_call_operand.vmem [shape: bf16[128,128], index: 0, kind: input, shape index: {}]   ;;  %s723_s2 = inlined_call_operand.vmem [shape: f32[1,128], index: 2, kind: input, shape index: {}]   ;;  %s724_s3 = inlined_call_operand.vmem [shape: bf16[128,128], index: 3, kind: output, shape index: {}]  }
   0x1   :  { %v610_v0 = vld [vmem:[%s721_s1 + $0x38] sm:$0xff]   ;;  %v611_v1 = vld [vmem:[%s721_s1 + $0x30] sm:$0xff]   ;;  %v612_v2 = vld [vmem:[%s721_s1 + $0x28] sm:$0xff]  }
   0x2   :  { %562 = vmatprep.subr.bf16.mxu0 %v610_v0  ;;  %594 = vmatprep.subr.bf16.mxu1 %v610_v0  ;;  %v613_v3 = vld [vmem:[%s721_s1 + $0x20] sm:$0xff]   ;;  %v614_v6 = vld [vmem:[%s721_s1 + $0x18] sm:$0xff]   ;;  %v615_v7 = vld [vmem:[%s721_s1 + $0x10] sm:$0xff]  }
   0x3   :  { %563 = vmatpush3.bf16.msra.mxu0 %v610_v0  ;;  %602 = vmatpush3.bf16.msra.mxu1 %v610_v0  ;;  %v618_v4 = vld [vmem:[%s722_s0] sm:$0xff]   ;;  %v616_v8 = vld [vmem:[%s721_s1 + $0x8] sm:$0xff]   ;;  %v622_v12 = vld [vmem:[%s722_s0 + $0x10] sm:$0xff]  }
   0x4   :  { %564 = vmatprep.subr.bf16.mxu0 %v611_v1  ;;  %595 = vmatprep.subr.bf16.mxu1 %v611_v1  ;;  %v619_v5 = vld [vmem:[%s722_s0 + $0x20] sm:$0xff]   ;;  %v620_v10 = vld [vmem:[%s722_s0 + $0x8] sm:$0xff]   ;;  %v623_v13 = vld [vmem:[%s722_s0 + $0x30] sm:$0xff]  }
   0x5   :  { %578 = vmatprep.mubr.bf16.mxu0 %v618_v4  ;;  %586 = vmatprep.mubr.bf16.mxu1 %v619_v5  ;;  %v617_v9 = vld [vmem:[%s721_s1] sm:$0xff]   ;;  %v621_v11 = vld [vmem:[%s722_s0 + $0x28] sm:$0xff]   ;;  %v624_v14 = vld [vmem:[%s722_s0 + $0x18] sm:$0xff]  }
   0x6   :  { %v625_v15 = vld [vmem:[%s722_s0 + $0x38] sm:$0xff]   ;;  %v466_v16 = vld [vmem:[%s723_s2] ss:$0 sm:$0xff] }
   0x7   :  { %565 = vmatpush3.bf16.msra.mxu0 %v611_v1  ;;  %603 = vmatpush3.bf16.msra.mxu1 %v611_v1 }
   0x8   :  { %566 = vmatprep.subr.bf16.mxu0 %v612_v2  ;;  %596 = vmatprep.subr.bf16.mxu1 %v612_v2 }
   0xb   :  { %567 = vmatpush3.bf16.msra.mxu0 %v612_v2  ;;  %604 = vmatpush3.bf16.msra.mxu1 %v612_v2 }
   0xc   :  { %568 = vmatprep.subr.bf16.mxu0 %v613_v3  ;;  %597 = vmatprep.subr.bf16.mxu1 %v613_v3 }
   0xf   :  { %569 = vmatpush3.bf16.msra.mxu0 %v613_v3  ;;  %605 = vmatpush3.bf16.msra.mxu1 %v613_v3 }
  0x10   :  { %570 = vmatprep.subr.bf16.mxu0 %v614_v6  ;;  %598 = vmatprep.subr.bf16.mxu1 %v614_v6 }
  0x13   :  { %571 = vmatpush3.bf16.msra.mxu0 %v614_v6  ;;  %606 = vmatpush3.bf16.msra.mxu1 %v614_v6 }
  0x14   :  { %572 = vmatprep.subr.bf16.mxu0 %v615_v7  ;;  %599 = vmatprep.subr.bf16.mxu1 %v615_v7 }
  0x17   :  { %573 = vmatpush3.bf16.msra.mxu0 %v615_v7  ;;  %607 = vmatpush3.bf16.msra.mxu1 %v615_v7 }
  0x18   :  { %574 = vmatprep.subr.bf16.mxu0 %v616_v8  ;;  %600 = vmatprep.subr.bf16.mxu1 %v616_v8 }
  0x1b   :  { %575 = vmatpush3.bf16.msra.mxu0 %v616_v8  ;;  %608 = vmatpush3.bf16.msra.mxu1 %v616_v8 }
  0x1c   :  { %576 = vmatprep.subr.bf16.mxu0 %v617_v9  ;;  %601 = vmatprep.subr.bf16.mxu1 %v617_v9 }
  0x1f   :  { %577 = vmatpush3.bf16.msra.mxu0 %v617_v9  ;;  %609 = vmatpush3.bf16.msra.mxu1 %v617_v9 }
  0x22   :  { %579 = vmatmul.mubr.bf16.vlgmr.msra.gmra.mxu0 %v620_v10  ;;  %587 = vmatmul.mubr.bf16.vlgmr.msra.gmra.mxu1 %v621_v11 }
  0x23   :  { %582 = vmatprep.mubr.bf16.mxu0 %v622_v12  ;;  %590 = vmatprep.mubr.bf16.mxu1 %v623_v13 }
  0x2a   :  { %583 = vmatmul.mubr.bf16.gmra.mxu0 %v624_v14  ;;  %591 = vmatmul.mubr.bf16.gmra.mxu1 %v625_v15 }
  0xe2   :  { %v580_v17 = vpop.f32.mrf.mxu0  ;;  %v588_v18 = vpop.f32.mrf.mxu1 }
  0xe3   :  { %v336_v19 = vadd.f32 %v580_v17, %v466_v16  ;;  %v344_v20 = vadd.f32 %v588_v18, %v466_v16 }
  0xe4   :  { %v213_v21 = vpop.f32.mrf.mxu0  ;;  %v245_v22 = vpop.f32.mrf.mxu1 }
  0xe5   :  { %v334_v23 = vadd.f32 %v466_v16, %v213_v21  ;;  %v342_v24 = vadd.f32 %v466_v16, %v245_v22  ;;  %v352_v29 = vmax.f32 %v336_v19, 0.0  ;;  %v360_v30 = vmax.f32 %v344_v20, 0.0 }
  0xe6   :  { %v581_v25 = vpop.f32.mrf.mxu0  ;;  %v589_v26 = vpop.f32.mrf.mxu1 }
  0xe7   :  { %v337_v27 = vadd.f32 %v581_v25, %v466_v16  ;;  %v345_v28 = vadd.f32 %v589_v26, %v466_v16  ;;  %v350_v37 = vmax.f32 %v334_v23, 0.0  ;;  %v358_v38 = vmax.f32 %v342_v24, 0.0 }
  0xe8   :  { %v216_v31 = vpop.f32.mrf.mxu0  ;;  %v248_v32 = vpop.f32.mrf.mxu1 }
  0xe9   :  { %v353_v33 = vmax.f32 %v337_v27, 0.0  ;;  %v361_v34 = vmax.f32 %v345_v28, 0.0  ;;  %v335_v35 = vadd.f32 %v466_v16, %v216_v31  ;;  %v343_v36 = vadd.f32 %v466_v16, %v248_v32 }
  0xea   :  { %v584_v39 = vpop.f32.mrf.mxu0  ;;  %v592_v40 = vpop.f32.mrf.mxu1 }
  0xeb   :  { %v507_v41 = vpack.c.bf16 %v353_v33, %v352_v29  ;;  %v527_v42 = vpack.c.bf16 %v361_v34, %v360_v30  ;;  %v351_v43 = vmax.f32 %v335_v35, 0.0  ;;  %v359_v44 = vmax.f32 %v343_v36, 0.0 }
  0xec   :  { %v340_v45 = vadd.f32 %v584_v39, %v466_v16  ;;  %v348_v46 = vadd.f32 %v592_v40, %v466_v16  ;;  %v229_v47 = vpop.f32.mrf.mxu0  ;;  %v261_v48 = vpop.f32.mrf.mxu1 }
  0xed   :  { %539 = vst [vmem:[%s724_s3 + $0x8] sm:$0xff] %v507_v41   ;;  %543 = vst [vmem:[%s724_s3 + $0x28] sm:$0xff] %v527_v42   ;;  %v502_v49 = vpack.c.bf16 %v351_v43, %v350_v37  ;;  %v522_v50 = vpack.c.bf16 %v359_v44, %v358_v38  ;;  %v338_v51 = vadd.f32 %v466_v16, %v229_v47 }
  0xee   :  { %v346_v52 = vadd.f32 %v466_v16, %v261_v48  ;;  %v585_v53 = vpop.f32.mrf.mxu0  ;;  %v593_v54 = vpop.f32.mrf.mxu1  ;;  %v356_v57 = vmax.f32 %v340_v45, 0.0  ;;  %v364_v58 = vmax.f32 %v348_v46, 0.0 }
  0xef   :  { %503 = vst [vmem:[%s724_s3] sm:$0xff] %v502_v49   ;;  %542 = vst [vmem:[%s724_s3 + $0x20] sm:$0xff] %v522_v50   ;;  %v341_v55 = vadd.f32 %v585_v53, %v466_v16  ;;  %v349_v56 = vadd.f32 %v593_v54, %v466_v16  ;;  %v354_v1 = vmax.f32 %v338_v51, 0.0 }
  0xf0   :  { %v232_v59 = vpop.f32.mrf.mxu0  ;;  %v264_v60 = vpop.f32.mrf.mxu1  ;;  %v362_v2 = vmax.f32 %v346_v52, 0.0 }
  0xf1   :  { %v357_v61 = vmax.f32 %v341_v55, 0.0  ;;  %v365_v62 = vmax.f32 %v349_v56, 0.0  ;;  %v339_v63 = vadd.f32 %v466_v16, %v232_v59  ;;  %v347_v0 = vadd.f32 %v466_v16, %v264_v60 }
  0xf3   :  { %v517_v3 = vpack.c.bf16 %v357_v61, %v356_v57  ;;  %v537_v4 = vpack.c.bf16 %v365_v62, %v364_v58  ;;  %v355_v5 = vmax.f32 %v339_v63, 0.0  ;;  %v363_v6 = vmax.f32 %v347_v0, 0.0 }
  0xf5   :  { %541 = vst [vmem:[%s724_s3 + $0x18] sm:$0xff] %v517_v3   ;;  %545 = vst [vmem:[%s724_s3 + $0x38] sm:$0xff] %v537_v4   ;;  %v512_v7 = vpack.c.bf16 %v355_v5, %v354_v1  ;;  %v532_v8 = vpack.c.bf16 %v363_v6, %v362_v2 }
  0xf7   :  { %540 = vst [vmem:[%s724_s3 + $0x10] sm:$0xff] %v512_v7   ;;  %544 = vst [vmem:[%s724_s3 + $0x30] sm:$0xff] %v532_v8  }

// kernel: _lambda_.12
= control target key start
LH: loop header
LB: loop body
LE: loop exit
PB: predicated region body
PF: predicated region fallthrough
CT: control target
= control target key end

     0   :  { %s477_s1 = inlined_call_operand.vmem [shape: bf16[256,128], index: 1, kind: input, shape index: {}]   ;;  %s478_s0 = inlined_call_operand.vmem [shape: bf16[32,256], index: 0, kind: input, shape index: {}]   ;;  %s479_s2 = inlined_call_operand.vmem [shape: f32[1,128], index: 2, kind: input, shape index: {}]   ;;  %s480_s3 = inlined_call_operand.vmem [shape: bf16[32,128], index: 3, kind: output, shape index: {}]  }
   0x1   :  { %v366_v0 = vld [vmem:[%s477_s1 + $0x78] sm:$0xff]   ;;  %v368_v2 = vld [vmem:[%s477_s1 + $0x70] sm:$0xff]   ;;  %v370_v4 = vld [vmem:[%s477_s1 + $0x68] sm:$0xff]  }
   0x2   :  { %v367_v1 = vld [vmem:[%s477_s1 + $0x38] sm:$0xff]   ;;  %322 = vmatprep.subr.bf16.mxu0 %v366_v0  ;;  %350 = vmatprep.subr.bf16.mxu1 %v366_v0  ;;  %v369_v3 = vld [vmem:[%s477_s1 + $0x30] sm:$0xff]   ;;  %v371_v5 = vld [vmem:[%s477_s1 + $0x28] sm:$0xff]  }
   0x3   :  { %323 = vmatpush3.bf16.msra.mxu0 %v367_v1  ;;  %358 = vmatpush3.bf16.msra.mxu1 %v367_v1  ;;  %v372_v6 = vld [vmem:[%s477_s1 + $0x60] sm:$0xff]   ;;  %v374_v8 = vld [vmem:[%s477_s1 + $0x58] sm:$0xff]   ;;  %v376_v10 = vld [vmem:[%s477_s1 + $0x50] sm:$0xff]  }
   0x4   :  { %324 = vmatprep.subr.bf16.mxu0 %v368_v2  ;;  %351 = vmatprep.subr.bf16.mxu1 %v368_v2  ;;  %v373_v7 = vld [vmem:[%s477_s1 + $0x20] sm:$0xff]   ;;  %v375_v9 = vld [vmem:[%s477_s1 + $0x18] sm:$0xff]   ;;  %v377_v13 = vld [vmem:[%s477_s1 + $0x10] sm:$0xff]  }
   0x5   :  { %v384_v11 = vld [vmem:[%s478_s0 + $0x4] ss:$8 sps:$4 sm:$0xff]   ;;  %v387_v12 = vld [vmem:[%s478_s0 + $0x14] ss:$8 sps:$4 sm:$0xff]   ;;  %v382_v18 = vld [vmem:[%s478_s0] ss:$8 sps:$4 sm:$0xff]  }
   0x6   :  { %v378_v14 = vld [vmem:[%s477_s1 + $0x48] sm:$0xff]   ;;  %211 = vmatprep.mubr.bf16.mxu0 %v384_v11  ;;  %219 = vmatprep.mubr.bf16.mxu1 %v387_v12  ;;  %v380_v16 = vld [vmem:[%s477_s1 + $0x40] sm:$0xff]   ;;  %v385_v19 = vld [vmem:[%s478_s0 + $0x10] ss:$8 sps:$4 sm:$0xff]  }
   0x7   :  { %325 = vmatpush3.bf16.msra.mxu0 %v369_v3  ;;  %359 = vmatpush3.bf16.msra.mxu1 %v369_v3  ;;  %v379_v15 = vld [vmem:[%s477_s1 + $0x8] sm:$0xff]   ;;  %v381_v17 = vld [vmem:[%s477_s1] sm:$0xff]  }
   0x8   :  { %326 = vmatprep.subr.bf16.mxu0 %v370_v4  ;;  %352 = vmatprep.subr.bf16.mxu1 %v370_v4  ;;  %v302_v26 = vld [vmem:[%s479_s2] ss:$0 sm:$0xff] }
   0xb   :  { %327 = vmatpush3.bf16.msra.mxu0 %v371_v5  ;;  %360 = vmatpush3.bf16.msra.mxu1 %v371_v5 }
   0xc   :  { %328 = vmatprep.subr.bf16.mxu0 %v372_v6  ;;  %353 = vmatprep.subr.bf16.mxu1 %v372_v6 }
   0xf   :  { %329 = vmatpush3.bf16.msra.mxu0 %v373_v7  ;;  %361 = vmatpush3.bf16.msra.mxu1 %v373_v7 }
  0x10   :  { %330 = vmatprep.subr.bf16.mxu0 %v374_v8  ;;  %354 = vmatprep.subr.bf16.mxu1 %v374_v8 }
  0x13   :  { %331 = vmatpush3.bf16.msra.mxu0 %v375_v9  ;;  %362 = vmatpush3.bf16.msra.mxu1 %v375_v9 }
  0x14   :  { %332 = vmatprep.subr.bf16.mxu0 %v376_v10  ;;  %355 = vmatprep.subr.bf16.mxu1 %v376_v10 }
  0x17   :  { %333 = vmatpush3.bf16.msra.mxu0 %v377_v13  ;;  %363 = vmatpush3.bf16.msra.mxu1 %v377_v13 }
  0x18   :  { %334 = vmatprep.subr.bf16.mxu0 %v378_v14  ;;  %356 = vmatprep.subr.bf16.mxu1 %v378_v14 }
  0x1b   :  { %335 = vmatpush3.bf16.msra.mxu0 %v379_v15  ;;  %364 = vmatpush3.bf16.msra.mxu1 %v379_v15 }
  0x1c   :  { %336 = vmatprep.subr.bf16.mxu0 %v380_v16  ;;  %357 = vmatprep.subr.bf16.mxu1 %v380_v16 }
  0x1f   :  { %337 = vmatpush3.bf16.msra.mxu0 %v381_v17  ;;  %365 = vmatpush3.bf16.msra.mxu1 %v381_v17 }
  0x22   :  { %212 = vmatmul.mubr.bf16.vlgmr.msra.gmra.mxu0 %v382_v18  ;;  %220 = vmatmul.mubr.bf16.vlgmr.msra.gmra.mxu1 %v385_v19 }
  0xe2   :  { %v338_v20 = vpop.f32.mrf.mxu0  ;;  %v344_v21 = vpop.f32.mrf.mxu1 }
  0xe4   :  { %v339_v22 = vpop.f32.mrf.mxu0  ;;  %v345_v23 = vpop.f32.mrf.mxu1 }
  0xe5   :  { %v340_v24 = vadd.f32 %v339_v22, %v338_v20  ;;  %v346_v25 = vadd.f32 %v345_v23, %v344_v21 }
  0xe6   :  { %v341_v27 = vpop.f32.mrf.mxu0  ;;  %v347_v28 = vpop.f32.mrf.mxu1 }
  0xe7   :  { %v250_v31 = vadd.f32 %v340_v24, %v302_v26  ;;  %v252_v32 = vadd.f32 %v346_v25, %v302_v26 }
  0xe8   :  { %v342_v29 = vpop.f32.mrf.mxu0  ;;  %v348_v30 = vpop.f32.mrf.mxu1 }
  0xe9   :  { %v343_v33 = vadd.f32 %v342_v29, %v341_v27  ;;  %v349_v34 = vadd.f32 %v348_v30, %v347_v28  ;;  %v254_v37 = vmax.f32 %v250_v31, 0.0  ;;  %v256_v38 = vmax.f32 %v252_v32, 0.0 }
  0xeb   :  { %v251_v35 = vadd.f32 %v343_v33, %v302_v26  ;;  %v253_v36 = vadd.f32 %v349_v34, %v302_v26 }
  0xed   :  { %v255_v39 = vmax.f32 %v251_v35, 0.0  ;;  %v257_v40 = vmax.f32 %v253_v36, 0.0 }
  0xef   :  { %v314_v41 = vpack.c.bf16 %v255_v39, %v254_v37  ;;  %v319_v42 = vpack.c.bf16 %v257_v40, %v256_v38 }
  0xf1   :  { %315 = vst [vmem:[%s480_s3] sm:$0xff] %v314_v41   ;;  %321 = vst [vmem:[%s480_s3 + $0x8] sm:$0xff] %v319_v42  }

// kernel: _lambda_.13
= control target key start
LH: loop header
LB: loop body
LE: loop exit
PB: predicated region body
PF: predicated region fallthrough
CT: control target
= control target key end

     0   :  { %s666_s1 = inlined_call_operand.vmem [shape: bf16[384,128], index: 1, kind: input, shape index: {}]   ;;  %s667_s0 = inlined_call_operand.vmem [shape: bf16[32,384], index: 0, kind: input, shape index: {}]   ;;  %s668_s2 = inlined_call_operand.vmem [shape: f32[1,128], index: 2, kind: input, shape index: {}]   ;;  %s669_s3 = inlined_call_operand.vmem [shape: bf16[32,128], index: 3, kind: output, shape index: {}]  }
   0x1   :  { %v515_v0 = vld [vmem:[%s666_s1 + $0x78] sm:$0xff]   ;;  %v518_v3 = vld [vmem:[%s666_s1 + $0x70] sm:$0xff]   ;;  %v521_v6 = vld [vmem:[%s666_s1 + $0x68] sm:$0xff]  }
   0x2   :  { %v516_v1 = vld [vmem:[%s666_s1 + $0x38] sm:$0xff]   ;;  %457 = vmatprep.subr.bf16.mxu0 %v515_v0  ;;  %v519_v4 = vld [vmem:[%s666_s1 + $0x30] sm:$0xff]   ;;  %v522_v7 = vld [vmem:[%s666_s1 + $0x28] sm:$0xff]  }
   0x3   :  { %v517_v2 = vld [vmem:[%s666_s1 + $0xb8] sm:$0xff]   ;;  %458 = vmatpush3.bf16.msra.mxu0 %v516_v1  ;;  %v520_v5 = vld [vmem:[%s666_s1 + $0xb0] sm:$0xff]   ;;  %v523_v8 = vld [vmem:[%s666_s1 + $0xa8] sm:$0xff]  }
   0x4   :  { %495 = vmatprep.subr.bf16.mxu1 %v517_v2  ;;  %459 = vmatprep.subr.bf16.mxu0 %v518_v3  ;;  %v524_v9 = vld [vmem:[%s666_s1 + $0x60] sm:$0xff]   ;;  %v527_v12 = vld [vmem:[%s666_s1 + $0x58] sm:$0xff]   ;;  %v530_v15 = vld [vmem:[%s666_s1 + $0x50] sm:$0xff]  }
   0x5   :  { %496 = vmatpush3.bf16.msra.mxu1 %v517_v2  ;;  %v525_v10 = vld [vmem:[%s666_s1 + $0x20] sm:$0xff]   ;;  %v529_v13 = vld [vmem:[%s666_s1 + $0x98] sm:$0xff]   ;;  %v532_v16 = vld [vmem:[%s666_s1 + $0x90] sm:$0xff]  }
   0x6   :  { %497 = vmatprep.subr.bf16.mxu1 %v520_v5  ;;  %v526_v11 = vld [vmem:[%s666_s1 + $0xa0] sm:$0xff]   ;;  %v528_v14 = vld [vmem:[%s666_s1 + $0x18] sm:$0xff]   ;;  %v531_v17 = vld [vmem:[%s666_s1 + $0x10] sm:$0xff]  }
   0x7   :  { %460 = vmatpush3.bf16.msra.mxu0 %v519_v4  ;;  %v533_v18 = vld [vmem:[%s666_s1 + $0x48] sm:$0xff]   ;;  %v536_v21 = vld [vmem:[%s666_s1 + $0x40] sm:$0xff]  }
   0x8   :  { %461 = vmatprep.subr.bf16.mxu0 %v521_v6  ;;  %v534_v19 = vld [vmem:[%s666_s1 + $0x8] sm:$0xff]   ;;  %v538_v22 = vld [vmem:[%s666_s1 + $0x80] sm:$0xff]  }
   0x9   :  { %498 = vmatpush3.bf16.msra.mxu1 %v520_v5  ;;  %v535_v20 = vld [vmem:[%s666_s1 + $0x88] sm:$0xff]   ;;  %v541_v23 = vld [vmem:[%s667_s0 + $0x4] ss:$12 sps:$4 sm:$0xff]   ;;  %v437_v40 = vld [vmem:[%s668_s2] ss:$0 sm:$0xff] }
   0xa   :  { %499 = vmatprep.subr.bf16.mxu1 %v523_v8  ;;  %v542_v24 = vld [vmem:[%s667_s0 + $0x8] ss:$12 sps:$4 sm:$0xff]   ;;  %v537_v25 = vld [vmem:[%s666_s1] sm:$0xff]   ;;  %291 = vmatprep.mubr.bf16.mxu0 %v541_v23 }
   0xb   :  { %462 = vmatpush3.bf16.msra.mxu0 %v522_v7  ;;  %511 = vmatprep.mubr.bf16.mxu1 %v542_v24  ;;  %v539_v26 = vld [vmem:[%s667_s0] ss:$12 sps:$4 sm:$0xff]   ;;  %v544_v27 = vld [vmem:[%s667_s0 + $0x1c] ss:$12 sps:$4 sm:$0xff]   ;;  %v546_v29 = vld [vmem:[%s667_s0 + $0x18] ss:$12 sps:$4 sm:$0xff]  }
   0xc   :  { %463 = vmatprep.subr.bf16.mxu0 %v524_v9  ;;  %v543_v28 = vld [vmem:[%s667_s0 + $0x20] ss:$12 sps:$4 sm:$0xff]  }
   0xd   :  { %500 = vmatpush3.bf16.msra.mxu1 %v523_v8 }
   0xe   :  { %501 = vmatprep.subr.bf16.mxu1 %v526_v11 }
   0xf   :  { %464 = vmatpush3.bf16.msra.mxu0 %v525_v10 }
  0x10   :  { %465 = vmatprep.subr.bf16.mxu0 %v527_v12 }
  0x11   :  { %502 = vmatpush3.bf16.msra.mxu1 %v526_v11 }
  0x12   :  { %503 = vmatprep.subr.bf16.mxu1 %v529_v13 }
  0x13   :  { %466 = vmatpush3.bf16.msra.mxu0 %v528_v14 }
  0x14   :  { %467 = vmatprep.subr.bf16.mxu0 %v530_v15 }
  0x15   :  { %504 = vmatpush3.bf16.msra.mxu1 %v529_v13 }
  0x16   :  { %505 = vmatprep.subr.bf16.mxu1 %v532_v16 }
  0x17   :  { %468 = vmatpush3.bf16.msra.mxu0 %v531_v17 }
  0x18   :  { %469 = vmatprep.subr.bf16.mxu0 %v533_v18 }
  0x19   :  { %506 = vmatpush3.bf16.msra.mxu1 %v532_v16 }
  0x1a   :  { %507 = vmatprep.subr.bf16.mxu1 %v535_v20 }
  0x1b   :  { %470 = vmatpush3.bf16.msra.mxu0 %v534_v19 }
  0x1c   :  { %471 = vmatprep.subr.bf16.mxu0 %v536_v21 }
  0x1d   :  { %508 = vmatpush3.bf16.msra.mxu1 %v535_v20 }
  0x1e   :  { %509 = vmatprep.subr.bf16.mxu1 %v538_v22 }
  0x1f   :  { %472 = vmatpush3.bf16.msra.mxu0 %v537_v25 }
  0x21   :  { %510 = vmatpush3.bf16.msra.mxu1 %v538_v22 }
  0x22   :  { %292 = vmatmul.mubr.bf16.vlgmr.msra.gmra.mxu0 %v539_v26 }
  0x23   :  { %299 = vmatprep.mubr.bf16.mxu0 %v544_v27 }
  0x24   :  { %512 = vmatmul.mubr.bf16.vlgmr.msra.gmra.mxu1 %v543_v28 }
  0x2a   :  { %300 = vmatmul.mubr.bf16.gmra.mxu0 %v546_v29 }
  0xe2   :  { %v473_v30 = vpop.f32.mrf.mxu0 }
  0xe4   :  { %v474_v31 = vpop.f32.mrf.mxu0  ;;  %v513_v32 = vpop.f32.mrf.mxu1 }
  0xe5   :  { %v475_v33 = vadd.f32 %v474_v31, %v473_v30 }
  0xe6   :  { %v476_v34 = vpop.f32.mrf.mxu0  ;;  %v342_v35 = vpop.f32.mrf.mxu1 }
  0xe7   :  { %v343_v38 = vadd.f32 %v475_v33, %v342_v35 }
  0xe8   :  { %v477_v36 = vpop.f32.mrf.mxu0  ;;  %v514_v37 = vpop.f32.mrf.mxu1 }
  0xe9   :  { %v478_v39 = vadd.f32 %v477_v36, %v476_v34  ;;  %v379_v45 = vadd.f32 %v437_v40, %v343_v38 }
  0xea   :  { %v479_v41 = vpop.f32.mrf.mxu0  ;;  %v345_v42 = vpop.f32.mrf.mxu1 }
  0xeb   :  { %v346_v43 = vadd.f32 %v478_v39, %v345_v42 }
  0xec   :  { %v480_v44 = vpop.f32.mrf.mxu0 }
  0xed   :  { %v380_v46 = vadd.f32 %v437_v40, %v346_v43  ;;  %v481_v47 = vadd.f32 %v480_v44, %v479_v41 }
  0xee   :  { %v482_v48 = vpop.f32.mrf.mxu0 }
  0xef   :  { %v449_v49 = vpack.c.bf16 %v380_v46, %v379_v45  ;;  %v351_v51 = vadd.f32 %v513_v32, %v481_v47 }
  0xf0   :  { %v483_v50 = vpop.f32.mrf.mxu0 }
  0xf1   :  { %450 = vst [vmem:[%s669_s3] sm:$0xff] %v449_v49   ;;  %v484_v52 = vadd.f32 %v483_v50, %v482_v48  ;;  %v381_v54 = vadd.f32 %v437_v40, %v351_v51 }
  0xf3   :  { %v354_v53 = vadd.f32 %v514_v37, %v484_v52 }
  0xf5   :  { %v382_v55 = vadd.f32 %v437_v40, %v354_v53 }
  0xf7   :  { %v454_v56 = vpack.c.bf16 %v382_v55, %v381_v54 }
  0xf9   :  { %456 = vst [vmem:[%s669_s3 + $0x8] sm:$0xff] %v454_v56  }

// kernel: _lambda_.14
= control target key start
LH: loop header
LB: loop body
LE: loop exit
PB: predicated region body
PF: predicated region fallthrough
CT: control target
= control target key end

     0   :  { %v721_v26 = vmov 0   ;;  %s879_s1 = inlined_call_operand.vmem [shape: bf16[384,128], index: 1, kind: input, shape index: {}]   ;;  %s880_s0 = inlined_call_operand.vmem [shape: bf16[32,384], index: 0, kind: input, shape index: {}]   ;;  %s881_s2 = inlined_call_operand.vmem [shape: bf16[128,128], index: 2, kind: input, shape index: {}]   ;;  %s882_s3 = inlined_call_operand.vmem [shape: bf16[32,128], index: 3, kind: input, shape index: {}]   ;;  %s883_s4 = inlined_call_operand.vmem [shape: bf16[32,128], index: 4, kind: output, shape index: {}]  }
   0x1   :  { %v689_v0 = vld [vmem:[%s879_s1 + $0x78] sm:$0xff]   ;;  %v692_v3 = vld [vmem:[%s879_s1 + $0x70] sm:$0xff]   ;;  %v695_v6 = vld [vmem:[%s879_s1 + $0x68] sm:$0xff]  }
   0x2   :  { %v690_v1 = vld [vmem:[%s879_s1 + $0x38] sm:$0xff]   ;;  %600 = vmatprep.subr.bf16.mxu0 %v689_v0  ;;  %v693_v4 = vld [vmem:[%s879_s1 + $0x30] sm:$0xff]   ;;  %v696_v7 = vld [vmem:[%s879_s1 + $0x28] sm:$0xff]  }
   0x3   :  { %v691_v2 = vld [vmem:[%s879_s1 + $0xb8] sm:$0xff]   ;;  %601 = vmatpush3.bf16.msra.mxu0 %v690_v1  ;;  %v694_v5 = vld [vmem:[%s879_s1 + $0xb0] sm:$0xff]   ;;  %v697_v8 = vld [vmem:[%s879_s1 + $0xa8] sm:$0xff]  }
   0x4   :  { %648 = vmatprep.subr.bf16.mxu1 %v691_v2  ;;  %602 = vmatprep.subr.bf16.mxu0 %v692_v3  ;;  %v698_v9 = vld [vmem:[%s879_s1 + $0x60] sm:$0xff]   ;;  %v701_v12 = vld [vmem:[%s879_s1 + $0x58] sm:$0xff]   ;;  %v704_v15 = vld [vmem:[%s879_s1 + $0x50] sm:$0xff]  }
   0x5   :  { %649 = vmatpush3.bf16.msra.mxu1 %v691_v2  ;;  %v699_v10 = vld [vmem:[%s879_s1 + $0x20] sm:$0xff]   ;;  %v703_v13 = vld [vmem:[%s879_s1 + $0x98] sm:$0xff]   ;;  %v706_v16 = vld [vmem:[%s879_s1 + $0x90] sm:$0xff]  }
   0x6   :  { %650 = vmatprep.subr.bf16.mxu1 %v694_v5  ;;  %v700_v11 = vld [vmem:[%s879_s1 + $0xa0] sm:$0xff]   ;;  %v702_v14 = vld [vmem:[%s879_s1 + $0x18] sm:$0xff]   ;;  %v705_v17 = vld [vmem:[%s879_s1 + $0x10] sm:$0xff]  }
   0x7   :  { %603 = vmatpush3.bf16.msra.mxu0 %v693_v4  ;;  %v707_v18 = vld [vmem:[%s879_s1 + $0x48] sm:$0xff]   ;;  %v710_v21 = vld [vmem:[%s879_s1 + $0x40] sm:$0xff]   ;;  %v29_v29 = vld [vmem:[%s880_s0 + $0x14] sm:$0xf] }
   0x8   :  { %604 = vmatprep.subr.bf16.mxu0 %v695_v6  ;;  %v708_v19 = vld [vmem:[%s879_s1 + $0x8] sm:$0xff]   ;;  %v712_v22 = vld [vmem:[%s879_s1 + $0x80] sm:$0xff]   ;;  %v37_v33 = vmax.bf16 %v721_v26, %v29_v29  ;;  %v30_v34 = vld [vmem:[%s880_s0 + $0x18] sm:$0xff] }
   0x9   :  { %651 = vmatpush3.bf16.msra.mxu1 %v694_v5  ;;  %v709_v20 = vld [vmem:[%s879_s1 + $0x88] sm:$0xff]   ;;  %v26_v23 = vld [vmem:[%s880_s0] sm:$0xff]  ;;  %v38_v38 = vmax.bf16 %v721_v26, %v30_v34  ;;  %v713_v43 = vld [vmem:[%s881_s2 + $0x38] sm:$0xff]  }
   0xa   :  { %652 = vmatprep.subr.bf16.mxu1 %v697_v8  ;;  %v28_v24 = vld [vmem:[%s880_s0 + $0xc] sm:$0xff]  ;;  %v27_v25 = vld [vmem:[%s880_s0 + $0x8] sm:$0xf]  ;;  %v34_v27 = vmax.bf16 %v721_v26, %v26_v23  ;;  %v31_v31 = vld [vmem:[%s880_s0 + $0x20] sm:$0xf] }
   0xb   :  { %605 = vmatpush3.bf16.msra.mxu0 %v696_v7  ;;  %v36_v28 = vmax.bf16 %v721_v26, %v28_v24  ;;  %v35_v30 = vmax.bf16 %v721_v26, %v27_v25  ;;  %v33_v32 = vld [vmem:[%s880_s0 + $0x2c] sm:$0xf]  ;;  %v32_v35 = vld [vmem:[%s880_s0 + $0x24] sm:$0xff]  ;;  %v39_v41 = vmax.bf16 %v721_v26, %v31_v31  ;;  %v714_v45 = vld [vmem:[%s881_s2 + $0x30] sm:$0xff]  }
   0xc   :  { %606 = vmatprep.subr.bf16.mxu0 %v698_v9  ;;  %v711_v36 = vld [vmem:[%s879_s1] sm:$0xff]   ;;  %v40_v39 = vmax.bf16 %v721_v26, %v32_v35  ;;  %v41_v42 = vmax.bf16 %v721_v26, %v33_v32  ;;  %v715_v48 = vld [vmem:[%s881_s2 + $0x28] sm:$0xff]   ;;  %v717_v51 = vld [vmem:[%s881_s2 + $0x18] sm:$0xff]  }
   0xd   :  { %653 = vmatpush3.bf16.msra.mxu1 %v697_v8  ;;  %v535_v37 = vcombine.high %v34_v27, %v36_v28  ;;  %v536_v40 = vcombine.low %v35_v30, %v37_v33  ;;  %v534_v44 = vcombine.low %v34_v27, %v36_v28  ;;  %v716_v50 = vld [vmem:[%s881_s2 + $0x20] sm:$0xff]   ;;  %v718_v52 = vld [vmem:[%s881_s2 + $0x10] sm:$0xff]   ;;  %v719_v53 = vld [vmem:[%s881_s2 + $0x8] sm:$0xff]  }
   0xe   :  { %654 = vmatprep.subr.bf16.mxu1 %v700_v11  ;;  %v538_v46 = vcombine.high %v38_v38, %v40_v39  ;;  %v539_v47 = vcombine.low %v39_v41, %v41_v42  ;;  %v537_v49 = vcombine.low %v38_v38, %v40_v39  ;;  %v720_v54 = vld [vmem:[%s881_s2] sm:$0xff]  }
   0xf   :  { %607 = vmatpush3.bf16.msra.mxu0 %v699_v10  ;;  %302 = vmatprep.mubr.bf16.mxu0 %v535_v37 }
  0x10   :  { %608 = vmatprep.subr.bf16.mxu0 %v701_v12  ;;  %664 = vmatprep.mubr.bf16.mxu1 %v536_v40 }
  0x11   :  { %655 = vmatpush3.bf16.msra.mxu1 %v700_v11 }
  0x12   :  { %656 = vmatprep.subr.bf16.mxu1 %v703_v13 }
  0x13   :  { %609 = vmatpush3.bf16.msra.mxu0 %v702_v14 }
  0x14   :  { %610 = vmatprep.subr.bf16.mxu0 %v704_v15 }
  0x15   :  { %657 = vmatpush3.bf16.msra.mxu1 %v703_v13 }
  0x16   :  { %658 = vmatprep.subr.bf16.mxu1 %v706_v16 }
  0x17   :  { %611 = vmatpush3.bf16.msra.mxu0 %v705_v17  ;;  %v598_v17 = vld [vmem:[%s882_s3 + $0x8] sm:$0xff]  }
  0x18   :  { %612 = vmatprep.subr.bf16.mxu0 %v707_v18 }
  0x19   :  { %659 = vmatpush3.bf16.msra.mxu1 %v706_v16 }
  0x1a   :  { %660 = vmatprep.subr.bf16.mxu1 %v709_v20 }
  0x1b   :  { %613 = vmatpush3.bf16.msra.mxu0 %v708_v19  ;;  %v581_v19 = vld [vmem:[%s882_s3] sm:$0xff]  }
  0x1c   :  { %614 = vmatprep.subr.bf16.mxu0 %v710_v21  ;;  %v587_v21 = vunpack.c.h.bf16 %v598_v17  ;;  %v582_v23 = vunpack.c.l.bf16 %v581_v19  ;;  %v583_v24 = vunpack.c.h.bf16 %v581_v19 }
  0x1d   :  { %661 = vmatpush3.bf16.msra.mxu1 %v709_v20  ;;  %v586_v20 = vunpack.c.l.bf16 %v598_v17 }
  0x1e   :  { %662 = vmatprep.subr.bf16.mxu1 %v712_v22 }
  0x1f   :  { %615 = vmatpush3.bf16.msra.mxu0 %v711_v36 }
  0x20   :  { %668 = vmatprep.subr.bf16.mxu0 %v713_v43 }
  0x21   :  { %663 = vmatpush3.bf16.msra.mxu1 %v712_v22 }
  0x22   :  { %303 = vmatmul.mubr.bf16.vlgmr.msra.gmra.mxu0 %v534_v44 }
  0x23   :  { %310 = vmatprep.mubr.bf16.mxu0 %v538_v46  ;;  %669 = vmatpush3.bf16.msra.mxu0 %v713_v43 }
  0x24   :  { %665 = vmatmul.mubr.bf16.vlgmr.msra.gmra.mxu1 %v539_v47  ;;  %670 = vmatprep.subr.bf16.mxu0 %v714_v45 }
  0x27   :  { %671 = vmatpush3.bf16.msra.mxu0 %v714_v45 }
  0x28   :  { %672 = vmatprep.subr.bf16.mxu0 %v715_v48 }
  0x2a   :  { %311 = vmatmul.mubr.bf16.gmra.mxu0 %v537_v49 }
  0x2b   :  { %673 = vmatpush3.bf16.msra.mxu0 %v715_v48 }
  0x2c   :  { %674 = vmatprep.subr.bf16.mxu0 %v716_v50 }
  0x2f   :  { %675 = vmatpush3.bf16.msra.mxu0 %v716_v50 }
  0x30   :  { %676 = vmatprep.subr.bf16.mxu0 %v717_v51 }
  0x33   :  { %677 = vmatpush3.bf16.msra.mxu0 %v717_v51 }
  0x34   :  { %678 = vmatprep.subr.bf16.mxu0 %v718_v52 }
  0x37   :  { %679 = vmatpush3.bf16.msra.mxu0 %v718_v52 }
  0x38   :  { %680 = vmatprep.subr.bf16.mxu0 %v719_v53 }
  0x3b   :  { %681 = vmatpush3.bf16.msra.mxu0 %v719_v53 }
  0x3c   :  { %682 = vmatprep.subr.bf16.mxu0 %v720_v54 }
  0x3f   :  { %683 = vmatpush3.bf16.msra.mxu0 %v720_v54 }
  0xe2   :  { %v616_v55 = vpop.f32.mrf.mxu0 }
  0xe4   :  { %v617_v56 = vpop.f32.mrf.mxu0  ;;  %v666_v57 = vpop.f32.mrf.mxu1 }
  0xe5   :  { %v618_v58 = vadd.f32 %v617_v56, %v616_v55 }
  0xe6   :  { %v619_v59 = vpop.f32.mrf.mxu0  ;;  %v353_v60 = vpop.f32.mrf.mxu1 }
  0xe7   :  { %v354_v63 = vadd.f32 %v618_v58, %v353_v60 }
  0xe8   :  { %v620_v61 = vpop.f32.mrf.mxu0  ;;  %v667_v62 = vpop.f32.mrf.mxu1 }
  0xe9   :  { %v621_v0 = vadd.f32 %v620_v61, %v619_v59  ;;  %v383_v5 = vmax.f32 %v354_v63, 0.0 }
  0xea   :  { %v622_v1 = vpop.f32.mrf.mxu0  ;;  %v356_v2 = vpop.f32.mrf.mxu1 }
  0xeb   :  { %v357_v3 = vadd.f32 %v621_v0, %v356_v2 }
  0xec   :  { %v623_v4 = vpop.f32.mrf.mxu0 }
  0xed   :  { %v384_v6 = vmax.f32 %v357_v3, 0.0  ;;  %v624_v7 = vadd.f32 %v623_v4, %v622_v1 }
  0xee   :  { %v625_v8 = vpop.f32.mrf.mxu0 }
  0xef   :  { %v387_v9 = vpack.c.bf16 %v384_v6, %v383_v5  ;;  %v362_v11 = vadd.f32 %v666_v57, %v624_v7 }
  0xf0   :  { %v626_v10 = vpop.f32.mrf.mxu0 }
  0xf1   :  { %v627_v12 = vadd.f32 %v626_v10, %v625_v8  ;;  %684 = vmatprep.mubr.bf16.mxu0 %v387_v9  ;;  %v385_v14 = vmax.f32 %v362_v11, 0.0 }
  0xf3   :  { %v365_v13 = vadd.f32 %v667_v62, %v627_v12 }
  0xf5   :  { %v386_v15 = vmax.f32 %v365_v13, 0.0 }
  0xf7   :  { %v388_v16 = vpack.c.bf16 %v386_v15, %v385_v14 }
  0xf9   :  { %685 = vmatmul.mubr.bf16.vlgmr.msra.gmra.mxu0 %v388_v16 }
 0x1b9   :  { %v686_v18 = vpop.f32.mrf.mxu0 }
 0x1ba   :  { %v504_v26 = vadd.f32 %v686_v18, %v586_v20 }
 0x1bb   :  { %v495_v22 = vpop.f32.mrf.mxu0 }
 0x1bc   :  { %v496_v29 = vadd.f32 %v582_v23, %v495_v22 }
 0x1bd   :  { %v687_v25 = vpop.f32.mrf.mxu0 }
 0x1be   :  { %v507_v27 = vadd.f32 %v687_v25, %v587_v21 }
 0x1bf   :  { %v498_v28 = vpop.f32.mrf.mxu0 }
 0x1c0   :  { %v596_v30 = vpack.c.bf16 %v507_v27, %v504_v26  ;;  %v499_v31 = vadd.f32 %v583_v24, %v498_v28 }
 0x1c2   :  { %599 = vst [vmem:[%s883_s4 + $0x8] sm:$0xff] %v596_v30   ;;  %v591_v32 = vpack.c.bf16 %v499_v31, %v496_v29 }
 0x1c4   :  { %592 = vst [vmem:[%s883_s4] sm:$0xff] %v591_v32  }

// kernel: _lambda_.16
= control target key start
LH: loop header
LB: loop body
LE: loop exit
PB: predicated region body
PF: predicated region fallthrough
CT: control target
= control target key end

     0   :  { %v127_v36 = vlaneseq  ;;  %s572_s1 = inlined_call_operand.vmem [shape: f32[128,128], index: 1, kind: input, shape index: {}]   ;;  %s573_s0 = inlined_call_operand.vmem [shape: f32[32,128], index: 0, kind: input, shape index: {}]   ;;  %s574_s2 = inlined_call_operand.vmem [shape: f32[1,128], index: 2, kind: input, shape index: {}]   ;;  %s575_s4 = inlined_call_operand.vmem [shape: f32[1,1,128], index: 4, kind: output, shape index: {1}]   ;;  %s576_s3 = inlined_call_operand.vmem [shape: f32[32,128], index: 3, kind: output, shape index: {0}]  }
   0x1   :  { %v35_v0 = vld [vmem:[%s572_s1 + $0x70] sm:$0xff]  ;;  %v36_v1 = vld [vmem:[%s572_s1 + $0x78] sm:$0xff]  ;;  %v33_v2 = vld [vmem:[%s572_s1 + $0x60] sm:$0xff] }
   0x2   :  { %v58_v3 = vpack.c.bf16 %v36_v1, %v35_v0  ;;  %v34_v4 = vld [vmem:[%s572_s1 + $0x68] sm:$0xff]  ;;  %411 = vmatprep.subr.mxu1 %v36_v1  ;;  %v17_v6 = vld [vmem:[%s573_s0] sm:$0xff]  ;;  %v31_v8 = vld [vmem:[%s572_s1 + $0x50] sm:$0xff]  ;;  %v546_v42 = vand.u32 127, %v127_v36 }
   0x3   :  { %v57_v5 = vpack.c.bf16 %v34_v4, %v33_v2  ;;  %412 = vmatpush3.msra.mxu1 %v36_v1  ;;  %v18_v7 = vld [vmem:[%s573_s0 + $0x8] sm:$0xff]  ;;  %v32_v9 = vld [vmem:[%s572_s1 + $0x58] sm:$0xff]  ;;  %v505_v11 = vld [vmem:[%s573_s0 + $0x10] sm:$0xff]  ;;  %v37_v12 = vmul.f32 %v17_v6, %v17_v6 }
   0x4   :  { %391 = vmatprep.subr.bf16.mxu0 %v58_v3  ;;  %413 = vmatprep.subr.mxu1 %v35_v0  ;;  %v49_v10 = vpack.c.bf16 %v18_v7, %v17_v6  ;;  %v39_v13 = vmul.f32 %v505_v11, %v505_v11  ;;  %v20_v14 = vld [vmem:[%s573_s0 + $0x18] sm:$0xff]  ;;  %v38_v15 = vmul.f32 %v18_v7, %v18_v7  ;;  %v29_v18 = vld [vmem:[%s572_s1 + $0x40] sm:$0xff]  ;;  %v30_v19 = vld [vmem:[%s572_s1 + $0x48] sm:$0xff]  ;;  %vm129_vm0 = vcmp.lt.s32.totalorder %v546_v42, 16 }
   0x5   :  { %392 = vmatpush3.bf16.xpose.msra.mxu0 %v58_v3  ;;  %414 = vmatpush3.msra.mxu1 %v35_v0  ;;  %v56_v16 = vpack.c.bf16 %v32_v9, %v31_v8  ;;  %v40_v17 = vmul.f32 %v20_v14, %v20_v14  ;;  %v55_v20 = vpack.c.bf16 %v30_v19, %v29_v18  ;;  %v28_v21 = vld [vmem:[%s572_s1 + $0x38] sm:$0xff]  ;;  %v27_v22 = vld [vmem:[%s572_s1 + $0x30] sm:$0xff]  ;;  %v26_v23 = vld [vmem:[%s572_s1 + $0x28] sm:$0xff] }
   0x6   :  { %393 = vmatprep.subr.bf16.mxu0 %v57_v5  ;;  %415 = vmatprep.subr.mxu1 %v34_v4  ;;  %v54_v24 = vpack.c.bf16 %v28_v21, %v27_v22  ;;  %v25_v25 = vld [vmem:[%s572_s1 + $0x20] sm:$0xff]  ;;  %v24_v26 = vld [vmem:[%s572_s1 + $0x18] sm:$0xff]  ;;  %v23_v27 = vld [vmem:[%s572_s1 + $0x10] sm:$0xff]  ;;  %v50_v33 = vpack.c.bf16 %v20_v14, %v505_v11 }
   0x7   :  { %416 = vmatpush3.msra.mxu1 %v34_v4  ;;  %407 = vmatprep.mubr.bf16.mxu0 %v49_v10  ;;  %v22_v28 = vld [vmem:[%s572_s1 + $0x8] sm:$0xff]  ;;  %v53_v29 = vpack.c.bf16 %v26_v23, %v25_v25  ;;  %v21_v30 = vld [vmem:[%s572_s1] sm:$0xff]  ;;  %v52_v31 = vpack.c.bf16 %v24_v26, %v23_v27 }
   0x8   :  { %417 = vmatprep.subr.mxu1 %v33_v2  ;;  %41 = vadd.xlane.f32.xlu0 %v37_v12  ;;  %v51_v32 = vpack.c.bf16 %v22_v28, %v21_v30  ;;  %v352_v37 = vld [vmem:[%s574_s2] ss:$0 sm:$0xff] }
   0x9   :  { %45 = vadd.xlane.f32.xlu1 %v39_v13  ;;  %418 = vmatpush3.msra.mxu1 %v33_v2 }
   0xa   :  { %419 = vmatprep.subr.mxu1 %v32_v9 }
   0xb   :  { %420 = vmatpush3.msra.mxu1 %v32_v9 }
   0xc   :  { %43 = vadd.xlane.f32.xlu0 %v38_v15  ;;  %421 = vmatprep.subr.mxu1 %v31_v8 }
   0xd   :  { %394 = vmatpush3.bf16.xpose.msra.mxu0 %v57_v5  ;;  %47 = vadd.xlane.f32.xlu1 %v40_v17 }
   0xe   :  { %395 = vmatprep.subr.bf16.mxu0 %v56_v16  ;;  %422 = vmatpush3.msra.mxu1 %v31_v8 }
   0xf   :  { %423 = vmatprep.subr.mxu1 %v30_v19 }
  0x10   :  { %424 = vmatpush3.msra.mxu1 %v30_v19 }
  0x11   :  { %425 = vmatprep.subr.mxu1 %v29_v18 }
  0x12   :  { %426 = vmatpush3.msra.mxu1 %v29_v18 }
  0x13   :  { %427 = vmatprep.subr.mxu1 %v28_v21 }
  0x14   :  { %428 = vmatpush3.msra.mxu1 %v28_v21 }
  0x15   :  { %396 = vmatpush3.bf16.xpose.msra.mxu0 %v56_v16  ;;  %429 = vmatprep.subr.mxu1 %v27_v22 }
  0x16   :  { %397 = vmatprep.subr.bf16.mxu0 %v55_v20  ;;  %430 = vmatpush3.msra.mxu1 %v27_v22 }
  0x17   :  { %431 = vmatprep.subr.mxu1 %v26_v23 }
  0x18   :  { %432 = vmatpush3.msra.mxu1 %v26_v23 }
  0x19   :  { %433 = vmatprep.subr.mxu1 %v25_v25 }
  0x1a   :  { %434 = vmatpush3.msra.mxu1 %v25_v25 }
  0x1b   :  { %435 = vmatprep.subr.mxu1 %v24_v26 }
  0x1c   :  { %436 = vmatpush3.msra.mxu1 %v24_v26 }
  0x1d   :  { %398 = vmatpush3.bf16.xpose.msra.mxu0 %v55_v20  ;;  %437 = vmatprep.subr.mxu1 %v23_v27 }
  0x1e   :  { %399 = vmatprep.subr.bf16.mxu0 %v54_v24  ;;  %438 = vmatpush3.msra.mxu1 %v23_v27 }
  0x1f   :  { %439 = vmatprep.subr.mxu1 %v22_v28 }
  0x20   :  { %440 = vmatpush3.msra.mxu1 %v22_v28 }
  0x21   :  { %441 = vmatprep.subr.mxu1 %v21_v30 }
  0x22   :  { %442 = vmatpush3.msra.mxu1 %v21_v30 }
  0x25   :  { %400 = vmatpush3.bf16.xpose.msra.mxu0 %v54_v24 }
  0x26   :  { %401 = vmatprep.subr.bf16.mxu0 %v53_v29 }
  0x2d   :  { %402 = vmatpush3.bf16.xpose.msra.mxu0 %v53_v29 }
  0x2e   :  { %403 = vmatprep.subr.bf16.mxu0 %v52_v31 }
  0x35   :  { %404 = vmatpush3.bf16.xpose.msra.mxu0 %v52_v31 }
  0x36   :  { %405 = vmatprep.subr.bf16.mxu0 %v51_v32 }
  0x3d   :  { %406 = vmatpush3.bf16.xpose.msra.mxu0 %v51_v32 }
  0x44   :  { %408 = vmatmul.mubr.bf16.vlgmr.msra.gmra.mxu0 %v50_v33 }
  0x91   :  { %v42_v34 = vpop.xlane.xlu0 %41 }
  0x92   :  { %v46_v35 = vpop.xlane.xlu1 %45  ;;  %v115_v39 = vadd.f32 %v352_v37, %v42_v34 }
  0x93   :  { %v117_v43 = vadd.f32 %v352_v37, %v46_v35 }
  0x95   :  { %v44_v41 = vpop.xlane.xlu0 %43 }
  0x96   :  { %v48_v46 = vpop.xlane.xlu1 %47  ;;  %v116_v48 = vadd.f32 %v352_v37, %v44_v41 }
  0x97   :  { %v118_v50 = vadd.f32 %v352_v37, %v48_v46 }
 0x104   :  { %v409_v38 = vpop.f32.mrf.mxu0 }
 0x105   :  { %v121_v44 = vmul.f32 2.0, %v409_v38 }
 0x106   :  { %v93_v40 = vpop.f32.mrf.mxu0 }
 0x107   :  { %v119_v45 = vmul.f32 2.0, %v93_v40  ;;  %v125_v55 = vsub.f32 %v117_v43, %v121_v44  ;;  %v451_v44 = vmov 1.0  }
 0x108   :  { %v410_v47 = vpop.f32.mrf.mxu0 }
 0x109   :  { %v123_v49 = vsub.f32 %v115_v39, %v119_v45  ;;  %v122_v52 = vmul.f32 2.0, %v410_v47  ;;  %v132_v57 = vsel %vm129_vm0, %v125_v55, inf }
 0x10a   :  { %v96_v51 = vpop.f32.mrf.mxu0 }
 0x10b   :  { %v120_v53 = vmul.f32 2.0, %v96_v51  ;;  %v130_v54 = vsel %vm129_vm0, %v123_v49, inf  ;;  %v126_v59 = vsub.f32 %v118_v50, %v122_v52  ;;  %v452_v50 = vmov 0.0  }
 0x10c   :  { %134 = vmin.xlane.f32.xlu0 %v130_v54 }
 0x10d   :  { %v124_v56 = vsub.f32 %v116_v48, %v120_v53  ;;  %v133_v60 = vsel %vm129_vm0, %v126_v59, inf }
 0x10f   :  { %v131_v58 = vsel %vm129_vm0, %v124_v56, inf }
 0x110   :  { %138 = vmin.xlane.f32.xlu0 %v132_v57  ;;  %136 = vmin.xlane.f32.xlu1 %v131_v58 }
 0x114   :  { %140 = vmin.xlane.f32.xlu1 %v133_v60 }
 0x195   :  { %v135_v61 = vpop.xlane.xlu0 %134 }
 0x196   :  { %vm142_vm1 = vcmp.eq.f32.partialorder %v130_v54, %v135_v61 }
 0x197   :  { %v146_v62 = vsel %vm142_vm1, %v546_v42, 128 }
 0x198   :  { %v151_v63 = vshra.s32 %v146_v62, 16  ;;  %v150_v13 = vand.u32 65535, %v146_v62 }
 0x199   :  { %v137_v0 = vpop.xlane.xlu1 %136  ;;  %v139_v1 = vpop.xlane.xlu0 %138 }
 0x19a   :  { %vm143_vm2 = vcmp.eq.f32.partialorder %v131_v58, %v137_v0  ;;  %vm144_vm3 = vcmp.eq.f32.partialorder %v132_v57, %v139_v1  ;;  %v153_v2 = vcvt.s32.f32 %v151_v63  ;;  %v152_v17 = vcvt.s32.f32 %v150_v13 }
 0x19b   :  { %v147_v3 = vsel %vm143_vm2, %v546_v42, 128  ;;  %v148_v4 = vsel %vm144_vm3, %v546_v42, 128 }
 0x19c   :  { %154 = vmin.xlane.f32.xlu0 %v153_v2  ;;  %v165_v5 = vshra.s32 %v147_v3, 16  ;;  %v179_v6 = vshra.s32 %v148_v4, 16  ;;  %v164_v14 = vand.u32 65535, %v147_v3  ;;  %v178_v15 = vand.u32 65535, %v148_v4 }
 0x19d   :  { %v141_v7 = vpop.xlane.xlu1 %140 }
 0x19e   :  { %vm145_vm4 = vcmp.eq.f32.partialorder %v133_v60, %v141_v7  ;;  %v167_v8 = vcvt.s32.f32 %v165_v5  ;;  %v181_v9 = vcvt.s32.f32 %v179_v6  ;;  %v166_v22 = vcvt.s32.f32 %v164_v14 }
 0x19f   :  { %v149_v10 = vsel %vm145_vm4, %v546_v42, 128  ;;  %v180_v23 = vcvt.s32.f32 %v178_v15 }
 0x1a0   :  { %168 = vmin.xlane.f32.xlu1 %v167_v8  ;;  %182 = vmin.xlane.f32.xlu0 %v181_v9  ;;  %v193_v11 = vshra.s32 %v149_v10, 16  ;;  %v192_v19 = vand.u32 65535, %v149_v10 }
 0x1a2   :  { %v195_v12 = vcvt.s32.f32 %v193_v11  ;;  %v194_v27 = vcvt.s32.f32 %v192_v19 }
 0x1a4   :  { %196 = vmin.xlane.f32.xlu1 %v195_v12 }
 0x225   :  { %v155_v16 = vpop.xlane.xlu0 %154 }
 0x226   :  { %vm156_vm5 = vcmp.eq.f32.partialorder %v153_v2, %v155_v16  ;;  %v161_v29 = vcvt.f32.s32 %v155_v16 }
 0x227   :  { %v157_v18 = vsel %vm156_vm5, %v152_v17, inf }
 0x228   :  { %158 = vmin.xlane.f32.xlu0 %v157_v18  ;;  %v162_v33 = vshll.u32 %v161_v29, 16 }
 0x229   :  { %v169_v20 = vpop.xlane.xlu1 %168  ;;  %v183_v21 = vpop.xlane.xlu0 %182 }
 0x22a   :  { %vm170_vm6 = vcmp.eq.f32.partialorder %v167_v8, %v169_v20  ;;  %vm184_vm7 = vcmp.eq.f32.partialorder %v181_v9, %v183_v21  ;;  %v175_v30 = vcvt.f32.s32 %v169_v20  ;;  %v189_v31 = vcvt.f32.s32 %v183_v21 }
 0x22b   :  { %v171_v24 = vsel %vm170_vm6, %v166_v22, inf  ;;  %v185_v25 = vsel %vm184_vm7, %v180_v23, inf }
 0x22c   :  { %172 = vmin.xlane.f32.xlu1 %v171_v24  ;;  %186 = vmin.xlane.f32.xlu0 %v185_v25  ;;  %v176_v36 = vshll.u32 %v175_v30, 16  ;;  %v190_v37 = vshll.u32 %v189_v31, 16 }
 0x22d   :  { %v197_v26 = vpop.xlane.xlu1 %196 }
 0x22e   :  { %vm198_vm8 = vcmp.eq.f32.partialorder %v195_v12, %v197_v26  ;;  %v203_v40 = vcvt.f32.s32 %v197_v26 }
 0x22f   :  { %v199_v28 = vsel %vm198_vm8, %v194_v27, inf }
 0x230   :  { %200 = vmin.xlane.f32.xlu1 %v199_v28  ;;  %v204_v48 = vshll.u32 %v203_v40, 16 }
 0x2b1   :  { %v159_v32 = vpop.xlane.xlu0 %158 }
 0x2b2   :  { %v160_v34 = vcvt.f32.s32 %v159_v32 }
 0x2b4   :  { %v163_v35 = vadd.s32 %v162_v33, %v160_v34 }
 0x2b5   :  { %v173_v38 = vpop.xlane.xlu1 %172  ;;  %v187_v39 = vpop.xlane.xlu0 %186 }
 0x2b6   :  { %v174_v41 = vcvt.f32.s32 %v173_v38  ;;  %v188_v43 = vcvt.f32.s32 %v187_v39  ;;  %vm206_vm9 = vcmp.eq.s32.totalorder %v546_v42, %v163_v35 }
 0x2b7   :  { %443 = vmatprep.mubr.msk.f32.mxu1 %vm206_vm9, %v451_v44  ;;  %v353_v51 = vsel %vm206_vm9, 1.0, %v452_v50 }
 0x2b8   :  { %v177_v45 = vadd.s32 %v176_v36, %v174_v41  ;;  %v191_v46 = vadd.s32 %v190_v37, %v188_v43 }
 0x2b9   :  { %v201_v47 = vpop.xlane.xlu1 %200 }
 0x2ba   :  { %vm207_vm10 = vcmp.eq.s32.totalorder %v546_v42, %v177_v45  ;;  %v202_v49 = vcvt.f32.s32 %v201_v47  ;;  %vm208_vm11 = vcmp.eq.s32.totalorder %v546_v42, %v191_v46 }
 0x2bb   :  { %v354_v52 = vsel %vm207_vm10, 1.0, %v452_v50  ;;  %444 = vmatmul.mubr.msk.f32.vlgmr.msra.gmra.mxu1 %vm207_vm10, %v451_v44  ;;  %v355_v55 = vsel %vm208_vm11, 1.0, %v452_v50 }
 0x2bc   :  { %v334_v53 = vadd.f32 %v354_v52, %v353_v51  ;;  %v205_v54 = vadd.s32 %v204_v48, %v202_v49  ;;  %446 = vmatprep.mubr.msk.f32.mxu1 %vm208_vm11, %v451_v44 }
 0x2be   :  { %v335_v56 = vadd.f32 %v355_v55, %v334_v53  ;;  %vm209_vm12 = vcmp.eq.s32.totalorder %v546_v42, %v205_v54 }
 0x2bf   :  { %v356_v57 = vsel %vm209_vm12, 1.0, %v452_v50  ;;  %447 = vmatmul.mubr.msk.f32.gmra.mxu1 %vm209_vm12, %v451_v44 }
 0x2c0   :  { %v336_v58 = vadd.f32 %v356_v57, %v335_v56 }
 0x2c2   :  { %v337_v59 = vrot.slane %v336_v58, 4 }
 0x2c4   :  { %v338_v60 = vadd.f32 %v337_v59, %v336_v58 }
 0x2c6   :  { %v339_v61 = vrot.slane %v338_v60, 2 }
 0x2c8   :  { %v340_v62 = vadd.f32 %v339_v61, %v338_v60 }
 0x2ca   :  { %v341_v63 = vrot.slane %v340_v62, 1 }
 0x2cc   :  { %v342_v0 = vadd.f32 %v341_v63, %v340_v62 }
 0x2ce   :  { %343 = vst [vmem:[%s575_s4] sm:$0x1] %v342_v0 }
 0x37b   :  { %v445_v1 = vpop.f32.mrf.mxu1 }
 0x37c   :  { %304 = vst [vmem:[%s576_s3 + $0x8] sm:$0xff] %v445_v1 }
 0x37d   :  { %v284_v2 = vpop.f32.mrf.mxu1 }
 0x37e   :  { %303 = vst [vmem:[%s576_s3] sm:$0xff] %v284_v2 }
 0x37f   :  { %v448_v42 = vpop.f32.mrf.mxu1 }
 0x380   :  { %306 = vst [vmem:[%s576_s3 + $0x18] sm:$0xff] %v448_v42 }
 0x381   :  { %v294_v3 = vpop.f32.mrf.mxu1 }
 0x382   :  { %305 = vst [vmem:[%s576_s3 + $0x10] sm:$0xff] %v294_v3 }

// kernel: _lambda_.15
= control target key start
LH: loop header
LB: loop body
LE: loop exit
PB: predicated region body
PF: predicated region fallthrough
CT: control target
= control target key end

     0   :  { %v865_v26 = vmov 0   ;;  %s1066_s1 = inlined_call_operand.vmem [shape: bf16[384,128], index: 1, kind: input, shape index: {}]   ;;  %s1067_s0 = inlined_call_operand.vmem [shape: bf16[32,384], index: 0, kind: input, shape index: {}]   ;;  %s1068_s2 = inlined_call_operand.vmem [shape: bf16[128,128], index: 2, kind: input, shape index: {}]   ;;  %s1069_s4 = inlined_call_operand.vmem [shape: bf16[128,128], index: 4, kind: input, shape index: {}]   ;;  %s1070_s3 = inlined_call_operand.vmem [shape: bf16[32,128], index: 3, kind: input, shape index: {}]   ;;  %s1071_s5 = inlined_call_operand.vmem [shape: f32[1,128], index: 5, kind: input, shape index: {}]   ;;  %s1072_s6 = inlined_call_operand.vmem [shape: f32[32,128], index: 6, kind: output, shape index: {}]  }
   0x1   :  { %v825_v0 = vld [vmem:[%s1066_s1 + $0x78] sm:$0xff]   ;;  %v828_v3 = vld [vmem:[%s1066_s1 + $0x70] sm:$0xff]   ;;  %v831_v6 = vld [vmem:[%s1066_s1 + $0x68] sm:$0xff]  }
   0x2   :  { %v826_v1 = vld [vmem:[%s1066_s1 + $0x38] sm:$0xff]   ;;  %706 = vmatprep.subr.bf16.mxu0 %v825_v0  ;;  %v829_v4 = vld [vmem:[%s1066_s1 + $0x30] sm:$0xff]   ;;  %v832_v7 = vld [vmem:[%s1066_s1 + $0x28] sm:$0xff]  }
   0x3   :  { %v827_v2 = vld [vmem:[%s1066_s1 + $0xb8] sm:$0xff]   ;;  %707 = vmatpush3.bf16.msra.mxu0 %v826_v1  ;;  %v830_v5 = vld [vmem:[%s1066_s1 + $0xb0] sm:$0xff]   ;;  %v833_v8 = vld [vmem:[%s1066_s1 + $0xa8] sm:$0xff]  }
   0x4   :  { %764 = vmatprep.subr.bf16.mxu1 %v827_v2  ;;  %708 = vmatprep.subr.bf16.mxu0 %v828_v3  ;;  %v834_v9 = vld [vmem:[%s1066_s1 + $0x60] sm:$0xff]   ;;  %v837_v12 = vld [vmem:[%s1066_s1 + $0x58] sm:$0xff]   ;;  %v840_v15 = vld [vmem:[%s1066_s1 + $0x50] sm:$0xff]  }
   0x5   :  { %765 = vmatpush3.bf16.msra.mxu1 %v827_v2  ;;  %v835_v10 = vld [vmem:[%s1066_s1 + $0x20] sm:$0xff]   ;;  %v839_v13 = vld [vmem:[%s1066_s1 + $0x98] sm:$0xff]   ;;  %v842_v16 = vld [vmem:[%s1066_s1 + $0x90] sm:$0xff]  }
   0x6   :  { %766 = vmatprep.subr.bf16.mxu1 %v830_v5  ;;  %v836_v11 = vld [vmem:[%s1066_s1 + $0xa0] sm:$0xff]   ;;  %v838_v14 = vld [vmem:[%s1066_s1 + $0x18] sm:$0xff]   ;;  %v841_v17 = vld [vmem:[%s1066_s1 + $0x10] sm:$0xff]  }
   0x7   :  { %709 = vmatpush3.bf16.msra.mxu0 %v829_v4  ;;  %v843_v18 = vld [vmem:[%s1066_s1 + $0x48] sm:$0xff]   ;;  %v846_v21 = vld [vmem:[%s1066_s1 + $0x40] sm:$0xff]   ;;  %v35_v29 = vld [vmem:[%s1067_s0 + $0x14] sm:$0xf] }
   0x8   :  { %710 = vmatprep.subr.bf16.mxu0 %v831_v6  ;;  %v844_v19 = vld [vmem:[%s1066_s1 + $0x8] sm:$0xff]   ;;  %v848_v22 = vld [vmem:[%s1066_s1 + $0x80] sm:$0xff]   ;;  %v43_v33 = vmax.bf16 %v865_v26, %v35_v29  ;;  %v36_v34 = vld [vmem:[%s1067_s0 + $0x18] sm:$0xff] }
   0x9   :  { %767 = vmatpush3.bf16.msra.mxu1 %v830_v5  ;;  %v845_v20 = vld [vmem:[%s1066_s1 + $0x88] sm:$0xff]   ;;  %v32_v23 = vld [vmem:[%s1067_s0] sm:$0xff]  ;;  %v44_v38 = vmax.bf16 %v865_v26, %v36_v34  ;;  %v849_v43 = vld [vmem:[%s1068_s2 + $0x38] sm:$0xff]  }
   0xa   :  { %768 = vmatprep.subr.bf16.mxu1 %v833_v8  ;;  %v34_v24 = vld [vmem:[%s1067_s0 + $0xc] sm:$0xff]  ;;  %v33_v25 = vld [vmem:[%s1067_s0 + $0x8] sm:$0xf]  ;;  %v40_v27 = vmax.bf16 %v865_v26, %v32_v23  ;;  %v37_v31 = vld [vmem:[%s1067_s0 + $0x20] sm:$0xf] }
   0xb   :  { %711 = vmatpush3.bf16.msra.mxu0 %v832_v7  ;;  %v42_v28 = vmax.bf16 %v865_v26, %v34_v24  ;;  %v41_v30 = vmax.bf16 %v865_v26, %v33_v25  ;;  %v39_v32 = vld [vmem:[%s1067_s0 + $0x2c] sm:$0xf]  ;;  %v38_v35 = vld [vmem:[%s1067_s0 + $0x24] sm:$0xff]  ;;  %v45_v41 = vmax.bf16 %v865_v26, %v37_v31  ;;  %v850_v45 = vld [vmem:[%s1068_s2 + $0x30] sm:$0xff]  }
   0xc   :  { %712 = vmatprep.subr.bf16.mxu0 %v834_v9  ;;  %v847_v36 = vld [vmem:[%s1066_s1] sm:$0xff]   ;;  %v46_v39 = vmax.bf16 %v865_v26, %v38_v35  ;;  %v47_v42 = vmax.bf16 %v865_v26, %v39_v32  ;;  %v851_v48 = vld [vmem:[%s1068_s2 + $0x28] sm:$0xff]   ;;  %v853_v51 = vld [vmem:[%s1068_s2 + $0x18] sm:$0xff]  }
   0xd   :  { %769 = vmatpush3.bf16.msra.mxu1 %v833_v8  ;;  %v651_v37 = vcombine.high %v40_v27, %v42_v28  ;;  %v652_v40 = vcombine.low %v41_v30, %v43_v33  ;;  %v650_v44 = vcombine.low %v40_v27, %v42_v28  ;;  %v852_v50 = vld [vmem:[%s1068_s2 + $0x20] sm:$0xff]   ;;  %v854_v52 = vld [vmem:[%s1068_s2 + $0x10] sm:$0xff]   ;;  %v855_v53 = vld [vmem:[%s1068_s2 + $0x8] sm:$0xff]  }
   0xe   :  { %770 = vmatprep.subr.bf16.mxu1 %v836_v11  ;;  %v654_v46 = vcombine.high %v44_v38, %v46_v39  ;;  %v655_v47 = vcombine.low %v45_v41, %v47_v42  ;;  %v653_v49 = vcombine.low %v44_v38, %v46_v39  ;;  %v856_v54 = vld [vmem:[%s1068_s2] sm:$0xff]   ;;  %v857_v55 = vld [vmem:[%s1069_s4 + $0x38] sm:$0xff]   ;;  %v858_v56 = vld [vmem:[%s1069_s4 + $0x30] sm:$0xff]  }
   0xf   :  { %713 = vmatpush3.bf16.msra.mxu0 %v835_v10  ;;  %308 = vmatprep.mubr.bf16.mxu0 %v651_v37  ;;  %v859_v57 = vld [vmem:[%s1069_s4 + $0x28] sm:$0xff]   ;;  %v860_v58 = vld [vmem:[%s1069_s4 + $0x20] sm:$0xff]   ;;  %v861_v59 = vld [vmem:[%s1069_s4 + $0x18] sm:$0xff]  }
  0x10   :  { %714 = vmatprep.subr.bf16.mxu0 %v837_v12  ;;  %780 = vmatprep.mubr.bf16.mxu1 %v652_v40  ;;  %v863_v23 = vld [vmem:[%s1069_s4 + $0x8] sm:$0xff]   ;;  %v864_v24 = vld [vmem:[%s1069_s4] sm:$0xff]  }
  0x11   :  { %771 = vmatpush3.bf16.msra.mxu1 %v836_v11  ;;  %v698_v25 = vld [vmem:[%s1070_s3] sm:$0xff]   ;;  %v705_v26 = vld [vmem:[%s1070_s3 + $0x8] sm:$0xff]  }
  0x12   :  { %772 = vmatprep.subr.bf16.mxu1 %v839_v13  ;;  %v699_v28 = vunpack.c.l.bf16 %v698_v25  ;;  %v704_v29 = vunpack.c.h.bf16 %v705_v26  ;;  %v703_v30 = vunpack.c.l.bf16 %v705_v26  ;;  %v700_v32 = vunpack.c.h.bf16 %v698_v25 }
  0x13   :  { %715 = vmatpush3.bf16.msra.mxu0 %v838_v14 }
  0x14   :  { %716 = vmatprep.subr.bf16.mxu0 %v840_v15 }
  0x15   :  { %773 = vmatpush3.bf16.msra.mxu1 %v839_v13 }
  0x16   :  { %774 = vmatprep.subr.bf16.mxu1 %v842_v16 }
  0x17   :  { %717 = vmatpush3.bf16.msra.mxu0 %v841_v17 }
  0x18   :  { %718 = vmatprep.subr.bf16.mxu0 %v843_v18 }
  0x19   :  { %775 = vmatpush3.bf16.msra.mxu1 %v842_v16 }
  0x1a   :  { %776 = vmatprep.subr.bf16.mxu1 %v845_v20 }
  0x1b   :  { %719 = vmatpush3.bf16.msra.mxu0 %v844_v19 }
  0x1c   :  { %720 = vmatprep.subr.bf16.mxu0 %v846_v21 }
  0x1d   :  { %777 = vmatpush3.bf16.msra.mxu1 %v845_v20 }
  0x1e   :  { %778 = vmatprep.subr.bf16.mxu1 %v848_v22 }
  0x1f   :  { %721 = vmatpush3.bf16.msra.mxu0 %v847_v36 }
  0x20   :  { %784 = vmatprep.subr.bf16.mxu0 %v849_v43 }
  0x21   :  { %779 = vmatpush3.bf16.msra.mxu1 %v848_v22  ;;  %v862_v22 = vld [vmem:[%s1069_s4 + $0x10] sm:$0xff]  }
  0x22   :  { %309 = vmatmul.mubr.bf16.vlgmr.msra.gmra.mxu0 %v650_v44  ;;  %804 = vmatprep.subr.bf16.mxu1 %v857_v55 }
  0x23   :  { %316 = vmatprep.mubr.bf16.mxu0 %v654_v46  ;;  %785 = vmatpush3.bf16.msra.mxu0 %v849_v43 }
  0x24   :  { %781 = vmatmul.mubr.bf16.vlgmr.msra.gmra.mxu1 %v655_v47  ;;  %786 = vmatprep.subr.bf16.mxu0 %v850_v45 }
  0x25   :  { %805 = vmatpush3.bf16.msra.mxu1 %v857_v55 }
  0x26   :  { %806 = vmatprep.subr.bf16.mxu1 %v858_v56 }
  0x27   :  { %787 = vmatpush3.bf16.msra.mxu0 %v850_v45  ;;  %v688_v45 = vld [vmem:[%s1071_s5] ss:$0 sm:$0xff] }
  0x28   :  { %788 = vmatprep.subr.bf16.mxu0 %v851_v48 }
  0x29   :  { %807 = vmatpush3.bf16.msra.mxu1 %v858_v56 }
  0x2a   :  { %317 = vmatmul.mubr.bf16.gmra.mxu0 %v653_v49  ;;  %808 = vmatprep.subr.bf16.mxu1 %v859_v57 }
  0x2b   :  { %789 = vmatpush3.bf16.msra.mxu0 %v851_v48 }
  0x2c   :  { %790 = vmatprep.subr.bf16.mxu0 %v852_v50 }
  0x2d   :  { %809 = vmatpush3.bf16.msra.mxu1 %v859_v57 }
  0x2e   :  { %810 = vmatprep.subr.bf16.mxu1 %v860_v58 }
  0x2f   :  { %791 = vmatpush3.bf16.msra.mxu0 %v852_v50 }
  0x30   :  { %792 = vmatprep.subr.bf16.mxu0 %v853_v51 }
  0x31   :  { %811 = vmatpush3.bf16.msra.mxu1 %v860_v58 }
  0x32   :  { %812 = vmatprep.subr.bf16.mxu1 %v861_v59 }
  0x33   :  { %793 = vmatpush3.bf16.msra.mxu0 %v853_v51 }
  0x34   :  { %794 = vmatprep.subr.bf16.mxu0 %v854_v52 }
  0x35   :  { %813 = vmatpush3.bf16.msra.mxu1 %v861_v59 }
  0x36   :  { %814 = vmatprep.subr.bf16.mxu1 %v862_v22 }
  0x37   :  { %795 = vmatpush3.bf16.msra.mxu0 %v854_v52 }
  0x38   :  { %796 = vmatprep.subr.bf16.mxu0 %v855_v53 }
  0x39   :  { %815 = vmatpush3.bf16.msra.mxu1 %v862_v22 }
  0x3a   :  { %816 = vmatprep.subr.bf16.mxu1 %v863_v23 }
  0x3b   :  { %797 = vmatpush3.bf16.msra.mxu0 %v855_v53 }
  0x3c   :  { %798 = vmatprep.subr.bf16.mxu0 %v856_v54 }
  0x3d   :  { %817 = vmatpush3.bf16.msra.mxu1 %v863_v23 }
  0x3e   :  { %818 = vmatprep.subr.bf16.mxu1 %v864_v24 }
  0x3f   :  { %799 = vmatpush3.bf16.msra.mxu0 %v856_v54 }
  0x41   :  { %819 = vmatpush3.bf16.msra.mxu1 %v864_v24 }
  0xe2   :  { %v722_v60 = vpop.f32.mrf.mxu0 }
  0xe4   :  { %v723_v61 = vpop.f32.mrf.mxu0  ;;  %v782_v62 = vpop.f32.mrf.mxu1 }
  0xe5   :  { %v724_v63 = vadd.f32 %v723_v61, %v722_v60 }
  0xe6   :  { %v725_v0 = vpop.f32.mrf.mxu0  ;;  %v359_v1 = vpop.f32.mrf.mxu1 }
  0xe7   :  { %v360_v4 = vadd.f32 %v724_v63, %v359_v1 }
  0xe8   :  { %v726_v2 = vpop.f32.mrf.mxu0  ;;  %v783_v3 = vpop.f32.mrf.mxu1 }
  0xe9   :  { %v727_v5 = vadd.f32 %v726_v2, %v725_v0  ;;  %v389_v10 = vmax.f32 %v360_v4, 0.0 }
  0xea   :  { %v728_v6 = vpop.f32.mrf.mxu0  ;;  %v362_v7 = vpop.f32.mrf.mxu1 }
  0xeb   :  { %v363_v8 = vadd.f32 %v727_v5, %v362_v7 }
  0xec   :  { %v729_v9 = vpop.f32.mrf.mxu0 }
  0xed   :  { %v390_v11 = vmax.f32 %v363_v8, 0.0  ;;  %v730_v12 = vadd.f32 %v729_v9, %v728_v6 }
  0xee   :  { %v731_v13 = vpop.f32.mrf.mxu0 }
  0xef   :  { %v393_v14 = vpack.c.bf16 %v390_v11, %v389_v10  ;;  %v368_v16 = vadd.f32 %v782_v62, %v730_v12 }
  0xf0   :  { %v732_v15 = vpop.f32.mrf.mxu0 }
  0xf1   :  { %v733_v17 = vadd.f32 %v732_v15, %v731_v13  ;;  %800 = vmatprep.mubr.bf16.mxu0 %v393_v14  ;;  %v391_v19 = vmax.f32 %v368_v16, 0.0 }
  0xf3   :  { %v371_v18 = vadd.f32 %v783_v3, %v733_v17 }
  0xf5   :  { %v392_v20 = vmax.f32 %v371_v18, 0.0 }
  0xf7   :  { %v394_v21 = vpack.c.bf16 %v392_v20, %v391_v19 }
  0xf9   :  { %801 = vmatmul.mubr.bf16.vlgmr.msra.gmra.mxu0 %v394_v21 }
 0x1b9   :  { %v802_v27 = vpop.f32.mrf.mxu0 }
 0x1ba   :  { %v510_v36 = vadd.f32 %v802_v27, %v703_v30 }
 0x1bb   :  { %v501_v31 = vpop.f32.mrf.mxu0 }
 0x1bc   :  { %v502_v34 = vadd.f32 %v699_v28, %v501_v31  ;;  %v518_v42 = vmax.f32 %v510_v36, 0.0 }
 0x1bd   :  { %v803_v33 = vpop.f32.mrf.mxu0 }
 0x1be   :  { %v513_v35 = vadd.f32 %v803_v33, %v704_v29  ;;  %v516_v40 = vmax.f32 %v502_v34, 0.0 }
 0x1bf   :  { %v504_v37 = vpop.f32.mrf.mxu0 }
 0x1c0   :  { %v505_v38 = vadd.f32 %v700_v32, %v504_v37  ;;  %v519_v39 = vmax.f32 %v513_v35, 0.0 }
 0x1c2   :  { %v517_v41 = vmax.f32 %v505_v38, 0.0  ;;  %v521_v44 = vpack.c.bf16 %v519_v39, %v518_v42 }
 0x1c4   :  { %v520_v43 = vpack.c.bf16 %v517_v41, %v516_v40 }
 0x1c6   :  { %820 = vmatprep.mubr.bf16.mxu1 %v520_v43 }
 0x1c7   :  { %821 = vmatmul.mubr.bf16.vlgmr.msra.gmra.mxu1 %v521_v44 }
 0x287   :  { %v822_v46 = vpop.f32.mrf.mxu1 }
 0x288   :  { %v636_v47 = vadd.f32 %v822_v46, %v688_v45 }
 0x289   :  { %v627_v48 = vpop.f32.mrf.mxu1 }
 0x28a   :  { %644 = vst [vmem:[%s1072_s6 + $0x10] sm:$0xff] %v636_v47  ;;  %v628_v49 = vadd.f32 %v688_v45, %v627_v48 }
 0x28b   :  { %v823_v50 = vpop.f32.mrf.mxu1 }
 0x28c   :  { %642 = vst [vmem:[%s1072_s6] sm:$0xff] %v628_v49  ;;  %v639_v51 = vadd.f32 %v823_v50, %v688_v45 }
 0x28d   :  { %v630_v52 = vpop.f32.mrf.mxu1 }
 0x28e   :  { %645 = vst [vmem:[%s1072_s6 + $0x18] sm:$0xff] %v639_v51  ;;  %v631_v53 = vadd.f32 %v688_v45, %v630_v52 }
 0x290   :  { %643 = vst [vmem:[%s1072_s6 + $0x8] sm:$0xff] %v631_v53 }

// kernel: _lambda_.17
= control target key start
LH: loop header
LB: loop body
LE: loop exit
PB: predicated region body
PF: predicated region fallthrough
CT: control target
= control target key end

     0   :  { %s335_s1 = inlined_call_operand.vmem [shape: bf16[128,128], index: 1, kind: input, shape index: {}]   ;;  %s336_s0 = inlined_call_operand.vmem [shape: bf16[32,128], index: 0, kind: input, shape index: {}]   ;;  %s337_s2 = inlined_call_operand.vmem [shape: f32[1,128], index: 2, kind: input, shape index: {}]   ;;  %s338_s3 = inlined_call_operand.vmem [shape: bf16[32,128], index: 3, kind: output, shape index: {}]  }
   0x1   :  { %v266_v0 = vld [vmem:[%s335_s1 + $0x38] sm:$0xff]   ;;  %v267_v1 = vld [vmem:[%s335_s1 + $0x30] sm:$0xff]   ;;  %v268_v2 = vld [vmem:[%s335_s1 + $0x28] sm:$0xff]  }
   0x2   :  { %246 = vmatprep.subr.bf16.mxu0 %v266_v0  ;;  %v269_v3 = vld [vmem:[%s335_s1 + $0x20] sm:$0xff]   ;;  %v270_v5 = vld [vmem:[%s335_s1 + $0x18] sm:$0xff]   ;;  %v271_v6 = vld [vmem:[%s335_s1 + $0x10] sm:$0xff]  }
   0x3   :  { %247 = vmatpush3.bf16.msra.mxu0 %v266_v0  ;;  %v274_v4 = vld [vmem:[%s336_s0] sm:$0xff]   ;;  %v272_v7 = vld [vmem:[%s335_s1 + $0x8] sm:$0xff]  }
   0x4   :  { %248 = vmatprep.subr.bf16.mxu0 %v267_v1  ;;  %262 = vmatprep.mubr.bf16.mxu0 %v274_v4  ;;  %v273_v8 = vld [vmem:[%s335_s1] sm:$0xff]   ;;  %v275_v9 = vld [vmem:[%s336_s0 + $0x8] sm:$0xff]  }
   0x5   :  { %v216_v11 = vld [vmem:[%s337_s2] ss:$0 sm:$0xff] }
   0x7   :  { %249 = vmatpush3.bf16.msra.mxu0 %v267_v1 }
   0x8   :  { %250 = vmatprep.subr.bf16.mxu0 %v268_v2 }
   0xb   :  { %251 = vmatpush3.bf16.msra.mxu0 %v268_v2 }
   0xc   :  { %252 = vmatprep.subr.bf16.mxu0 %v269_v3 }
   0xf   :  { %253 = vmatpush3.bf16.msra.mxu0 %v269_v3 }
  0x10   :  { %254 = vmatprep.subr.bf16.mxu0 %v270_v5 }
  0x13   :  { %255 = vmatpush3.bf16.msra.mxu0 %v270_v5 }
  0x14   :  { %256 = vmatprep.subr.bf16.mxu0 %v271_v6 }
  0x17   :  { %257 = vmatpush3.bf16.msra.mxu0 %v271_v6 }
  0x18   :  { %258 = vmatprep.subr.bf16.mxu0 %v272_v7 }
  0x1b   :  { %259 = vmatpush3.bf16.msra.mxu0 %v272_v7 }
  0x1c   :  { %260 = vmatprep.subr.bf16.mxu0 %v273_v8 }
  0x1f   :  { %261 = vmatpush3.bf16.msra.mxu0 %v273_v8 }
  0x22   :  { %263 = vmatmul.mubr.bf16.vlgmr.msra.gmra.mxu0 %v275_v9 }
  0xe2   :  { %v264_v10 = vpop.f32.mrf.mxu0 }
  0xe3   :  { %v180_v14 = vadd.f32 %v264_v10, %v216_v11 }
  0xe4   :  { %v141_v12 = vpop.f32.mrf.mxu0 }
  0xe5   :  { %v178_v17 = vadd.f32 %v216_v11, %v141_v12 }
  0xe6   :  { %v265_v13 = vpop.f32.mrf.mxu0 }
  0xe7   :  { %v181_v15 = vadd.f32 %v265_v13, %v216_v11 }
  0xe8   :  { %v144_v16 = vpop.f32.mrf.mxu0 }
  0xe9   :  { %v233_v18 = vpack.c.bf16 %v181_v15, %v180_v14  ;;  %v179_v19 = vadd.f32 %v216_v11, %v144_v16 }
  0xeb   :  { %235 = vst [vmem:[%s338_s3 + $0x8] sm:$0xff] %v233_v18   ;;  %v228_v20 = vpack.c.bf16 %v179_v19, %v178_v17 }
  0xed   :  { %229 = vst [vmem:[%s338_s3] sm:$0xff] %v228_v20  }

// kernel: _lambda_.20
= control target key start
LH: loop header
LB: loop body
LE: loop exit
PB: predicated region body
PF: predicated region fallthrough
CT: control target
= control target key end

     0   :  { %s670_s1 = inlined_call_operand.vmem [shape: bf16[384,128], index: 1, kind: input, shape index: {}]   ;;  %s671_s0 = inlined_call_operand.vmem [shape: bf16[32,384], index: 0, kind: input, shape index: {}]   ;;  %s672_s2 = inlined_call_operand.vmem [shape: f32[1,128], index: 2, kind: input, shape index: {}]   ;;  %s673_s3 = inlined_call_operand.vmem [shape: bf16[32,128], index: 3, kind: output, shape index: {}]  }
   0x1   :  { %v519_v0 = vld [vmem:[%s670_s1 + $0x78] sm:$0xff]   ;;  %v522_v3 = vld [vmem:[%s670_s1 + $0x70] sm:$0xff]   ;;  %v525_v6 = vld [vmem:[%s670_s1 + $0x68] sm:$0xff]  }
   0x2   :  { %v520_v1 = vld [vmem:[%s670_s1 + $0x38] sm:$0xff]   ;;  %461 = vmatprep.subr.bf16.mxu0 %v519_v0  ;;  %v523_v4 = vld [vmem:[%s670_s1 + $0x30] sm:$0xff]   ;;  %v526_v7 = vld [vmem:[%s670_s1 + $0x28] sm:$0xff]  }
   0x3   :  { %v521_v2 = vld [vmem:[%s670_s1 + $0xb8] sm:$0xff]   ;;  %462 = vmatpush3.bf16.msra.mxu0 %v520_v1  ;;  %v524_v5 = vld [vmem:[%s670_s1 + $0xb0] sm:$0xff]   ;;  %v527_v8 = vld [vmem:[%s670_s1 + $0xa8] sm:$0xff]  }
   0x4   :  { %499 = vmatprep.subr.bf16.mxu1 %v521_v2  ;;  %463 = vmatprep.subr.bf16.mxu0 %v522_v3  ;;  %v528_v9 = vld [vmem:[%s670_s1 + $0x60] sm:$0xff]   ;;  %v531_v12 = vld [vmem:[%s670_s1 + $0x58] sm:$0xff]   ;;  %v534_v15 = vld [vmem:[%s670_s1 + $0x50] sm:$0xff]  }
   0x5   :  { %500 = vmatpush3.bf16.msra.mxu1 %v521_v2  ;;  %v529_v10 = vld [vmem:[%s670_s1 + $0x20] sm:$0xff]   ;;  %v533_v13 = vld [vmem:[%s670_s1 + $0x98] sm:$0xff]   ;;  %v536_v16 = vld [vmem:[%s670_s1 + $0x90] sm:$0xff]  }
   0x6   :  { %501 = vmatprep.subr.bf16.mxu1 %v524_v5  ;;  %v530_v11 = vld [vmem:[%s670_s1 + $0xa0] sm:$0xff]   ;;  %v532_v14 = vld [vmem:[%s670_s1 + $0x18] sm:$0xff]   ;;  %v535_v17 = vld [vmem:[%s670_s1 + $0x10] sm:$0xff]  }
   0x7   :  { %464 = vmatpush3.bf16.msra.mxu0 %v523_v4  ;;  %v537_v18 = vld [vmem:[%s670_s1 + $0x48] sm:$0xff]   ;;  %v540_v21 = vld [vmem:[%s670_s1 + $0x40] sm:$0xff]  }
   0x8   :  { %465 = vmatprep.subr.bf16.mxu0 %v525_v6  ;;  %v538_v19 = vld [vmem:[%s670_s1 + $0x8] sm:$0xff]   ;;  %v542_v22 = vld [vmem:[%s670_s1 + $0x80] sm:$0xff]  }
   0x9   :  { %502 = vmatpush3.bf16.msra.mxu1 %v524_v5  ;;  %v539_v20 = vld [vmem:[%s670_s1 + $0x88] sm:$0xff]   ;;  %v545_v23 = vld [vmem:[%s671_s0 + $0x4] ss:$12 sps:$4 sm:$0xff]   ;;  %v441_v37 = vld [vmem:[%s672_s2] ss:$0 sm:$0xff] }
   0xa   :  { %503 = vmatprep.subr.bf16.mxu1 %v527_v8  ;;  %v546_v24 = vld [vmem:[%s671_s0 + $0x8] ss:$12 sps:$4 sm:$0xff]   ;;  %v541_v25 = vld [vmem:[%s670_s1] sm:$0xff]   ;;  %291 = vmatprep.mubr.bf16.mxu0 %v545_v23 }
   0xb   :  { %466 = vmatpush3.bf16.msra.mxu0 %v526_v7  ;;  %515 = vmatprep.mubr.bf16.mxu1 %v546_v24  ;;  %v543_v26 = vld [vmem:[%s671_s0] ss:$12 sps:$4 sm:$0xff]   ;;  %v548_v27 = vld [vmem:[%s671_s0 + $0x1c] ss:$12 sps:$4 sm:$0xff]   ;;  %v550_v29 = vld [vmem:[%s671_s0 + $0x18] ss:$12 sps:$4 sm:$0xff]  }
   0xc   :  { %467 = vmatprep.subr.bf16.mxu0 %v528_v9  ;;  %v547_v28 = vld [vmem:[%s671_s0 + $0x20] ss:$12 sps:$4 sm:$0xff]  }
   0xd   :  { %504 = vmatpush3.bf16.msra.mxu1 %v527_v8 }
   0xe   :  { %505 = vmatprep.subr.bf16.mxu1 %v530_v11 }
   0xf   :  { %468 = vmatpush3.bf16.msra.mxu0 %v529_v10 }
  0x10   :  { %469 = vmatprep.subr.bf16.mxu0 %v531_v12 }
  0x11   :  { %506 = vmatpush3.bf16.msra.mxu1 %v530_v11 }
  0x12   :  { %507 = vmatprep.subr.bf16.mxu1 %v533_v13 }
  0x13   :  { %470 = vmatpush3.bf16.msra.mxu0 %v532_v14 }
  0x14   :  { %471 = vmatprep.subr.bf16.mxu0 %v534_v15 }
  0x15   :  { %508 = vmatpush3.bf16.msra.mxu1 %v533_v13 }
  0x16   :  { %509 = vmatprep.subr.bf16.mxu1 %v536_v16 }
  0x17   :  { %472 = vmatpush3.bf16.msra.mxu0 %v535_v17 }
  0x18   :  { %473 = vmatprep.subr.bf16.mxu0 %v537_v18 }
  0x19   :  { %510 = vmatpush3.bf16.msra.mxu1 %v536_v16 }
  0x1a   :  { %511 = vmatprep.subr.bf16.mxu1 %v539_v20 }
  0x1b   :  { %474 = vmatpush3.bf16.msra.mxu0 %v538_v19 }
  0x1c   :  { %475 = vmatprep.subr.bf16.mxu0 %v540_v21 }
  0x1d   :  { %512 = vmatpush3.bf16.msra.mxu1 %v539_v20 }
  0x1e   :  { %513 = vmatprep.subr.bf16.mxu1 %v542_v22 }
  0x1f   :  { %476 = vmatpush3.bf16.msra.mxu0 %v541_v25 }
  0x21   :  { %514 = vmatpush3.bf16.msra.mxu1 %v542_v22 }
  0x22   :  { %292 = vmatmul.mubr.bf16.vlgmr.msra.gmra.mxu0 %v543_v26 }
  0x23   :  { %299 = vmatprep.mubr.bf16.mxu0 %v548_v27 }
  0x24   :  { %516 = vmatmul.mubr.bf16.vlgmr.msra.gmra.mxu1 %v547_v28 }
  0x2a   :  { %300 = vmatmul.mubr.bf16.gmra.mxu0 %v550_v29 }
  0xe2   :  { %v477_v30 = vpop.f32.mrf.mxu0 }
  0xe4   :  { %v478_v31 = vpop.f32.mrf.mxu0  ;;  %v517_v32 = vpop.f32.mrf.mxu1 }
  0xe5   :  { %v479_v33 = vadd.f32 %v478_v31, %v477_v30 }
  0xe6   :  { %v480_v34 = vpop.f32.mrf.mxu0  ;;  %v342_v35 = vpop.f32.mrf.mxu1 }
  0xe7   :  { %v343_v36 = vadd.f32 %v479_v33, %v342_v35 }
  0xe8   :  { %v481_v38 = vpop.f32.mrf.mxu0  ;;  %v518_v39 = vpop.f32.mrf.mxu1 }
  0xe9   :  { %v482_v40 = vadd.f32 %v481_v38, %v480_v34  ;;  %v379_v43 = vadd.f32 %v441_v37, %v343_v36 }
  0xea   :  { %v483_v41 = vpop.f32.mrf.mxu0  ;;  %v345_v42 = vpop.f32.mrf.mxu1 }
  0xeb   :  { %v346_v44 = vadd.f32 %v482_v40, %v345_v42  ;;  %v383_v49 = vmax.f32 %v379_v43, 0.0 }
  0xec   :  { %v484_v45 = vpop.f32.mrf.mxu0 }
  0xed   :  { %v380_v46 = vadd.f32 %v441_v37, %v346_v44  ;;  %v485_v47 = vadd.f32 %v484_v45, %v483_v41 }
  0xee   :  { %v486_v48 = vpop.f32.mrf.mxu0 }
  0xef   :  { %v384_v50 = vmax.f32 %v380_v46, 0.0  ;;  %v351_v51 = vadd.f32 %v517_v32, %v485_v47 }
  0xf0   :  { %v487_v52 = vpop.f32.mrf.mxu0 }
  0xf1   :  { %v453_v53 = vpack.c.bf16 %v384_v50, %v383_v49  ;;  %v488_v54 = vadd.f32 %v487_v52, %v486_v48  ;;  %v381_v55 = vadd.f32 %v441_v37, %v351_v51 }
  0xf3   :  { %454 = vst [vmem:[%s673_s3] sm:$0xff] %v453_v53   ;;  %v354_v56 = vadd.f32 %v518_v39, %v488_v54  ;;  %v385_v58 = vmax.f32 %v381_v55, 0.0 }
  0xf5   :  { %v382_v57 = vadd.f32 %v441_v37, %v354_v56 }
  0xf7   :  { %v386_v59 = vmax.f32 %v382_v57, 0.0 }
  0xf9   :  { %v458_v60 = vpack.c.bf16 %v386_v59, %v385_v58 }
  0xfb   :  { %460 = vst [vmem:[%s673_s3 + $0x8] sm:$0xff] %v458_v60  }

// kernel: _lambda_.19
= control target key start
LH: loop header
LB: loop body
LE: loop exit
PB: predicated region body
PF: predicated region fallthrough
CT: control target
= control target key end

     0   :  { %v725_v26 = vmov 0   ;;  %s883_s1 = inlined_call_operand.vmem [shape: bf16[384,128], index: 1, kind: input, shape index: {}]   ;;  %s884_s0 = inlined_call_operand.vmem [shape: bf16[32,384], index: 0, kind: input, shape index: {}]   ;;  %s885_s2 = inlined_call_operand.vmem [shape: bf16[128,128], index: 2, kind: input, shape index: {}]   ;;  %s886_s3 = inlined_call_operand.vmem [shape: bf16[32,128], index: 3, kind: input, shape index: {}]   ;;  %s887_s4 = inlined_call_operand.vmem [shape: bf16[32,128], index: 4, kind: output, shape index: {}]  }
   0x1   :  { %v693_v0 = vld [vmem:[%s883_s1 + $0x78] sm:$0xff]   ;;  %v696_v3 = vld [vmem:[%s883_s1 + $0x70] sm:$0xff]   ;;  %v699_v6 = vld [vmem:[%s883_s1 + $0x68] sm:$0xff]  }
   0x2   :  { %v694_v1 = vld [vmem:[%s883_s1 + $0x38] sm:$0xff]   ;;  %604 = vmatprep.subr.bf16.mxu0 %v693_v0  ;;  %v697_v4 = vld [vmem:[%s883_s1 + $0x30] sm:$0xff]   ;;  %v700_v7 = vld [vmem:[%s883_s1 + $0x28] sm:$0xff]  }
   0x3   :  { %v695_v2 = vld [vmem:[%s883_s1 + $0xb8] sm:$0xff]   ;;  %605 = vmatpush3.bf16.msra.mxu0 %v694_v1  ;;  %v698_v5 = vld [vmem:[%s883_s1 + $0xb0] sm:$0xff]   ;;  %v701_v8 = vld [vmem:[%s883_s1 + $0xa8] sm:$0xff]  }
   0x4   :  { %652 = vmatprep.subr.bf16.mxu1 %v695_v2  ;;  %606 = vmatprep.subr.bf16.mxu0 %v696_v3  ;;  %v702_v9 = vld [vmem:[%s883_s1 + $0x60] sm:$0xff]   ;;  %v705_v12 = vld [vmem:[%s883_s1 + $0x58] sm:$0xff]   ;;  %v708_v15 = vld [vmem:[%s883_s1 + $0x50] sm:$0xff]  }
   0x5   :  { %653 = vmatpush3.bf16.msra.mxu1 %v695_v2  ;;  %v703_v10 = vld [vmem:[%s883_s1 + $0x20] sm:$0xff]   ;;  %v707_v13 = vld [vmem:[%s883_s1 + $0x98] sm:$0xff]   ;;  %v710_v16 = vld [vmem:[%s883_s1 + $0x90] sm:$0xff]  }
   0x6   :  { %654 = vmatprep.subr.bf16.mxu1 %v698_v5  ;;  %v704_v11 = vld [vmem:[%s883_s1 + $0xa0] sm:$0xff]   ;;  %v706_v14 = vld [vmem:[%s883_s1 + $0x18] sm:$0xff]   ;;  %v709_v17 = vld [vmem:[%s883_s1 + $0x10] sm:$0xff]  }
   0x7   :  { %607 = vmatpush3.bf16.msra.mxu0 %v697_v4  ;;  %v711_v18 = vld [vmem:[%s883_s1 + $0x48] sm:$0xff]   ;;  %v714_v21 = vld [vmem:[%s883_s1 + $0x40] sm:$0xff]   ;;  %v29_v29 = vld [vmem:[%s884_s0 + $0x14] sm:$0xf] }
   0x8   :  { %608 = vmatprep.subr.bf16.mxu0 %v699_v6  ;;  %v712_v19 = vld [vmem:[%s883_s1 + $0x8] sm:$0xff]   ;;  %v716_v22 = vld [vmem:[%s883_s1 + $0x80] sm:$0xff]   ;;  %v37_v33 = vmax.bf16 %v725_v26, %v29_v29  ;;  %v30_v34 = vld [vmem:[%s884_s0 + $0x18] sm:$0xff] }
   0x9   :  { %655 = vmatpush3.bf16.msra.mxu1 %v698_v5  ;;  %v713_v20 = vld [vmem:[%s883_s1 + $0x88] sm:$0xff]   ;;  %v26_v23 = vld [vmem:[%s884_s0] sm:$0xff]  ;;  %v38_v38 = vmax.bf16 %v725_v26, %v30_v34  ;;  %v717_v43 = vld [vmem:[%s885_s2 + $0x38] sm:$0xff]  }
   0xa   :  { %656 = vmatprep.subr.bf16.mxu1 %v701_v8  ;;  %v28_v24 = vld [vmem:[%s884_s0 + $0xc] sm:$0xff]  ;;  %v27_v25 = vld [vmem:[%s884_s0 + $0x8] sm:$0xf]  ;;  %v34_v27 = vmax.bf16 %v725_v26, %v26_v23  ;;  %v31_v31 = vld [vmem:[%s884_s0 + $0x20] sm:$0xf] }
   0xb   :  { %609 = vmatpush3.bf16.msra.mxu0 %v700_v7  ;;  %v36_v28 = vmax.bf16 %v725_v26, %v28_v24  ;;  %v35_v30 = vmax.bf16 %v725_v26, %v27_v25  ;;  %v33_v32 = vld [vmem:[%s884_s0 + $0x2c] sm:$0xf]  ;;  %v32_v35 = vld [vmem:[%s884_s0 + $0x24] sm:$0xff]  ;;  %v39_v41 = vmax.bf16 %v725_v26, %v31_v31  ;;  %v718_v45 = vld [vmem:[%s885_s2 + $0x30] sm:$0xff]  }
   0xc   :  { %610 = vmatprep.subr.bf16.mxu0 %v702_v9  ;;  %v715_v36 = vld [vmem:[%s883_s1] sm:$0xff]   ;;  %v40_v39 = vmax.bf16 %v725_v26, %v32_v35  ;;  %v41_v42 = vmax.bf16 %v725_v26, %v33_v32  ;;  %v719_v48 = vld [vmem:[%s885_s2 + $0x28] sm:$0xff]   ;;  %v721_v51 = vld [vmem:[%s885_s2 + $0x18] sm:$0xff]  }
   0xd   :  { %657 = vmatpush3.bf16.msra.mxu1 %v701_v8  ;;  %v539_v37 = vcombine.high %v34_v27, %v36_v28  ;;  %v540_v40 = vcombine.low %v35_v30, %v37_v33  ;;  %v538_v44 = vcombine.low %v34_v27, %v36_v28  ;;  %v720_v50 = vld [vmem:[%s885_s2 + $0x20] sm:$0xff]   ;;  %v722_v52 = vld [vmem:[%s885_s2 + $0x10] sm:$0xff]   ;;  %v723_v53 = vld [vmem:[%s885_s2 + $0x8] sm:$0xff]  }
   0xe   :  { %658 = vmatprep.subr.bf16.mxu1 %v704_v11  ;;  %v542_v46 = vcombine.high %v38_v38, %v40_v39  ;;  %v543_v47 = vcombine.low %v39_v41, %v41_v42  ;;  %v541_v49 = vcombine.low %v38_v38, %v40_v39  ;;  %v724_v54 = vld [vmem:[%s885_s2] sm:$0xff]  }
   0xf   :  { %611 = vmatpush3.bf16.msra.mxu0 %v703_v10  ;;  %302 = vmatprep.mubr.bf16.mxu0 %v539_v37 }
  0x10   :  { %612 = vmatprep.subr.bf16.mxu0 %v705_v12  ;;  %668 = vmatprep.mubr.bf16.mxu1 %v540_v40 }
  0x11   :  { %659 = vmatpush3.bf16.msra.mxu1 %v704_v11 }
  0x12   :  { %660 = vmatprep.subr.bf16.mxu1 %v707_v13 }
  0x13   :  { %613 = vmatpush3.bf16.msra.mxu0 %v706_v14 }
  0x14   :  { %614 = vmatprep.subr.bf16.mxu0 %v708_v15 }
  0x15   :  { %661 = vmatpush3.bf16.msra.mxu1 %v707_v13 }
  0x16   :  { %662 = vmatprep.subr.bf16.mxu1 %v710_v16 }
  0x17   :  { %615 = vmatpush3.bf16.msra.mxu0 %v709_v17  ;;  %v602_v17 = vld [vmem:[%s886_s3 + $0x8] sm:$0xff]  }
  0x18   :  { %616 = vmatprep.subr.bf16.mxu0 %v711_v18  ;;  %v585_v18 = vld [vmem:[%s886_s3] sm:$0xff]  }
  0x19   :  { %663 = vmatpush3.bf16.msra.mxu1 %v710_v16  ;;  %v587_v25 = vunpack.c.h.bf16 %v585_v18 }
  0x1a   :  { %664 = vmatprep.subr.bf16.mxu1 %v713_v20 }
  0x1b   :  { %617 = vmatpush3.bf16.msra.mxu0 %v712_v19  ;;  %v590_v19 = vunpack.c.l.bf16 %v602_v17 }
  0x1c   :  { %618 = vmatprep.subr.bf16.mxu0 %v714_v21  ;;  %v586_v21 = vunpack.c.l.bf16 %v585_v18 }
  0x1d   :  { %665 = vmatpush3.bf16.msra.mxu1 %v713_v20 }
  0x1e   :  { %666 = vmatprep.subr.bf16.mxu1 %v716_v22 }
  0x1f   :  { %619 = vmatpush3.bf16.msra.mxu0 %v715_v36 }
  0x20   :  { %672 = vmatprep.subr.bf16.mxu0 %v717_v43 }
  0x21   :  { %667 = vmatpush3.bf16.msra.mxu1 %v716_v22  ;;  %v591_v22 = vunpack.c.h.bf16 %v602_v17 }
  0x22   :  { %303 = vmatmul.mubr.bf16.vlgmr.msra.gmra.mxu0 %v538_v44 }
  0x23   :  { %310 = vmatprep.mubr.bf16.mxu0 %v542_v46  ;;  %673 = vmatpush3.bf16.msra.mxu0 %v717_v43 }
  0x24   :  { %669 = vmatmul.mubr.bf16.vlgmr.msra.gmra.mxu1 %v543_v47  ;;  %674 = vmatprep.subr.bf16.mxu0 %v718_v45 }
  0x27   :  { %675 = vmatpush3.bf16.msra.mxu0 %v718_v45 }
  0x28   :  { %676 = vmatprep.subr.bf16.mxu0 %v719_v48 }
  0x2a   :  { %311 = vmatmul.mubr.bf16.gmra.mxu0 %v541_v49 }
  0x2b   :  { %677 = vmatpush3.bf16.msra.mxu0 %v719_v48 }
  0x2c   :  { %678 = vmatprep.subr.bf16.mxu0 %v720_v50 }
  0x2f   :  { %679 = vmatpush3.bf16.msra.mxu0 %v720_v50 }
  0x30   :  { %680 = vmatprep.subr.bf16.mxu0 %v721_v51 }
  0x33   :  { %681 = vmatpush3.bf16.msra.mxu0 %v721_v51 }
  0x34   :  { %682 = vmatprep.subr.bf16.mxu0 %v722_v52 }
  0x37   :  { %683 = vmatpush3.bf16.msra.mxu0 %v722_v52 }
  0x38   :  { %684 = vmatprep.subr.bf16.mxu0 %v723_v53 }
  0x3b   :  { %685 = vmatpush3.bf16.msra.mxu0 %v723_v53 }
  0x3c   :  { %686 = vmatprep.subr.bf16.mxu0 %v724_v54 }
  0x3f   :  { %687 = vmatpush3.bf16.msra.mxu0 %v724_v54 }
  0xe2   :  { %v620_v55 = vpop.f32.mrf.mxu0 }
  0xe4   :  { %v621_v56 = vpop.f32.mrf.mxu0  ;;  %v670_v57 = vpop.f32.mrf.mxu1 }
  0xe5   :  { %v622_v58 = vadd.f32 %v621_v56, %v620_v55 }
  0xe6   :  { %v623_v59 = vpop.f32.mrf.mxu0  ;;  %v353_v60 = vpop.f32.mrf.mxu1 }
  0xe7   :  { %v354_v63 = vadd.f32 %v622_v58, %v353_v60 }
  0xe8   :  { %v624_v61 = vpop.f32.mrf.mxu0  ;;  %v671_v62 = vpop.f32.mrf.mxu1 }
  0xe9   :  { %v625_v0 = vadd.f32 %v624_v61, %v623_v59  ;;  %v383_v5 = vmax.f32 %v354_v63, 0.0 }
  0xea   :  { %v626_v1 = vpop.f32.mrf.mxu0  ;;  %v356_v2 = vpop.f32.mrf.mxu1 }
  0xeb   :  { %v357_v3 = vadd.f32 %v625_v0, %v356_v2 }
  0xec   :  { %v627_v4 = vpop.f32.mrf.mxu0 }
  0xed   :  { %v384_v6 = vmax.f32 %v357_v3, 0.0  ;;  %v628_v7 = vadd.f32 %v627_v4, %v626_v1 }
  0xee   :  { %v629_v8 = vpop.f32.mrf.mxu0 }
  0xef   :  { %v387_v9 = vpack.c.bf16 %v384_v6, %v383_v5  ;;  %v362_v11 = vadd.f32 %v670_v57, %v628_v7 }
  0xf0   :  { %v630_v10 = vpop.f32.mrf.mxu0 }
  0xf1   :  { %v631_v12 = vadd.f32 %v630_v10, %v629_v8  ;;  %688 = vmatprep.mubr.bf16.mxu0 %v387_v9  ;;  %v385_v14 = vmax.f32 %v362_v11, 0.0 }
  0xf3   :  { %v365_v13 = vadd.f32 %v671_v62, %v631_v12 }
  0xf5   :  { %v386_v15 = vmax.f32 %v365_v13, 0.0 }
  0xf7   :  { %v388_v16 = vpack.c.bf16 %v386_v15, %v385_v14 }
  0xf9   :  { %689 = vmatmul.mubr.bf16.vlgmr.msra.gmra.mxu0 %v388_v16 }
 0x1b9   :  { %v690_v20 = vpop.f32.mrf.mxu0 }
 0x1ba   :  { %v504_v24 = vadd.f32 %v690_v20, %v590_v19 }
 0x1bb   :  { %v495_v23 = vpop.f32.mrf.mxu0 }
 0x1bc   :  { %v496_v27 = vadd.f32 %v586_v21, %v495_v23  ;;  %v512_v30 = vmax.f32 %v504_v24, 0.0 }
 0x1bd   :  { %v691_v26 = vpop.f32.mrf.mxu0 }
 0x1be   :  { %v507_v28 = vadd.f32 %v691_v26, %v591_v22  ;;  %v510_v33 = vmax.f32 %v496_v27, 0.0 }
 0x1bf   :  { %v498_v29 = vpop.f32.mrf.mxu0 }
 0x1c0   :  { %v513_v31 = vmax.f32 %v507_v28, 0.0  ;;  %v499_v32 = vadd.f32 %v587_v25, %v498_v29 }
 0x1c2   :  { %v600_v34 = vpack.c.bf16 %v513_v31, %v512_v30  ;;  %v511_v35 = vmax.f32 %v499_v32, 0.0 }
 0x1c4   :  { %603 = vst [vmem:[%s887_s4 + $0x8] sm:$0xff] %v600_v34   ;;  %v595_v36 = vpack.c.bf16 %v511_v35, %v510_v33 }
 0x1c6   :  { %596 = vst [vmem:[%s887_s4] sm:$0xff] %v595_v36  }

// kernel: _lambda_.21
= control target key start
LH: loop header
LB: loop body
LE: loop exit
PB: predicated region body
PF: predicated region fallthrough
CT: control target
= control target key end

     0   :  { %s804_s1 = inlined_call_operand.vmem [shape: bf16[256,128], index: 1, kind: input, shape index: {}]   ;;  %s805_s0 = inlined_call_operand.vmem [shape: bf16[128,256], index: 0, kind: input, shape index: {}]   ;;  %s806_s2 = inlined_call_operand.vmem [shape: f32[1,128], index: 2, kind: input, shape index: {}]   ;;  %s807_s3 = inlined_call_operand.vmem [shape: f32[128,128], index: 3, kind: output, shape index: {}]  }
   0x1   :  { %v579_v0 = vld [vmem:[%s804_s1 + $0x78] sm:$0xff]   ;;  %v581_v2 = vld [vmem:[%s804_s1 + $0x70] sm:$0xff]   ;;  %v583_v4 = vld [vmem:[%s804_s1 + $0x68] sm:$0xff]  }
   0x2   :  { %v580_v1 = vld [vmem:[%s804_s1 + $0x38] sm:$0xff]   ;;  %499 = vmatprep.subr.bf16.mxu0 %v579_v0  ;;  %563 = vmatprep.subr.bf16.mxu1 %v579_v0  ;;  %v582_v3 = vld [vmem:[%s804_s1 + $0x30] sm:$0xff]   ;;  %v584_v5 = vld [vmem:[%s804_s1 + $0x28] sm:$0xff]  }
   0x3   :  { %500 = vmatpush3.bf16.msra.mxu0 %v580_v1  ;;  %571 = vmatpush3.bf16.msra.mxu1 %v580_v1  ;;  %v585_v6 = vld [vmem:[%s804_s1 + $0x60] sm:$0xff]   ;;  %v587_v8 = vld [vmem:[%s804_s1 + $0x58] sm:$0xff]   ;;  %v589_v10 = vld [vmem:[%s804_s1 + $0x50] sm:$0xff]  }
   0x4   :  { %501 = vmatprep.subr.bf16.mxu0 %v581_v2  ;;  %564 = vmatprep.subr.bf16.mxu1 %v581_v2  ;;  %v586_v7 = vld [vmem:[%s804_s1 + $0x20] sm:$0xff]   ;;  %v588_v9 = vld [vmem:[%s804_s1 + $0x18] sm:$0xff]   ;;  %v590_v13 = vld [vmem:[%s804_s1 + $0x10] sm:$0xff]  }
   0x5   :  { %v597_v11 = vld [vmem:[%s805_s0 + $0x4] ss:$8 sps:$4 sm:$0xff]   ;;  %v595_v18 = vld [vmem:[%s805_s0] ss:$8 sps:$4 sm:$0xff]   ;;  %v601_v20 = vld [vmem:[%s805_s0 + $0x14] ss:$8 sps:$4 sm:$0xff]  }
   0x6   :  { %v600_v12 = vld [vmem:[%s805_s0 + $0x44] ss:$8 sps:$4 sm:$0xff]   ;;  %307 = vmatprep.mubr.bf16.mxu0 %v597_v11  ;;  %v598_v19 = vld [vmem:[%s805_s0 + $0x40] ss:$8 sps:$4 sm:$0xff]   ;;  %v603_v21 = vld [vmem:[%s805_s0 + $0x54] ss:$8 sps:$4 sm:$0xff]  }
   0x7   :  { %502 = vmatpush3.bf16.msra.mxu0 %v582_v3  ;;  %572 = vmatpush3.bf16.msra.mxu1 %v582_v3  ;;  %v591_v14 = vld [vmem:[%s804_s1 + $0x48] sm:$0xff]   ;;  %v593_v16 = vld [vmem:[%s804_s1 + $0x40] sm:$0xff]   ;;  %v605_v22 = vld [vmem:[%s805_s0 + $0x10] ss:$8 sps:$4 sm:$0xff]  }
   0x8   :  { %503 = vmatprep.subr.bf16.mxu0 %v583_v4  ;;  %565 = vmatprep.subr.bf16.mxu1 %v583_v4  ;;  %v592_v15 = vld [vmem:[%s804_s1 + $0x8] sm:$0xff]   ;;  %v594_v17 = vld [vmem:[%s804_s1] sm:$0xff]   ;;  %v606_v23 = vld [vmem:[%s805_s0 + $0x50] ss:$8 sps:$4 sm:$0xff]  }
   0x9   :  { %339 = vmatprep.mubr.bf16.mxu1 %v600_v12  ;;  %v607_v24 = vld [vmem:[%s805_s0 + $0x24] ss:$8 sps:$4 sm:$0xff]   ;;  %v611_v26 = vld [vmem:[%s805_s0 + $0x20] ss:$8 sps:$4 sm:$0xff]   ;;  %v613_v28 = vld [vmem:[%s805_s0 + $0x34] ss:$8 sps:$4 sm:$0xff]  }
   0xa   :  { %v609_v25 = vld [vmem:[%s805_s0 + $0x64] ss:$8 sps:$4 sm:$0xff]   ;;  %v612_v27 = vld [vmem:[%s805_s0 + $0x60] ss:$8 sps:$4 sm:$0xff]   ;;  %v615_v29 = vld [vmem:[%s805_s0 + $0x74] ss:$8 sps:$4 sm:$0xff]  }
   0xb   :  { %504 = vmatpush3.bf16.msra.mxu0 %v584_v5  ;;  %573 = vmatpush3.bf16.msra.mxu1 %v584_v5  ;;  %v617_v30 = vld [vmem:[%s805_s0 + $0x30] ss:$8 sps:$4 sm:$0xff]   ;;  %v738_v35 = vld [vmem:[%s806_s2] ss:$0 sm:$0xff] }
   0xc   :  { %505 = vmatprep.subr.bf16.mxu0 %v585_v6  ;;  %566 = vmatprep.subr.bf16.mxu1 %v585_v6  ;;  %v618_v31 = vld [vmem:[%s805_s0 + $0x70] ss:$8 sps:$4 sm:$0xff]  }
   0xf   :  { %506 = vmatpush3.bf16.msra.mxu0 %v586_v7  ;;  %574 = vmatpush3.bf16.msra.mxu1 %v586_v7 }
  0x10   :  { %507 = vmatprep.subr.bf16.mxu0 %v587_v8  ;;  %567 = vmatprep.subr.bf16.mxu1 %v587_v8 }
  0x13   :  { %508 = vmatpush3.bf16.msra.mxu0 %v588_v9  ;;  %575 = vmatpush3.bf16.msra.mxu1 %v588_v9 }
  0x14   :  { %509 = vmatprep.subr.bf16.mxu0 %v589_v10  ;;  %568 = vmatprep.subr.bf16.mxu1 %v589_v10 }
  0x17   :  { %510 = vmatpush3.bf16.msra.mxu0 %v590_v13  ;;  %576 = vmatpush3.bf16.msra.mxu1 %v590_v13 }
  0x18   :  { %511 = vmatprep.subr.bf16.mxu0 %v591_v14  ;;  %569 = vmatprep.subr.bf16.mxu1 %v591_v14 }
  0x1b   :  { %512 = vmatpush3.bf16.msra.mxu0 %v592_v15  ;;  %577 = vmatpush3.bf16.msra.mxu1 %v592_v15 }
  0x1c   :  { %513 = vmatprep.subr.bf16.mxu0 %v593_v16  ;;  %570 = vmatprep.subr.bf16.mxu1 %v593_v16 }
  0x1f   :  { %514 = vmatpush3.bf16.msra.mxu0 %v594_v17  ;;  %578 = vmatpush3.bf16.msra.mxu1 %v594_v17 }
  0x22   :  { %308 = vmatmul.mubr.bf16.vlgmr.msra.gmra.mxu0 %v595_v18  ;;  %340 = vmatmul.mubr.bf16.vlgmr.msra.gmra.mxu1 %v598_v19 }
  0x23   :  { %315 = vmatprep.mubr.bf16.mxu0 %v601_v20  ;;  %347 = vmatprep.mubr.bf16.mxu1 %v603_v21 }
  0x2a   :  { %316 = vmatmul.mubr.bf16.gmra.mxu0 %v605_v22  ;;  %348 = vmatmul.mubr.bf16.gmra.mxu1 %v606_v23 }
  0x2b   :  { %323 = vmatprep.mubr.bf16.mxu0 %v607_v24  ;;  %355 = vmatprep.mubr.bf16.mxu1 %v609_v25 }
  0x32   :  { %324 = vmatmul.mubr.bf16.gmra.mxu0 %v611_v26  ;;  %356 = vmatmul.mubr.bf16.gmra.mxu1 %v612_v27 }
  0x33   :  { %331 = vmatprep.mubr.bf16.mxu0 %v613_v28  ;;  %363 = vmatprep.mubr.bf16.mxu1 %v615_v29 }
  0x3a   :  { %332 = vmatmul.mubr.bf16.gmra.mxu0 %v617_v30  ;;  %364 = vmatmul.mubr.bf16.gmra.mxu1 %v618_v31 }
  0xe2   :  { %v515_v32 = vpop.f32.mrf.mxu0  ;;  %v539_v33 = vpop.f32.mrf.mxu1 }
  0xe4   :  { %v516_v34 = vpop.f32.mrf.mxu0  ;;  %v540_v36 = vpop.f32.mrf.mxu1 }
  0xe5   :  { %v517_v37 = vadd.f32 %v516_v34, %v515_v32  ;;  %v541_v38 = vadd.f32 %v540_v36, %v539_v33 }
  0xe6   :  { %v518_v39 = vpop.f32.mrf.mxu0  ;;  %v542_v40 = vpop.f32.mrf.mxu1 }
  0xe7   :  { %v430_v41 = vadd.f32 %v517_v37, %v738_v35  ;;  %v438_v42 = vadd.f32 %v541_v38, %v738_v35 }
  0xe8   :  { %v519_v43 = vpop.f32.mrf.mxu0  ;;  %v543_v44 = vpop.f32.mrf.mxu1 }
  0xe9   :  { %446 = vst [vmem:[%s807_s3] sm:$0xff] %v430_v41  ;;  %454 = vst [vmem:[%s807_s3 + $0x40] sm:$0xff] %v438_v42  ;;  %v520_v45 = vadd.f32 %v519_v43, %v518_v39  ;;  %v544_v46 = vadd.f32 %v543_v44, %v542_v40 }
  0xea   :  { %v521_v47 = vpop.f32.mrf.mxu0  ;;  %v545_v48 = vpop.f32.mrf.mxu1 }
  0xeb   :  { %v431_v49 = vadd.f32 %v520_v45, %v738_v35  ;;  %v439_v50 = vadd.f32 %v544_v46, %v738_v35 }
  0xec   :  { %v522_v51 = vpop.f32.mrf.mxu0  ;;  %v546_v52 = vpop.f32.mrf.mxu1 }
  0xed   :  { %447 = vst [vmem:[%s807_s3 + $0x8] sm:$0xff] %v431_v49  ;;  %455 = vst [vmem:[%s807_s3 + $0x48] sm:$0xff] %v439_v50  ;;  %v523_v53 = vadd.f32 %v522_v51, %v521_v47  ;;  %v547_v54 = vadd.f32 %v546_v52, %v545_v48 }
  0xee   :  { %v524_v55 = vpop.f32.mrf.mxu0  ;;  %v548_v56 = vpop.f32.mrf.mxu1 }
  0xef   :  { %v432_v57 = vadd.f32 %v523_v53, %v738_v35  ;;  %v440_v58 = vadd.f32 %v547_v54, %v738_v35 }
  0xf0   :  { %v525_v59 = vpop.f32.mrf.mxu0  ;;  %v549_v60 = vpop.f32.mrf.mxu1 }
  0xf1   :  { %448 = vst [vmem:[%s807_s3 + $0x10] sm:$0xff] %v432_v57  ;;  %456 = vst [vmem:[%s807_s3 + $0x50] sm:$0xff] %v440_v58  ;;  %v526_v61 = vadd.f32 %v525_v59, %v524_v55  ;;  %v550_v62 = vadd.f32 %v549_v60, %v548_v56 }
  0xf2   :  { %v527_v63 = vpop.f32.mrf.mxu0  ;;  %v551_v0 = vpop.f32.mrf.mxu1 }
  0xf3   :  { %v433_v1 = vadd.f32 %v526_v61, %v738_v35  ;;  %v441_v2 = vadd.f32 %v550_v62, %v738_v35 }
  0xf4   :  { %v528_v3 = vpop.f32.mrf.mxu0  ;;  %v552_v4 = vpop.f32.mrf.mxu1 }
  0xf5   :  { %449 = vst [vmem:[%s807_s3 + $0x18] sm:$0xff] %v433_v1  ;;  %457 = vst [vmem:[%s807_s3 + $0x58] sm:$0xff] %v441_v2  ;;  %v529_v5 = vadd.f32 %v528_v3, %v527_v63  ;;  %v553_v6 = vadd.f32 %v552_v4, %v551_v0 }
  0xf6   :  { %v530_v7 = vpop.f32.mrf.mxu0  ;;  %v554_v8 = vpop.f32.mrf.mxu1 }
  0xf7   :  { %v434_v9 = vadd.f32 %v529_v5, %v738_v35  ;;  %v442_v10 = vadd.f32 %v553_v6, %v738_v35 }
  0xf8   :  { %v531_v11 = vpop.f32.mrf.mxu0  ;;  %v555_v12 = vpop.f32.mrf.mxu1 }
  0xf9   :  { %450 = vst [vmem:[%s807_s3 + $0x20] sm:$0xff] %v434_v9  ;;  %458 = vst [vmem:[%s807_s3 + $0x60] sm:$0xff] %v442_v10  ;;  %v532_v13 = vadd.f32 %v531_v11, %v530_v7  ;;  %v556_v14 = vadd.f32 %v555_v12, %v554_v8 }
  0xfa   :  { %v533_v15 = vpop.f32.mrf.mxu0  ;;  %v557_v16 = vpop.f32.mrf.mxu1 }
  0xfb   :  { %v435_v17 = vadd.f32 %v532_v13, %v738_v35  ;;  %v443_v18 = vadd.f32 %v556_v14, %v738_v35 }
  0xfc   :  { %v534_v19 = vpop.f32.mrf.mxu0  ;;  %v558_v20 = vpop.f32.mrf.mxu1 }
  0xfd   :  { %451 = vst [vmem:[%s807_s3 + $0x28] sm:$0xff] %v435_v17  ;;  %459 = vst [vmem:[%s807_s3 + $0x68] sm:$0xff] %v443_v18  ;;  %v535_v21 = vadd.f32 %v534_v19, %v533_v15  ;;  %v559_v22 = vadd.f32 %v558_v20, %v557_v16 }
  0xfe   :  { %v536_v23 = vpop.f32.mrf.mxu0  ;;  %v560_v24 = vpop.f32.mrf.mxu1 }
  0xff   :  { %v436_v25 = vadd.f32 %v535_v21, %v738_v35  ;;  %v444_v26 = vadd.f32 %v559_v22, %v738_v35 }
 0x100   :  { %v537_v27 = vpop.f32.mrf.mxu0  ;;  %v561_v28 = vpop.f32.mrf.mxu1 }
 0x101   :  { %452 = vst [vmem:[%s807_s3 + $0x30] sm:$0xff] %v436_v25  ;;  %460 = vst [vmem:[%s807_s3 + $0x70] sm:$0xff] %v444_v26  ;;  %v538_v29 = vadd.f32 %v537_v27, %v536_v23  ;;  %v562_v30 = vadd.f32 %v561_v28, %v560_v24 }
 0x103   :  { %v437_v31 = vadd.f32 %v538_v29, %v738_v35  ;;  %v445_v32 = vadd.f32 %v562_v30, %v738_v35 }
 0x105   :  { %453 = vst [vmem:[%s807_s3 + $0x38] sm:$0xff] %v437_v31  ;;  %461 = vst [vmem:[%s807_s3 + $0x78] sm:$0xff] %v445_v32 }

</bundles_post_ra>
